<compile_context>
chip_gen: v5e
topology: v5e:2x2
jax: 0.10.0
libtpu: 0.0.40
codegen_flags: <defaults>
</compile_context>

<pallas_src>
import functools
import math

import jax
import jax.numpy as jnp
from jax.experimental import pallas as pl
from jax.experimental.pallas import tpu as pltpu

# ---------------- model hyper-params (match the PyTorch module) ----------------
VOCAB_SIZE = 40
SOS_TOKEN_ID = 0
MAX_SEQ_LEN = 16
EMBED_DIM = 32
OUTPUT_DIM = 32
NUM_HEADS = 2
NUM_LAYERS = 2
FEEDFORWARD_DIM = 128
HEAD_DIM = EMBED_DIM // NUM_HEADS
LN_EPS = 1e-5
NEG_INF = -1e30
LANES = 128

# ---------------- packed parameter slab layout (rows of (rows, 128) f32 slabs) ----------------
# weight slab, per layer: [Wqkv^T (E rows) | Wo^T (E rows) | W1^T (E rows) | W2^T (F rows)],
# then Wout^T at the end. All cols zero-padded to 128 lanes.
W_QKV_OFF = 0
W_WO_OFF = W_QKV_OFF + EMBED_DIM
W_W1_OFF = W_WO_OFF + EMBED_DIM
W_W2_OFF = W_W1_OFF + EMBED_DIM
W_LAYER_ROWS = W_W2_OFF + FEEDFORWARD_DIM                 # 224
W_OUT_OFF = NUM_LAYERS * W_LAYER_ROWS                     # 448
W_TOTAL_ROWS = W_OUT_OFF + EMBED_DIM                      # 480 (multiple of 8)

# vector slab: one zero-padded (128,) row per bias / LayerNorm vector.
(V_BQKV, V_OPB, V_XOPB, V_LN1W, V_LN1B, V_LN2W, V_LN2B,
 V_B1, V_B2, V_LN3W, V_LN3B) = range(11)
V_LAYER_ROWS = 11
V_OUT_ROW = NUM_LAYERS * V_LAYER_ROWS                     # 22
V_TOTAL_ROWS = ((V_OUT_ROW + 1 + 7) // 8) * 8             # 24 (multiple of 8)


def _layer_norm(x, w, b, eps=LN_EPS):
    # x: (M, E); w, b: (1, E)
    mu = jnp.mean(x, axis=-1, keepdims=True)
    var = jnp.mean((x - mu) ** 2, axis=-1, keepdims=True)
    return (x - mu) * jax.lax.rsqrt(var + eps) * w + b


def _decoder_kernel(x_ref, w_ref, v_ref, o_ref, *, b_blk, s1):
    """One batch-block of b_blk sequences fused into M = b_blk*(S+1) matmul rows."""
    E, F, HD = EMBED_DIM, FEEDFORWARD_DIM, HEAD_DIM
    M = x_ref.shape[1]

    x = x_ref[0]                                                     # (M, E) pre-embedded (+pos)

    # Block-diagonal causal mask built in-kernel (cheap VPU compares, reused across layers/heads).
    # Two rows belong to the same sequence iff no boundary k*s1 separates them.
    R = jax.lax.broadcasted_iota(jnp.int32, (M, M), 0)
    C = jax.lax.broadcasted_iota(jnp.int32, (M, M), 1)
    allowed = C <= R                                                 # causal
    for kk in range(1, b_blk):
        bnd = kk * s1
        allowed = allowed & jnp.logical_not((C < bnd) & (R >= bnd))  # block-diagonal

    for l in range(NUM_LAYERS):
        wl = l * W_LAYER_ROWS
        vl = l * V_LAYER_ROWS

        # ---- self-attention (post-norm). Q/K/V fused into one (E, 3E) MXU push; the
        #      1/sqrt(hd) softmax scale is pre-folded into the Q weights/bias.
        qkv = jnp.dot(x, w_ref[wl + W_QKV_OFF:wl + W_QKV_OFF + E, :],
                      preferred_element_type=jnp.float32) \
            + v_ref[vl + V_BQKV:vl + V_BQKV + 1, :]                  # (M, 128); cols 96:128 = 0

        sa = v_ref[vl + V_OPB:vl + V_OPB + 1, 0:E]                   # self-attn out_proj bias
        for h in range(NUM_HEADS):
            q = qkv[:, h * HD:(h + 1) * HD]
            k = qkv[:, E + h * HD:E + (h + 1) * HD]
            v = qkv[:, 2 * E + h * HD:2 * E + (h + 1) * HD]
            s = jax.lax.dot_general(q, k, (((1,), (1,)), ((), ())),
                                    preferred_element_type=jnp.float32)          # (M, M)
            s = jnp.where(allowed, s, NEG_INF)
            m = jnp.max(s, axis=-1, keepdims=True)
            e = jnp.exp(s - m)
            # EUP approx reciprocal (~2^-12 rel err) instead of a per-element VALU divide.
            inv = pl.reciprocal(jnp.sum(e, axis=-1, keepdims=True), approx=True)
            o_h = jnp.dot(e, v, preferred_element_type=jnp.float32) * inv        # (M, HD)
            wo = w_ref[wl + W_WO_OFF + h * HD:wl + W_WO_OFF + (h + 1) * HD, 0:E]
            sa = sa + jnp.dot(o_h, wo, preferred_element_type=jnp.float32)       # folded out-proj
        x = _layer_norm(x + sa,
                        v_ref[vl + V_LN1W:vl + V_LN1W + 1, 0:E],
                        v_ref[vl + V_LN1B:vl + V_LN1B + 1, 0:E])

        # ---- cross-attention over EMPTY memory: (tgt,0)@(0,hd) is exactly zero in PyTorch,
        #      so only the cross-attn out_proj bias survives before norm2.
        x = _layer_norm(x + v_ref[vl + V_XOPB:vl + V_XOPB + 1, 0:E],
                        v_ref[vl + V_LN2W:vl + V_LN2W + 1, 0:E],
                        v_ref[vl + V_LN2B:vl + V_LN2B + 1, 0:E])

        # ---- feed-forward (relu) ----
        h1 = jnp.maximum(
            jnp.dot(x, w_ref[wl + W_W1_OFF:wl + W_W1_OFF + E, :],
                    preferred_element_type=jnp.float32)
            + v_ref[vl + V_B1:vl + V_B1 + 1, :], 0.0)                 # (M, F)
        ff = jnp.dot(h1, w_ref[wl + W_W2_OFF:wl + W_W2_OFF + F, 0:E],
                     preferred_element_type=jnp.float32) \
            + v_ref[vl + V_B2:vl + V_B2 + 1, 0:E]
        x = _layer_norm(x + ff,
                        v_ref[vl + V_LN3W:vl + V_LN3W + 1, 0:E],
                        v_ref[vl + V_LN3B:vl + V_LN3B + 1, 0:E])

    # ---- output projection: lane-dense store (Wout/bout zero-padded to 128 cols) ----
    o_ref[0] = jnp.dot(x, w_ref[W_OUT_OFF:W_OUT_OFF + E, :],
                       preferred_element_type=jnp.float32) + v_ref[V_OUT_ROW:V_OUT_ROW + 1, :]


def init_params(key):
    """Deterministic parameter init mirroring the PyTorch module's shapes (torch layouts)."""
    L, E, F, V, O = NUM_LAYERS, EMBED_DIM, FEEDFORWARD_DIM, VOCAB_SIZE, OUTPUT_DIM
    ks = jax.random.split(key, 16)
    xavier = lambda k, shape, gain=1.0: jax.random.uniform(
        k, shape, jnp.float32,
        -gain * math.sqrt(6.0 / (shape[-2] + shape[-1])),
        gain * math.sqrt(6.0 / (shape[-2] + shape[-1])))
    params = dict(
        emb=jax.random.normal(ks[0], (V, E), jnp.float32) / math.sqrt(E),
        pos=0.1 * jax.random.normal(ks[1], (MAX_SEQ_LEN + 1, E), jnp.float32),
        ipw=xavier(ks[2], (L, 3 * E, E)),          # self-attn in_proj_weight (torch: out, in)
        ipb=jnp.zeros((L, 1, 3 * E), jnp.float32),
        opw=xavier(ks[3], (L, E, E)),              # self-attn out_proj.weight (torch: out, in)
        opb=jnp.zeros((L, 1, E), jnp.float32),
        xopb=jnp.zeros((L, 1, E), jnp.float32),    # cross-attn out_proj.bias (only surviving term)
        ln1w=jnp.ones((L, 1, E), jnp.float32),
        ln1b=jnp.zeros((L, 1, E), jnp.float32),
        ln2w=jnp.ones((L, 1, E), jnp.float32),
        ln2b=jnp.zeros((L, 1, E), jnp.float32),
        lin1w=xavier(ks[4], (L, F, E)),
        lin1b=0.02 * jax.random.normal(ks[5], (L, 1, F), jnp.float32),
        lin2w=xavier(ks[6], (L, E, F)),
        lin2b=0.02 * jax.random.normal(ks[7], (L, 1, E), jnp.float32),
        ln3w=jnp.ones((L, 1, E), jnp.float32),
        ln3b=jnp.zeros((L, 1, E), jnp.float32),
        outw=xavier(ks[8], (O, E), gain=0.5),
        outb=jnp.zeros((1, O), jnp.float32),
    )
    return params


@functools.partial(jax.jit, static_argnames=("num_blocks", "core_parallel"))
def transformer_prediction_forward(input_ids, params, *, num_blocks=1, core_parallel=False):
    """input_ids: (B, S) int32 token ids. Returns (B, S+1, OUTPUT_DIM) float32."""
    B, S = input_ids.shape
    S1 = S + 1
    E, F, HD, O, L = EMBED_DIM, FEEDFORWARD_DIM, HEAD_DIM, OUTPUT_DIM, NUM_LAYERS

    # ---- tokens: prepend SOS; pad batch so each block holds a multiple of 8 sequences,
    #      making M = b_blk*(S+1) 8-sublane aligned for every (M, .) tensor and (M, M) score ----
    sos = jnp.full((B, 1), SOS_TOKEN_ID, dtype=jnp.int32)
    ids = jnp.concatenate([sos, input_ids.astype(jnp.int32)], axis=1)             # (B, S1)
    per_block = -(-B // num_blocks)
    b_blk = -(-per_block // 8) * 8
    b_pad = num_blocks * b_blk
    if b_pad > B:
        ids = jnp.concatenate(
            [ids, jnp.full((b_pad - B, S1), SOS_TOKEN_ID, jnp.int32)], axis=0)
    M = b_blk * S1

    # ---- pre-embed in the wrapper: one dense f32 (num_blocks, M, E) activation DMA instead of
    #      ids + embedding-table DMAs and a one-hot matmul in-kernel ----
    x = params["emb"][ids] + params["pos"][:S1][None, :, :]                        # (b_pad, S1, E)
    x = x.reshape(num_blocks, M, E)

    # ---- pack ALL parameters into two lane-dense slabs (2 DMAs instead of ~25 tiny ones);
    #      weights pre-transposed to (in, out), softmax scale folded into Wq/bq ----
    scale = 1.0 / math.sqrt(HD)
    ipw, ipb = params["ipw"], params["ipb"]
    wq_t = jnp.transpose(ipw[:, 0:E, :], (0, 2, 1)) * scale
    wk_t = jnp.transpose(ipw[:, E:2 * E, :], (0, 2, 1))
    wv_t = jnp.transpose(ipw[:, 2 * E:3 * E, :], (0, 2, 1))
    wqkv = jnp.concatenate([wq_t, wk_t, wv_t], axis=2)                             # (L, E, 3E)
    bqkv = jnp.concatenate([ipb[:, :, 0:E] * scale, ipb[:, :, E:3 * E]], axis=2)   # (L, 1, 3E)
    wo_t = jnp.transpose(params["opw"], (0, 2, 1))                                 # (L, E, E)
    w1_t = jnp.transpose(params["lin1w"], (0, 2, 1))                               # (L, E, F)
    w2_t = jnp.transpose(params["lin2w"], (0, 2, 1))                               # (L, F, E)

    padc = lambda a: jnp.pad(a, ((0, 0), (0, LANES - a.shape[1])))
    padv = lambda v: jnp.pad(v, (0, LANES - v.shape[0]))

    w_rows = []
    for l in range(L):
        w_rows += [padc(wqkv[l]), padc(wo_t[l]), w1_t[l], padc(w2_t[l])]
    w_rows.append(padc(params["outw"].T))
    wslab = jnp.concatenate(w_rows, axis=0)                                        # (480, 128)

    v_rows = []
    for l in range(L):
        v_rows += [padv(bqkv[l, 0]), padv(params["opb"][l, 0]), padv(params["xopb"][l, 0]),
                   padv(params["ln1w"][l, 0]), padv(params["ln1b"][l, 0]),
                   padv(params["ln2w"][l, 0]), padv(params["ln2b"][l, 0]),
                   params["lin1b"][l, 0],
                   padv(params["lin2b"][l, 0]),
                   padv(params["ln3w"][l, 0]), padv(params["ln3b"][l, 0])]
    v_rows.append(padv(params["outb"][0]))
    vslab = jnp.stack(v_rows, axis=0)
    vslab = jnp.pad(vslab, ((0, V_TOTAL_ROWS - vslab.shape[0]), (0, 0)))           # (24, 128)

    # ---- grid: single step on single-TC chips; explicit core-parallel split only for v7x ----
    semantics = (pltpu.CORE_PARALLEL,) if core_parallel else ("arbitrary",)
    kernel = functools.partial(_decoder_kernel, b_blk=b_blk, s1=S1)

    out = pl.pallas_call(
        kernel,
        out_shape=jax.ShapeDtypeStruct((num_blocks, M, LANES), jnp.float32),
        grid_spec=pltpu.PrefetchScalarGridSpec(
            num_scalar_prefetch=0,
            grid=(num_blocks,),
            in_specs=[
                pl.BlockSpec((1, M, E), lambda nb: (nb, 0, 0)),         # activations per block
                pl.BlockSpec((W_TOTAL_ROWS, LANES), lambda nb: (0, 0)),  # packed weights
                pl.BlockSpec((V_TOTAL_ROWS, LANES), lambda nb: (0, 0)),  # packed biases/LN params
            ],
            out_specs=pl.BlockSpec((1, M, LANES), lambda nb: (nb, 0, 0)),
        ),
        compiler_params=pltpu.CompilerParams(dimension_semantics=semantics),
    )(x, wslab, vslab)

    return out.reshape(b_pad, S1, LANES)[:B, :, :O]


def _is_v7x():
    try:
        kind = jax.devices()[0].device_kind.lower()
    except Exception:
        return False
    return ("v7" in kind) or ("7x" in kind)


def predict(input_ids, params):
    """Generation-aware entry: 2 CORE_PARALLEL blocks on v7x (2 TensorCores), else 1 grid step
    on single-TC chips (v5e/v6e) — with a safe single-block fallback."""
    if _is_v7x() and input_ids.shape[0] >= 2:
        try:
            return jax.block_until_ready(
                transformer_prediction_forward(input_ids, params,
                                               num_blocks=2, core_parallel=True))
        except Exception:
            pass  # fall back if CORE_PARALLEL lowering is unavailable on this build
    return jax.block_until_ready(
        transformer_prediction_forward(input_ids, params, num_blocks=1, core_parallel=False))


if __name__ == "__main__":
    key = jax.random.PRNGKey(0)
    pkey, dkey = jax.random.split(key)
    params = init_params(pkey)

    B, S = 2, 8
    input_ids = jax.random.randint(dkey, (B, S), 0, VOCAB_SIZE, dtype=jnp.int32)

    out = predict(input_ids, params)

    assert out.shape == (B, S + 1, OUTPUT_DIM), out.shape
    assert bool(jnp.all(jnp.isfinite(out)))
    print("KERNEL_OK")
</pallas_src>

<mosaic_0001>
module attributes {stable_mosaic.version = 11 : i64} {
  func.func @_decoder_kernel(%arg0: i32, %arg1: memref<1x72x32xf32, #tpu.memory_space<vmem>>, %arg2: memref<480x128xf32, #tpu.memory_space<vmem>>, %arg3: memref<24x128xf32, #tpu.memory_space<vmem>>, %arg4: memref<1x72x128xf32, #tpu.memory_space<vmem>>) attributes {dimension_semantics = [#tpu.dimension_semantics<arbitrary>], iteration_bounds = array<i64: 1>, scalar_prefetch = 0 : i64, scratch_operands = 0 : i64, tpu.core_type = #tpu.core_type<tc>, window_params = [{transform_indices = @transform_0, window_bounds = array<i64: 1, 72, 32>}, {pipeline_mode = #tpu.pipeline_mode<synchronous>, transform_indices = @transform_1, window_bounds = array<i64: 480, 128>}, {pipeline_mode = #tpu.pipeline_mode<synchronous>, transform_indices = @transform_2, window_bounds = array<i64: 24, 128>}, {transform_indices = @transform_3, window_bounds = array<i64: 1, 72, 128>}]} {
    %c0 = arith.constant 0 : index
    %c0_0 = arith.constant 0 : index
    %c0_1 = arith.constant 0 : index
    %0 = vector.load %arg1[%c0, %c0_0, %c0_1] : memref<1x72x32xf32, #tpu.memory_space<vmem>>, vector<1x72x32xf32>
    %1 = vector.shape_cast %0 : vector<1x72x32xf32> to vector<72x32xf32>
    %2 = tpu.iota {dimensions = array<i32: 0>} : vector<72x72xi32>
    %3 = tpu.iota {dimensions = array<i32: 1>} : vector<72x72xi32>
    %4 = arith.cmpi sle, %3, %2 : vector<72x72xi32>
    %c9_i32 = arith.constant 9 : i32
    %5 = vector.broadcast %c9_i32 : i32 to vector<72x72xi32>
    %6 = arith.cmpi slt, %3, %5 : vector<72x72xi32>
    %c9_i32_2 = arith.constant 9 : i32
    %7 = vector.broadcast %c9_i32_2 : i32 to vector<72x72xi32>
    %8 = arith.cmpi sge, %2, %7 : vector<72x72xi32>
    %9 = arith.andi %6, %8 : vector<72x72xi1>
    %cst = arith.constant dense<true> : vector<72x72xi1>
    %10 = arith.xori %9, %cst : vector<72x72xi1>
    %11 = arith.andi %4, %10 : vector<72x72xi1>
    %c18_i32 = arith.constant 18 : i32
    %12 = vector.broadcast %c18_i32 : i32 to vector<72x72xi32>
    %13 = arith.cmpi slt, %3, %12 : vector<72x72xi32>
    %c18_i32_3 = arith.constant 18 : i32
    %14 = vector.broadcast %c18_i32_3 : i32 to vector<72x72xi32>
    %15 = arith.cmpi sge, %2, %14 : vector<72x72xi32>
    %16 = arith.andi %13, %15 : vector<72x72xi1>
    %cst_4 = arith.constant dense<true> : vector<72x72xi1>
    %17 = arith.xori %16, %cst_4 : vector<72x72xi1>
    %18 = arith.andi %11, %17 : vector<72x72xi1>
    %c27_i32 = arith.constant 27 : i32
    %19 = vector.broadcast %c27_i32 : i32 to vector<72x72xi32>
    %20 = arith.cmpi slt, %3, %19 : vector<72x72xi32>
    %c27_i32_5 = arith.constant 27 : i32
    %21 = vector.broadcast %c27_i32_5 : i32 to vector<72x72xi32>
    %22 = arith.cmpi sge, %2, %21 : vector<72x72xi32>
    %23 = arith.andi %20, %22 : vector<72x72xi1>
    %cst_6 = arith.constant dense<true> : vector<72x72xi1>
    %24 = arith.xori %23, %cst_6 : vector<72x72xi1>
    %25 = arith.andi %18, %24 : vector<72x72xi1>
    %c36_i32 = arith.constant 36 : i32
    %26 = vector.broadcast %c36_i32 : i32 to vector<72x72xi32>
    %27 = arith.cmpi slt, %3, %26 : vector<72x72xi32>
    %c36_i32_7 = arith.constant 36 : i32
    %28 = vector.broadcast %c36_i32_7 : i32 to vector<72x72xi32>
    %29 = arith.cmpi sge, %2, %28 : vector<72x72xi32>
    %30 = arith.andi %27, %29 : vector<72x72xi1>
    %cst_8 = arith.constant dense<true> : vector<72x72xi1>
    %31 = arith.xori %30, %cst_8 : vector<72x72xi1>
    %32 = arith.andi %25, %31 : vector<72x72xi1>
    %c45_i32 = arith.constant 45 : i32
    %33 = vector.broadcast %c45_i32 : i32 to vector<72x72xi32>
    %34 = arith.cmpi slt, %3, %33 : vector<72x72xi32>
    %c45_i32_9 = arith.constant 45 : i32
    %35 = vector.broadcast %c45_i32_9 : i32 to vector<72x72xi32>
    %36 = arith.cmpi sge, %2, %35 : vector<72x72xi32>
    %37 = arith.andi %34, %36 : vector<72x72xi1>
    %cst_10 = arith.constant dense<true> : vector<72x72xi1>
    %38 = arith.xori %37, %cst_10 : vector<72x72xi1>
    %39 = arith.andi %32, %38 : vector<72x72xi1>
    %c54_i32 = arith.constant 54 : i32
    %40 = vector.broadcast %c54_i32 : i32 to vector<72x72xi32>
    %41 = arith.cmpi slt, %3, %40 : vector<72x72xi32>
    %c54_i32_11 = arith.constant 54 : i32
    %42 = vector.broadcast %c54_i32_11 : i32 to vector<72x72xi32>
    %43 = arith.cmpi sge, %2, %42 : vector<72x72xi32>
    %44 = arith.andi %41, %43 : vector<72x72xi1>
    %cst_12 = arith.constant dense<true> : vector<72x72xi1>
    %45 = arith.xori %44, %cst_12 : vector<72x72xi1>
    %46 = arith.andi %39, %45 : vector<72x72xi1>
    %c63_i32 = arith.constant 63 : i32
    %47 = vector.broadcast %c63_i32 : i32 to vector<72x72xi32>
    %48 = arith.cmpi slt, %3, %47 : vector<72x72xi32>
    %c63_i32_13 = arith.constant 63 : i32
    %49 = vector.broadcast %c63_i32_13 : i32 to vector<72x72xi32>
    %50 = arith.cmpi sge, %2, %49 : vector<72x72xi32>
    %51 = arith.andi %48, %50 : vector<72x72xi1>
    %cst_14 = arith.constant dense<true> : vector<72x72xi1>
    %52 = arith.xori %51, %cst_14 : vector<72x72xi1>
    %53 = arith.andi %46, %52 : vector<72x72xi1>
    %c0_15 = arith.constant 0 : index
    %c0_16 = arith.constant 0 : index
    %54 = vector.load %arg2[%c0_15, %c0_16] : memref<480x128xf32, #tpu.memory_space<vmem>>, vector<32x128xf32>
    %cst_17 = arith.constant dense<0.000000e+00> : vector<72x128xf32>
    %55 = tpu.matmul %1, %54, %cst_17 {dimension_numbers = #tpu.dot_dimension_numbers<[1], [0], [0], [1], [0, 0, 1, 1], [], []>} : vector<72x32xf32>, vector<32x128xf32>, vector<72x128xf32> -> vector<72x128xf32>
    %c0_18 = arith.constant 0 : index
    %c0_19 = arith.constant 0 : index
    %56 = vector.load %arg3[%c0_18, %c0_19] : memref<24x128xf32, #tpu.memory_space<vmem>>, vector<1x128xf32>
    %57 = vector.broadcast %56 : vector<1x128xf32> to vector<72x128xf32>
    %58 = arith.addf %55, %57 : vector<72x128xf32>
    %c1 = arith.constant 1 : index
    %c0_20 = arith.constant 0 : index
    %59 = vector.load %arg3[%c1, %c0_20] : memref<24x128xf32, #tpu.memory_space<vmem>>, vector<1x32xf32>
    %60 = vector.extract_strided_slice %58 {offsets = [0, 0], sizes = [72, 16], strides = [1, 1]} : vector<72x128xf32> to vector<72x16xf32>
    %61 = vector.extract_strided_slice %58 {offsets = [0, 32], sizes = [72, 16], strides = [1, 1]} : vector<72x128xf32> to vector<72x16xf32>
    %62 = vector.extract_strided_slice %58 {offsets = [0, 64], sizes = [72, 16], strides = [1, 1]} : vector<72x128xf32> to vector<72x16xf32>
    %cst_21 = arith.constant dense<0.000000e+00> : vector<72x72xf32>
    %63 = tpu.matmul %60, %61, %cst_21 {dimension_numbers = #tpu.dot_dimension_numbers<[1], [1], [0], [0], [0, 0, 1, 0], [], []>} : vector<72x16xf32>, vector<72x16xf32>, vector<72x72xf32> -> vector<72x72xf32>
    %cst_22 = arith.constant -1.000000e+30 : f32
    %64 = vector.broadcast %cst_22 : f32 to vector<72x72xf32>
    %65 = arith.select %53, %63, %64 : vector<72x72xi1>, vector<72x72xf32>
    %cst_23 = arith.constant dense<0xFF800000> : vector<72xf32>
    %66 = vector.multi_reduction <maximumf>, %65, %cst_23 [1] : vector<72x72xf32> to vector<72xf32>
    %67 = vector.shape_cast %66 : vector<72xf32> to vector<72x1xf32>
    %68 = vector.broadcast %67 : vector<72x1xf32> to vector<72x72xf32>
    %69 = arith.subf %65, %68 : vector<72x72xf32>
    %70 = math.exp %69 : vector<72x72xf32>
    %cst_24 = arith.constant dense<0.000000e+00> : vector<72xf32>
    %71 = vector.multi_reduction <add>, %70, %cst_24 [1] : vector<72x72xf32> to vector<72xf32>
    %72 = vector.shape_cast %71 : vector<72xf32> to vector<72x1xf32>
    %73 = tpu.reciprocal %72 {approx = true} : vector<72x1xf32> -> vector<72x1xf32>
    %cst_25 = arith.constant dense<0.000000e+00> : vector<72x16xf32>
    %74 = tpu.matmul %70, %62, %cst_25 {dimension_numbers = #tpu.dot_dimension_numbers<[1], [0], [0], [1], [0, 0, 1, 1], [], []>} : vector<72x72xf32>, vector<72x16xf32>, vector<72x16xf32> -> vector<72x16xf32>
    %75 = vector.broadcast %73 : vector<72x1xf32> to vector<72x16xf32>
    %76 = arith.mulf %74, %75 : vector<72x16xf32>
    %c32 = arith.constant 32 : index
    %c0_26 = arith.constant 0 : index
    %77 = vector.load %arg2[%c32, %c0_26] : memref<480x128xf32, #tpu.memory_space<vmem>>, vector<16x32xf32>
    %cst_27 = arith.constant dense<0.000000e+00> : vector<72x32xf32>
    %78 = tpu.matmul %76, %77, %cst_27 {dimension_numbers = #tpu.dot_dimension_numbers<[1], [0], [0], [1], [0, 0, 1, 1], [], []>} : vector<72x16xf32>, vector<16x32xf32>, vector<72x32xf32> -> vector<72x32xf32>
    %79 = vector.broadcast %59 : vector<1x32xf32> to vector<72x32xf32>
    %80 = arith.addf %79, %78 : vector<72x32xf32>
    %81 = vector.extract_strided_slice %58 {offsets = [0, 16], sizes = [72, 16], strides = [1, 1]} : vector<72x128xf32> to vector<72x16xf32>
    %82 = vector.extract_strided_slice %58 {offsets = [0, 48], sizes = [72, 16], strides = [1, 1]} : vector<72x128xf32> to vector<72x16xf32>
    %83 = vector.extract_strided_slice %58 {offsets = [0, 80], sizes = [72, 16], strides = [1, 1]} : vector<72x128xf32> to vector<72x16xf32>
    %cst_28 = arith.constant dense<0.000000e+00> : vector<72x72xf32>
    %84 = tpu.matmul %81, %82, %cst_28 {dimension_numbers = #tpu.dot_dimension_numbers<[1], [1], [0], [0], [0, 0, 1, 0], [], []>} : vector<72x16xf32>, vector<72x16xf32>, vector<72x72xf32> -> vector<72x72xf32>
    %cst_29 = arith.constant -1.000000e+30 : f32
    %85 = vector.broadcast %cst_29 : f32 to vector<72x72xf32>
    %86 = arith.select %53, %84, %85 : vector<72x72xi1>, vector<72x72xf32>
    %cst_30 = arith.constant dense<0xFF800000> : vector<72xf32>
    %87 = vector.multi_reduction <maximumf>, %86, %cst_30 [1] : vector<72x72xf32> to vector<72xf32>
    %88 = vector.shape_cast %87 : vector<72xf32> to vector<72x1xf32>
    %89 = vector.broadcast %88 : vector<72x1xf32> to vector<72x72xf32>
    %90 = arith.subf %86, %89 : vector<72x72xf32>
    %91 = math.exp %90 : vector<72x72xf32>
    %cst_31 = arith.constant dense<0.000000e+00> : vector<72xf32>
    %92 = vector.multi_reduction <add>, %91, %cst_31 [1] : vector<72x72xf32> to vector<72xf32>
    %93 = vector.shape_cast %92 : vector<72xf32> to vector<72x1xf32>
    %94 = tpu.reciprocal %93 {approx = true} : vector<72x1xf32> -> vector<72x1xf32>
    %cst_32 = arith.constant dense<0.000000e+00> : vector<72x16xf32>
    %95 = tpu.matmul %91, %83, %cst_32 {dimension_numbers = #tpu.dot_dimension_numbers<[1], [0], [0], [1], [0, 0, 1, 1], [], []>} : vector<72x72xf32>, vector<72x16xf32>, vector<72x16xf32> -> vector<72x16xf32>
    %96 = vector.broadcast %94 : vector<72x1xf32> to vector<72x16xf32>
    %97 = arith.mulf %95, %96 : vector<72x16xf32>
    %c48 = arith.constant 48 : index
    %c0_33 = arith.constant 0 : index
    %98 = vector.load %arg2[%c48, %c0_33] : memref<480x128xf32, #tpu.memory_space<vmem>>, vector<16x32xf32>
    %cst_34 = arith.constant dense<0.000000e+00> : vector<72x32xf32>
    %99 = tpu.matmul %97, %98, %cst_34 {dimension_numbers = #tpu.dot_dimension_numbers<[1], [0], [0], [1], [0, 0, 1, 1], [], []>} : vector<72x16xf32>, vector<16x32xf32>, vector<72x32xf32> -> vector<72x32xf32>
    %100 = arith.addf %80, %99 : vector<72x32xf32>
    %101 = arith.addf %1, %100 : vector<72x32xf32>
    %c3 = arith.constant 3 : index
    %c0_35 = arith.constant 0 : index
    %102 = vector.load %arg3[%c3, %c0_35] : memref<24x128xf32, #tpu.memory_space<vmem>>, vector<1x32xf32>
    %c4 = arith.constant 4 : index
    %c0_36 = arith.constant 0 : index
    %103 = vector.load %arg3[%c4, %c0_36] : memref<24x128xf32, #tpu.memory_space<vmem>>, vector<1x32xf32>
    %cst_37 = arith.constant dense<0.000000e+00> : vector<72xf32>
    %104 = vector.multi_reduction <add>, %101, %cst_37 [1] : vector<72x32xf32> to vector<72xf32>
    %105 = vector.shape_cast %104 : vector<72xf32> to vector<72x1xf32>
    %cst_38 = arith.constant 3.200000e+01 : f32
    %106 = vector.broadcast %cst_38 : f32 to vector<72x1xf32>
    %107 = arith.divf %105, %106 : vector<72x1xf32>
    %108 = vector.broadcast %107 : vector<72x1xf32> to vector<72x32xf32>
    %109 = arith.subf %101, %108 : vector<72x32xf32>
    %110 = arith.mulf %109, %109 : vector<72x32xf32>
    %cst_39 = arith.constant dense<0.000000e+00> : vector<72xf32>
    %111 = vector.multi_reduction <add>, %110, %cst_39 [1] : vector<72x32xf32> to vector<72xf32>
    %112 = vector.shape_cast %111 : vector<72xf32> to vector<72x1xf32>
    %cst_40 = arith.constant 3.200000e+01 : f32
    %113 = vector.broadcast %cst_40 : f32 to vector<72x1xf32>
    %114 = arith.divf %112, %113 : vector<72x1xf32>
    %115 = vector.broadcast %107 : vector<72x1xf32> to vector<72x32xf32>
    %116 = arith.subf %101, %115 : vector<72x32xf32>
    %cst_41 = arith.constant 9.99999974E-6 : f32
    %117 = vector.broadcast %cst_41 : f32 to vector<72x1xf32>
    %118 = arith.addf %114, %117 : vector<72x1xf32>
    %119 = math.rsqrt %118 : vector<72x1xf32>
    %120 = vector.broadcast %119 : vector<72x1xf32> to vector<72x32xf32>
    %121 = arith.mulf %116, %120 : vector<72x32xf32>
    %122 = vector.broadcast %102 : vector<1x32xf32> to vector<72x32xf32>
    %123 = arith.mulf %121, %122 : vector<72x32xf32>
    %124 = vector.broadcast %103 : vector<1x32xf32> to vector<72x32xf32>
    %125 = arith.addf %123, %124 : vector<72x32xf32>
    %c2 = arith.constant 2 : index
    %c0_42 = arith.constant 0 : index
    %126 = vector.load %arg3[%c2, %c0_42] : memref<24x128xf32, #tpu.memory_space<vmem>>, vector<1x32xf32>
    %127 = vector.broadcast %126 : vector<1x32xf32> to vector<72x32xf32>
    %128 = arith.addf %125, %127 : vector<72x32xf32>
    %c5 = arith.constant 5 : index
    %c0_43 = arith.constant 0 : index
    %129 = vector.load %arg3[%c5, %c0_43] : memref<24x128xf32, #tpu.memory_space<vmem>>, vector<1x32xf32>
    %c6 = arith.constant 6 : index
    %c0_44 = arith.constant 0 : index
    %130 = vector.load %arg3[%c6, %c0_44] : memref<24x128xf32, #tpu.memory_space<vmem>>, vector<1x32xf32>
    %cst_45 = arith.constant dense<0.000000e+00> : vector<72xf32>
    %131 = vector.multi_reduction <add>, %128, %cst_45 [1] : vector<72x32xf32> to vector<72xf32>
    %132 = vector.shape_cast %131 : vector<72xf32> to vector<72x1xf32>
    %cst_46 = arith.constant 3.200000e+01 : f32
    %133 = vector.broadcast %cst_46 : f32 to vector<72x1xf32>
    %134 = arith.divf %132, %133 : vector<72x1xf32>
    %135 = vector.broadcast %134 : vector<72x1xf32> to vector<72x32xf32>
    %136 = arith.subf %128, %135 : vector<72x32xf32>
    %137 = arith.mulf %136, %136 : vector<72x32xf32>
    %cst_47 = arith.constant dense<0.000000e+00> : vector<72xf32>
    %138 = vector.multi_reduction <add>, %137, %cst_47 [1] : vector<72x32xf32> to vector<72xf32>
    %139 = vector.shape_cast %138 : vector<72xf32> to vector<72x1xf32>
    %cst_48 = arith.constant 3.200000e+01 : f32
    %140 = vector.broadcast %cst_48 : f32 to vector<72x1xf32>
    %141 = arith.divf %139, %140 : vector<72x1xf32>
    %142 = vector.broadcast %134 : vector<72x1xf32> to vector<72x32xf32>
    %143 = arith.subf %128, %142 : vector<72x32xf32>
    %cst_49 = arith.constant 9.99999974E-6 : f32
    %144 = vector.broadcast %cst_49 : f32 to vector<72x1xf32>
    %145 = arith.addf %141, %144 : vector<72x1xf32>
    %146 = math.rsqrt %145 : vector<72x1xf32>
    %147 = vector.broadcast %146 : vector<72x1xf32> to vector<72x32xf32>
    %148 = arith.mulf %143, %147 : vector<72x32xf32>
    %149 = vector.broadcast %129 : vector<1x32xf32> to vector<72x32xf32>
    %150 = arith.mulf %148, %149 : vector<72x32xf32>
    %151 = vector.broadcast %130 : vector<1x32xf32> to vector<72x32xf32>
    %152 = arith.addf %150, %151 : vector<72x32xf32>
    %c64 = arith.constant 64 : index
    %c0_50 = arith.constant 0 : index
    %153 = vector.load %arg2[%c64, %c0_50] : memref<480x128xf32, #tpu.memory_space<vmem>>, vector<32x128xf32>
    %cst_51 = arith.constant dense<0.000000e+00> : vector<72x128xf32>
    %154 = tpu.matmul %152, %153, %cst_51 {dimension_numbers = #tpu.dot_dimension_numbers<[1], [0], [0], [1], [0, 0, 1, 1], [], []>} : vector<72x32xf32>, vector<32x128xf32>, vector<72x128xf32> -> vector<72x128xf32>
    %c7 = arith.constant 7 : index
    %c0_52 = arith.constant 0 : index
    %155 = vector.load %arg3[%c7, %c0_52] : memref<24x128xf32, #tpu.memory_space<vmem>>, vector<1x128xf32>
    %156 = vector.broadcast %155 : vector<1x128xf32> to vector<72x128xf32>
    %157 = arith.addf %154, %156 : vector<72x128xf32>
    %cst_53 = arith.constant 0.000000e+00 : f32
    %158 = vector.broadcast %cst_53 : f32 to vector<72x128xf32>
    %159 = arith.maximumf %157, %158 : vector<72x128xf32>
    %c96 = arith.constant 96 : index
    %c0_54 = arith.constant 0 : index
    %160 = vector.load %arg2[%c96, %c0_54] : memref<480x128xf32, #tpu.memory_space<vmem>>, vector<128x32xf32>
    %cst_55 = arith.constant dense<0.000000e+00> : vector<72x32xf32>
    %161 = tpu.matmul %159, %160, %cst_55 {dimension_numbers = #tpu.dot_dimension_numbers<[1], [0], [0], [1], [0, 0, 1, 1], [], []>} : vector<72x128xf32>, vector<128x32xf32>, vector<72x32xf32> -> vector<72x32xf32>
    %c8 = arith.constant 8 : index
    %c0_56 = arith.constant 0 : index
    %162 = vector.load %arg3[%c8, %c0_56] : memref<24x128xf32, #tpu.memory_space<vmem>>, vector<1x32xf32>
    %163 = vector.broadcast %162 : vector<1x32xf32> to vector<72x32xf32>
    %164 = arith.addf %161, %163 : vector<72x32xf32>
    %165 = arith.addf %152, %164 : vector<72x32xf32>
    %c9 = arith.constant 9 : index
    %c0_57 = arith.constant 0 : index
    %166 = vector.load %arg3[%c9, %c0_57] : memref<24x128xf32, #tpu.memory_space<vmem>>, vector<1x32xf32>
    %c10 = arith.constant 10 : index
    %c0_58 = arith.constant 0 : index
    %167 = vector.load %arg3[%c10, %c0_58] : memref<24x128xf32, #tpu.memory_space<vmem>>, vector<1x32xf32>
    %cst_59 = arith.constant dense<0.000000e+00> : vector<72xf32>
    %168 = vector.multi_reduction <add>, %165, %cst_59 [1] : vector<72x32xf32> to vector<72xf32>
    %169 = vector.shape_cast %168 : vector<72xf32> to vector<72x1xf32>
    %cst_60 = arith.constant 3.200000e+01 : f32
    %170 = vector.broadcast %cst_60 : f32 to vector<72x1xf32>
    %171 = arith.divf %169, %170 : vector<72x1xf32>
    %172 = vector.broadcast %171 : vector<72x1xf32> to vector<72x32xf32>
    %173 = arith.subf %165, %172 : vector<72x32xf32>
    %174 = arith.mulf %173, %173 : vector<72x32xf32>
    %cst_61 = arith.constant dense<0.000000e+00> : vector<72xf32>
    %175 = vector.multi_reduction <add>, %174, %cst_61 [1] : vector<72x32xf32> to vector<72xf32>
    %176 = vector.shape_cast %175 : vector<72xf32> to vector<72x1xf32>
    %cst_62 = arith.constant 3.200000e+01 : f32
    %177 = vector.broadcast %cst_62 : f32 to vector<72x1xf32>
    %178 = arith.divf %176, %177 : vector<72x1xf32>
    %179 = vector.broadcast %171 : vector<72x1xf32> to vector<72x32xf32>
    %180 = arith.subf %165, %179 : vector<72x32xf32>
    %cst_63 = arith.constant 9.99999974E-6 : f32
    %181 = vector.broadcast %cst_63 : f32 to vector<72x1xf32>
    %182 = arith.addf %178, %181 : vector<72x1xf32>
    %183 = math.rsqrt %182 : vector<72x1xf32>
    %184 = vector.broadcast %183 : vector<72x1xf32> to vector<72x32xf32>
    %185 = arith.mulf %180, %184 : vector<72x32xf32>
    %186 = vector.broadcast %166 : vector<1x32xf32> to vector<72x32xf32>
    %187 = arith.mulf %185, %186 : vector<72x32xf32>
    %188 = vector.broadcast %167 : vector<1x32xf32> to vector<72x32xf32>
    %189 = arith.addf %187, %188 : vector<72x32xf32>
    %c224 = arith.constant 224 : index
    %c0_64 = arith.constant 0 : index
    %190 = vector.load %arg2[%c224, %c0_64] : memref<480x128xf32, #tpu.memory_space<vmem>>, vector<32x128xf32>
    %cst_65 = arith.constant dense<0.000000e+00> : vector<72x128xf32>
    %191 = tpu.matmul %189, %190, %cst_65 {dimension_numbers = #tpu.dot_dimension_numbers<[1], [0], [0], [1], [0, 0, 1, 1], [], []>} : vector<72x32xf32>, vector<32x128xf32>, vector<72x128xf32> -> vector<72x128xf32>
    %c11 = arith.constant 11 : index
    %c0_66 = arith.constant 0 : index
    %192 = vector.load %arg3[%c11, %c0_66] : memref<24x128xf32, #tpu.memory_space<vmem>>, vector<1x128xf32>
    %193 = vector.broadcast %192 : vector<1x128xf32> to vector<72x128xf32>
    %194 = arith.addf %191, %193 : vector<72x128xf32>
    %c12 = arith.constant 12 : index
    %c0_67 = arith.constant 0 : index
    %195 = vector.load %arg3[%c12, %c0_67] : memref<24x128xf32, #tpu.memory_space<vmem>>, vector<1x32xf32>
    %196 = vector.extract_strided_slice %194 {offsets = [0, 0], sizes = [72, 16], strides = [1, 1]} : vector<72x128xf32> to vector<72x16xf32>
    %197 = vector.extract_strided_slice %194 {offsets = [0, 32], sizes = [72, 16], strides = [1, 1]} : vector<72x128xf32> to vector<72x16xf32>
    %198 = vector.extract_strided_slice %194 {offsets = [0, 64], sizes = [72, 16], strides = [1, 1]} : vector<72x128xf32> to vector<72x16xf32>
    %cst_68 = arith.constant dense<0.000000e+00> : vector<72x72xf32>
    %199 = tpu.matmul %196, %197, %cst_68 {dimension_numbers = #tpu.dot_dimension_numbers<[1], [1], [0], [0], [0, 0, 1, 0], [], []>} : vector<72x16xf32>, vector<72x16xf32>, vector<72x72xf32> -> vector<72x72xf32>
    %cst_69 = arith.constant -1.000000e+30 : f32
    %200 = vector.broadcast %cst_69 : f32 to vector<72x72xf32>
    %201 = arith.select %53, %199, %200 : vector<72x72xi1>, vector<72x72xf32>
    %cst_70 = arith.constant dense<0xFF800000> : vector<72xf32>
    %202 = vector.multi_reduction <maximumf>, %201, %cst_70 [1] : vector<72x72xf32> to vector<72xf32>
    %203 = vector.shape_cast %202 : vector<72xf32> to vector<72x1xf32>
    %204 = vector.broadcast %203 : vector<72x1xf32> to vector<72x72xf32>
    %205 = arith.subf %201, %204 : vector<72x72xf32>
    %206 = math.exp %205 : vector<72x72xf32>
    %cst_71 = arith.constant dense<0.000000e+00> : vector<72xf32>
    %207 = vector.multi_reduction <add>, %206, %cst_71 [1] : vector<72x72xf32> to vector<72xf32>
    %208 = vector.shape_cast %207 : vector<72xf32> to vector<72x1xf32>
    %209 = tpu.reciprocal %208 {approx = true} : vector<72x1xf32> -> vector<72x1xf32>
    %cst_72 = arith.constant dense<0.000000e+00> : vector<72x16xf32>
    %210 = tpu.matmul %206, %198, %cst_72 {dimension_numbers = #tpu.dot_dimension_numbers<[1], [0], [0], [1], [0, 0, 1, 1], [], []>} : vector<72x72xf32>, vector<72x16xf32>, vector<72x16xf32> -> vector<72x16xf32>
    %211 = vector.broadcast %209 : vector<72x1xf32> to vector<72x16xf32>
    %212 = arith.mulf %210, %211 : vector<72x16xf32>
    %c256 = arith.constant 256 : index
    %c0_73 = arith.constant 0 : index
    %213 = vector.load %arg2[%c256, %c0_73] : memref<480x128xf32, #tpu.memory_space<vmem>>, vector<16x32xf32>
    %cst_74 = arith.constant dense<0.000000e+00> : vector<72x32xf32>
    %214 = tpu.matmul %212, %213, %cst_74 {dimension_numbers = #tpu.dot_dimension_numbers<[1], [0], [0], [1], [0, 0, 1, 1], [], []>} : vector<72x16xf32>, vector<16x32xf32>, vector<72x32xf32> -> vector<72x32xf32>
    %215 = vector.broadcast %195 : vector<1x32xf32> to vector<72x32xf32>
    %216 = arith.addf %215, %214 : vector<72x32xf32>
    %217 = vector.extract_strided_slice %194 {offsets = [0, 16], sizes = [72, 16], strides = [1, 1]} : vector<72x128xf32> to vector<72x16xf32>
    %218 = vector.extract_strided_slice %194 {offsets = [0, 48], sizes = [72, 16], strides = [1, 1]} : vector<72x128xf32> to vector<72x16xf32>
    %219 = vector.extract_strided_slice %194 {offsets = [0, 80], sizes = [72, 16], strides = [1, 1]} : vector<72x128xf32> to vector<72x16xf32>
    %cst_75 = arith.constant dense<0.000000e+00> : vector<72x72xf32>
    %220 = tpu.matmul %217, %218, %cst_75 {dimension_numbers = #tpu.dot_dimension_numbers<[1], [1], [0], [0], [0, 0, 1, 0], [], []>} : vector<72x16xf32>, vector<72x16xf32>, vector<72x72xf32> -> vector<72x72xf32>
    %cst_76 = arith.constant -1.000000e+30 : f32
    %221 = vector.broadcast %cst_76 : f32 to vector<72x72xf32>
    %222 = arith.select %53, %220, %221 : vector<72x72xi1>, vector<72x72xf32>
    %cst_77 = arith.constant dense<0xFF800000> : vector<72xf32>
    %223 = vector.multi_reduction <maximumf>, %222, %cst_77 [1] : vector<72x72xf32> to vector<72xf32>
    %224 = vector.shape_cast %223 : vector<72xf32> to vector<72x1xf32>
    %225 = vector.broadcast %224 : vector<72x1xf32> to vector<72x72xf32>
    %226 = arith.subf %222, %225 : vector<72x72xf32>
    %227 = math.exp %226 : vector<72x72xf32>
    %cst_78 = arith.constant dense<0.000000e+00> : vector<72xf32>
    %228 = vector.multi_reduction <add>, %227, %cst_78 [1] : vector<72x72xf32> to vector<72xf32>
    %229 = vector.shape_cast %228 : vector<72xf32> to vector<72x1xf32>
    %230 = tpu.reciprocal %229 {approx = true} : vector<72x1xf32> -> vector<72x1xf32>
    %cst_79 = arith.constant dense<0.000000e+00> : vector<72x16xf32>
    %231 = tpu.matmul %227, %219, %cst_79 {dimension_numbers = #tpu.dot_dimension_numbers<[1], [0], [0], [1], [0, 0, 1, 1], [], []>} : vector<72x72xf32>, vector<72x16xf32>, vector<72x16xf32> -> vector<72x16xf32>
    %232 = vector.broadcast %230 : vector<72x1xf32> to vector<72x16xf32>
    %233 = arith.mulf %231, %232 : vector<72x16xf32>
    %c272 = arith.constant 272 : index
    %c0_80 = arith.constant 0 : index
    %234 = vector.load %arg2[%c272, %c0_80] : memref<480x128xf32, #tpu.memory_space<vmem>>, vector<16x32xf32>
    %cst_81 = arith.constant dense<0.000000e+00> : vector<72x32xf32>
    %235 = tpu.matmul %233, %234, %cst_81 {dimension_numbers = #tpu.dot_dimension_numbers<[1], [0], [0], [1], [0, 0, 1, 1], [], []>} : vector<72x16xf32>, vector<16x32xf32>, vector<72x32xf32> -> vector<72x32xf32>
    %236 = arith.addf %216, %235 : vector<72x32xf32>
    %237 = arith.addf %189, %236 : vector<72x32xf32>
    %c14 = arith.constant 14 : index
    %c0_82 = arith.constant 0 : index
    %238 = vector.load %arg3[%c14, %c0_82] : memref<24x128xf32, #tpu.memory_space<vmem>>, vector<1x32xf32>
    %c15 = arith.constant 15 : index
    %c0_83 = arith.constant 0 : index
    %239 = vector.load %arg3[%c15, %c0_83] : memref<24x128xf32, #tpu.memory_space<vmem>>, vector<1x32xf32>
    %cst_84 = arith.constant dense<0.000000e+00> : vector<72xf32>
    %240 = vector.multi_reduction <add>, %237, %cst_84 [1] : vector<72x32xf32> to vector<72xf32>
    %241 = vector.shape_cast %240 : vector<72xf32> to vector<72x1xf32>
    %cst_85 = arith.constant 3.200000e+01 : f32
    %242 = vector.broadcast %cst_85 : f32 to vector<72x1xf32>
    %243 = arith.divf %241, %242 : vector<72x1xf32>
    %244 = vector.broadcast %243 : vector<72x1xf32> to vector<72x32xf32>
    %245 = arith.subf %237, %244 : vector<72x32xf32>
    %246 = arith.mulf %245, %245 : vector<72x32xf32>
    %cst_86 = arith.constant dense<0.000000e+00> : vector<72xf32>
    %247 = vector.multi_reduction <add>, %246, %cst_86 [1] : vector<72x32xf32> to vector<72xf32>
    %248 = vector.shape_cast %247 : vector<72xf32> to vector<72x1xf32>
    %cst_87 = arith.constant 3.200000e+01 : f32
    %249 = vector.broadcast %cst_87 : f32 to vector<72x1xf32>
    %250 = arith.divf %248, %249 : vector<72x1xf32>
    %251 = vector.broadcast %243 : vector<72x1xf32> to vector<72x32xf32>
    %252 = arith.subf %237, %251 : vector<72x32xf32>
    %cst_88 = arith.constant 9.99999974E-6 : f32
    %253 = vector.broadcast %cst_88 : f32 to vector<72x1xf32>
    %254 = arith.addf %250, %253 : vector<72x1xf32>
    %255 = math.rsqrt %254 : vector<72x1xf32>
    %256 = vector.broadcast %255 : vector<72x1xf32> to vector<72x32xf32>
    %257 = arith.mulf %252, %256 : vector<72x32xf32>
    %258 = vector.broadcast %238 : vector<1x32xf32> to vector<72x32xf32>
    %259 = arith.mulf %257, %258 : vector<72x32xf32>
    %260 = vector.broadcast %239 : vector<1x32xf32> to vector<72x32xf32>
    %261 = arith.addf %259, %260 : vector<72x32xf32>
    %c13 = arith.constant 13 : index
    %c0_89 = arith.constant 0 : index
    %262 = vector.load %arg3[%c13, %c0_89] : memref<24x128xf32, #tpu.memory_space<vmem>>, vector<1x32xf32>
    %263 = vector.broadcast %262 : vector<1x32xf32> to vector<72x32xf32>
    %264 = arith.addf %261, %263 : vector<72x32xf32>
    %c16 = arith.constant 16 : index
    %c0_90 = arith.constant 0 : index
    %265 = vector.load %arg3[%c16, %c0_90] : memref<24x128xf32, #tpu.memory_space<vmem>>, vector<1x32xf32>
    %c17 = arith.constant 17 : index
    %c0_91 = arith.constant 0 : index
    %266 = vector.load %arg3[%c17, %c0_91] : memref<24x128xf32, #tpu.memory_space<vmem>>, vector<1x32xf32>
    %cst_92 = arith.constant dense<0.000000e+00> : vector<72xf32>
    %267 = vector.multi_reduction <add>, %264, %cst_92 [1] : vector<72x32xf32> to vector<72xf32>
    %268 = vector.shape_cast %267 : vector<72xf32> to vector<72x1xf32>
    %cst_93 = arith.constant 3.200000e+01 : f32
    %269 = vector.broadcast %cst_93 : f32 to vector<72x1xf32>
    %270 = arith.divf %268, %269 : vector<72x1xf32>
    %271 = vector.broadcast %270 : vector<72x1xf32> to vector<72x32xf32>
    %272 = arith.subf %264, %271 : vector<72x32xf32>
    %273 = arith.mulf %272, %272 : vector<72x32xf32>
    %cst_94 = arith.constant dense<0.000000e+00> : vector<72xf32>
    %274 = vector.multi_reduction <add>, %273, %cst_94 [1] : vector<72x32xf32> to vector<72xf32>
    %275 = vector.shape_cast %274 : vector<72xf32> to vector<72x1xf32>
    %cst_95 = arith.constant 3.200000e+01 : f32
    %276 = vector.broadcast %cst_95 : f32 to vector<72x1xf32>
    %277 = arith.divf %275, %276 : vector<72x1xf32>
    %278 = vector.broadcast %270 : vector<72x1xf32> to vector<72x32xf32>
    %279 = arith.subf %264, %278 : vector<72x32xf32>
    %cst_96 = arith.constant 9.99999974E-6 : f32
    %280 = vector.broadcast %cst_96 : f32 to vector<72x1xf32>
    %281 = arith.addf %277, %280 : vector<72x1xf32>
    %282 = math.rsqrt %281 : vector<72x1xf32>
    %283 = vector.broadcast %282 : vector<72x1xf32> to vector<72x32xf32>
    %284 = arith.mulf %279, %283 : vector<72x32xf32>
    %285 = vector.broadcast %265 : vector<1x32xf32> to vector<72x32xf32>
    %286 = arith.mulf %284, %285 : vector<72x32xf32>
    %287 = vector.broadcast %266 : vector<1x32xf32> to vector<72x32xf32>
    %288 = arith.addf %286, %287 : vector<72x32xf32>
    %c288 = arith.constant 288 : index
    %c0_97 = arith.constant 0 : index
    %289 = vector.load %arg2[%c288, %c0_97] : memref<480x128xf32, #tpu.memory_space<vmem>>, vector<32x128xf32>
    %cst_98 = arith.constant dense<0.000000e+00> : vector<72x128xf32>
    %290 = tpu.matmul %288, %289, %cst_98 {dimension_numbers = #tpu.dot_dimension_numbers<[1], [0], [0], [1], [0, 0, 1, 1], [], []>} : vector<72x32xf32>, vector<32x128xf32>, vector<72x128xf32> -> vector<72x128xf32>
    %c18 = arith.constant 18 : index
    %c0_99 = arith.constant 0 : index
    %291 = vector.load %arg3[%c18, %c0_99] : memref<24x128xf32, #tpu.memory_space<vmem>>, vector<1x128xf32>
    %292 = vector.broadcast %291 : vector<1x128xf32> to vector<72x128xf32>
    %293 = arith.addf %290, %292 : vector<72x128xf32>
    %cst_100 = arith.constant 0.000000e+00 : f32
    %294 = vector.broadcast %cst_100 : f32 to vector<72x128xf32>
    %295 = arith.maximumf %293, %294 : vector<72x128xf32>
    %c320 = arith.constant 320 : index
    %c0_101 = arith.constant 0 : index
    %296 = vector.load %arg2[%c320, %c0_101] : memref<480x128xf32, #tpu.memory_space<vmem>>, vector<128x32xf32>
    %cst_102 = arith.constant dense<0.000000e+00> : vector<72x32xf32>
    %297 = tpu.matmul %295, %296, %cst_102 {dimension_numbers = #tpu.dot_dimension_numbers<[1], [0], [0], [1], [0, 0, 1, 1], [], []>} : vector<72x128xf32>, vector<128x32xf32>, vector<72x32xf32> -> vector<72x32xf32>
    %c19 = arith.constant 19 : index
    %c0_103 = arith.constant 0 : index
    %298 = vector.load %arg3[%c19, %c0_103] : memref<24x128xf32, #tpu.memory_space<vmem>>, vector<1x32xf32>
    %299 = vector.broadcast %298 : vector<1x32xf32> to vector<72x32xf32>
    %300 = arith.addf %297, %299 : vector<72x32xf32>
    %301 = arith.addf %288, %300 : vector<72x32xf32>
    %c20 = arith.constant 20 : index
    %c0_104 = arith.constant 0 : index
    %302 = vector.load %arg3[%c20, %c0_104] : memref<24x128xf32, #tpu.memory_space<vmem>>, vector<1x32xf32>
    %c21 = arith.constant 21 : index
    %c0_105 = arith.constant 0 : index
    %303 = vector.load %arg3[%c21, %c0_105] : memref<24x128xf32, #tpu.memory_space<vmem>>, vector<1x32xf32>
    %cst_106 = arith.constant dense<0.000000e+00> : vector<72xf32>
    %304 = vector.multi_reduction <add>, %301, %cst_106 [1] : vector<72x32xf32> to vector<72xf32>
    %305 = vector.shape_cast %304 : vector<72xf32> to vector<72x1xf32>
    %cst_107 = arith.constant 3.200000e+01 : f32
    %306 = vector.broadcast %cst_107 : f32 to vector<72x1xf32>
    %307 = arith.divf %305, %306 : vector<72x1xf32>
    %308 = vector.broadcast %307 : vector<72x1xf32> to vector<72x32xf32>
    %309 = arith.subf %301, %308 : vector<72x32xf32>
    %310 = arith.mulf %309, %309 : vector<72x32xf32>
    %cst_108 = arith.constant dense<0.000000e+00> : vector<72xf32>
    %311 = vector.multi_reduction <add>, %310, %cst_108 [1] : vector<72x32xf32> to vector<72xf32>
    %312 = vector.shape_cast %311 : vector<72xf32> to vector<72x1xf32>
    %cst_109 = arith.constant 3.200000e+01 : f32
    %313 = vector.broadcast %cst_109 : f32 to vector<72x1xf32>
    %314 = arith.divf %312, %313 : vector<72x1xf32>
    %315 = vector.broadcast %307 : vector<72x1xf32> to vector<72x32xf32>
    %316 = arith.subf %301, %315 : vector<72x32xf32>
    %cst_110 = arith.constant 9.99999974E-6 : f32
    %317 = vector.broadcast %cst_110 : f32 to vector<72x1xf32>
    %318 = arith.addf %314, %317 : vector<72x1xf32>
    %319 = math.rsqrt %318 : vector<72x1xf32>
    %320 = vector.broadcast %319 : vector<72x1xf32> to vector<72x32xf32>
    %321 = arith.mulf %316, %320 : vector<72x32xf32>
    %322 = vector.broadcast %302 : vector<1x32xf32> to vector<72x32xf32>
    %323 = arith.mulf %321, %322 : vector<72x32xf32>
    %324 = vector.broadcast %303 : vector<1x32xf32> to vector<72x32xf32>
    %325 = arith.addf %323, %324 : vector<72x32xf32>
    %c448 = arith.constant 448 : index
    %c0_111 = arith.constant 0 : index
    %326 = vector.load %arg2[%c448, %c0_111] : memref<480x128xf32, #tpu.memory_space<vmem>>, vector<32x128xf32>
    %cst_112 = arith.constant dense<0.000000e+00> : vector<72x128xf32>
    %327 = tpu.matmul %325, %326, %cst_112 {dimension_numbers = #tpu.dot_dimension_numbers<[1], [0], [0], [1], [0, 0, 1, 1], [], []>} : vector<72x32xf32>, vector<32x128xf32>, vector<72x128xf32> -> vector<72x128xf32>
    %c22 = arith.constant 22 : index
    %c0_113 = arith.constant 0 : index
    %328 = vector.load %arg3[%c22, %c0_113] : memref<24x128xf32, #tpu.memory_space<vmem>>, vector<1x128xf32>
    %329 = vector.broadcast %328 : vector<1x128xf32> to vector<72x128xf32>
    %330 = arith.addf %327, %329 : vector<72x128xf32>
    %c0_114 = arith.constant 0 : index
    %c0_115 = arith.constant 0 : index
    %c0_116 = arith.constant 0 : index
    %331 = vector.load %arg4[%c0_114, %c0_115, %c0_116] : memref<1x72x128xf32, #tpu.memory_space<vmem>>, vector<1x72x128xf32>
    %332 = vector.shape_cast %331 : vector<1x72x128xf32> to vector<72x128xf32>
    %333 = vector.shape_cast %330 : vector<72x128xf32> to vector<1x72x128xf32>
    tpu.vector_store %arg4[%c0_114, %c0_115, %c0_116], %333 {strides = array<i32>} : memref<1x72x128xf32, #tpu.memory_space<vmem>>, vector<1x72x128xf32>,
    return
  }
  func.func @transform_0(%arg0: i32) -> (i32, i32, i32) {
    %c0_i32 = arith.constant 0 : i32
    %c0_i32_0 = arith.constant 0 : i32
    %c0_i32_1 = arith.constant 0 : i32
    return %arg0, %c0_i32, %c0_i32_0 : i32, i32, i32
  }
  func.func @transform_1(%arg0: i32) -> (i32, i32) {
    %c0_i32 = arith.constant 0 : i32
    %c0_i32_0 = arith.constant 0 : i32
    %c0_i32_1 = arith.constant 0 : i32
    return %c0_i32, %c0_i32_0 : i32, i32
  }
  func.func @transform_2(%arg0: i32) -> (i32, i32) {
    %c0_i32 = arith.constant 0 : i32
    %c0_i32_0 = arith.constant 0 : i32
    %c0_i32_1 = arith.constant 0 : i32
    return %c0_i32, %c0_i32_0 : i32, i32
  }
  func.func @transform_3(%arg0: i32) -> (i32, i32, i32) {
    %c0_i32 = arith.constant 0 : i32
    %c0_i32_0 = arith.constant 0 : i32
    %c0_i32_1 = arith.constant 0 : i32
    return %arg0, %c0_i32, %c0_i32_0 : i32, i32, i32
  }
}

</mosaic_0001>

<bundles_post_ra>
// kernel: transformer_prediction_forward.1
= control target key start
LH: loop header
LB: loop body
LE: loop exit
PB: predicated region body
PF: predicated region fallthrough
CT: control target
= control target key end

     0   :  { %vm6555_vm0 = vcmask 261120   ;;  %s4406_s13 = smov 96   ;;  %s4407_s14 = smov 64   ;;  %vm6557_vm1 = vcmask 130048   ;;  %v23_v58 = vlaneseq  ;;  %vm6566_vm5 = vcmask 588800   ;;  %s6551_s1 = inlined_call_operand.vmem [shape: f32[480,128], index: 1, kind: input, shape index: {}]   ;;  %s6552_s0 = inlined_call_operand.vmem [shape: f32[1,72,32], index: 0, kind: input, shape index: {}]   ;;  %s6553_s2 = inlined_call_operand.vmem [shape: f32[24,128], index: 2, kind: input, shape index: {}]   ;;  %s6554_s3 = inlined_call_operand.vmem [shape: f32[1,72,128], index: 3, kind: output, shape index: {}]  }
   0x1   :  { %v306_v0 = vld [vmem:[%s6551_s1 + $0x18] sm:$0xff]  ;;  %v305_v1 = vld [vmem:[%s6551_s1 + $0x10] sm:$0xff]  ;;  %v304_v2 = vld [vmem:[%s6551_s1 + $0x8] sm:$0xff]  ;;  %vm6558_vm10 = vmmov 1   ;;  %s4409_s15 = smov 80   ;;  %s4410_s20 = smov 112  }
   0x2   :  { %349 = vmatpush.msra.mxu0 %v306_v0  ;;  %v303_v3 = vld [vmem:[%s6551_s1] sm:$0xff]  ;;  %v15_v5 = vld [vmem:[%s6552_s0 + $0x8] sm:$0xff]  ;;  %v16_v6 = vld [vmem:[%s6552_s0 + $0x10] sm:$0xff]  ;;  %v4573_v59 = vshrl.u32 %v23_v58, 7  ;;  %v4576_v61 = vand.u32 127, %v23_v58  ;;  %s4411_s21 = smov 48  }
   0x3   :  { %v14_v4 = vld [vmem:[%s6552_s0] sm:$0xff]  ;;  %v17_v7 = vld [vmem:[%s6552_s0 + $0x18] sm:$0xff]  ;;  %v19_v9 = vld [vmem:[%s6552_s0 + $0x28] sm:$0xff] }
   0x4   :  { %350 = vmatpush.msra.mxu0 %v305_v1  ;;  %v18_v8 = vld [vmem:[%s6552_s0 + $0x20] sm:$0xff]  ;;  %v20_v10 = vld [vmem:[%s6552_s0 + $0x30] sm:$0xff]  ;;  %v21_v11 = vld [vmem:[%s6552_s0 + $0x38] sm:$0xff]  ;;  %v25_v60 = vadd.s32 8, %v4573_v59  ;;  %vm44_vm2 = vcmp.lt.s32.totalorder %v4576_v61, 9  ;;  %vm6556_vm4 = vcmp.le.s32.totalorder %v4576_v61, %v4573_v59  ;;  %v26_v62 = vadd.s32 16, %v4573_v59 }
   0x5   :  { %v22_v12 = vld [vmem:[%s6552_s0 + $0x40] sm:$0xff]  ;;  %vm81_vm7 = vcmp.lt.s32.totalorder %v4576_v61, 18  ;;  %vm4598_vm12 = vmxor %vm44_vm2, %vm6558_vm10 }
   0x6   :  { %351 = vmatpush.msra.mxu0 %v304_v2  ;;  %v4120_v17 = vld [vmem:[%s6553_s2] ss:$0 sm:$0xff]  ;;  %vm46_vm3 = vcmp.ge.s32.totalorder %v25_v60, 9  ;;  %vm84_vm8 = vcmp.ge.s32.totalorder %v26_v62, 18  ;;  %vm36_vm9 = vcmp.le.s32.totalorder %v4576_v61, %v25_v60  ;;  %v27_v2 = vadd.s32 24, %v4573_v59 }
   0x7   :  { %vm55_vm6 = vmand %vm44_vm2, %vm46_vm3  ;;  %vm37_vm13 = vcmp.le.s32.totalorder %v4576_v61, %v26_v62 }
   0x8   :  { %352 = vmatpush.msra.mxu0 %v303_v3  ;;  %vm64_vm11 = vmxor %vm55_vm6, %vm6558_vm10  ;;  %vm38_vm6 = vcmp.le.s32.totalorder %v4576_v61, %v27_v2 }
   0x9   :  { %3833 = vmatmul.msk.f32.vlgmr.msra.gmra.mxu0 %vm6555_vm0, %v14_v4  ;;  %vm93_vm14 = vmand %vm81_vm7, %vm84_vm8  ;;  %v6576_v4 = vmov 0 }
   0xa   :  { %vm4605_vm15 = vmand %vm36_vm9, %vm64_vm11  ;;  %vm118_vm9 = vcmp.lt.s32.totalorder %v4576_v61, 27  ;;  %vm122_vm11 = vcmp.ge.s32.totalorder %v27_v2, 27 }
   0xb   :  { %v6577_v4 = vsel %vm4605_vm15, 4294967295, %v6576_v4  ;;  %vm74_vm3 = vmand %vm37_vm13, %vm4598_vm12 }
   0xc   :  { %vm102_vm2 = vmxor %vm93_vm14, %vm6558_vm10 }
   0xd   :  { %vm4621_vm8 = vmxor %vm81_vm7, %vm6558_vm10 }
   0xe   :  { %vm4630_vm13 = vmand %vm38_vm6, %vm4598_vm12 }
   0xf   :  { %vm4634_vm14 = vmand %vm74_vm3, %vm102_vm2  ;;  %vm155_vm2 = vcmp.lt.s32.totalorder %v4576_v61, 36 }
  0x10   :  { %vm4652_vm6 = vmxor %vm118_vm9, %vm6558_vm10 }
  0x11   :  { %3834 = vmatmul.msk.f32.gmra.mxu0 %vm6555_vm0, %v15_v5  ;;  %v28_v5 = vadd.s32 32, %v4573_v59 }
  0x13   :  { %vm39_vm7 = vcmp.le.s32.totalorder %v4576_v61, %v28_v5 }
  0x19   :  { %3835 = vmatmul.msk.f32.gmra.mxu0 %vm6555_vm0, %v16_v6 }
  0x21   :  { %3836 = vmatmul.msk.f32.gmra.mxu0 %vm6555_vm0, %v17_v7 }
  0x29   :  { %3837 = vmatmul.msk.f32.gmra.mxu0 %vm6555_vm0, %v18_v8  ;;  %v6578_v8 = vmov 0 }
  0x2a   :  { %v6579_v8 = vsel %vm4621_vm8, 4294967295, %v6578_v8 }
  0x31   :  { %3838 = vmatmul.msk.f32.gmra.mxu0 %vm6555_vm0, %v19_v9 }
  0x39   :  { %3839 = vmatmul.msk.f32.gmra.mxu0 %vm6555_vm0, %v20_v10 }
  0x41   :  { %3840 = vmatmul.msk.f32.gmra.mxu0 %vm6555_vm0, %v21_v11  ;;  %v6582_v11 = vmov 0 }
  0x42   :  { %v6583_v11 = vsel %vm4634_vm14, 4294967295, %v6582_v11 }
  0x49   :  { %3841 = vmatmul.msk.f32.gmra.mxu0 %vm6555_vm0, %v22_v12  ;;  %vm131_vm0 = vmand %vm118_vm9, %vm122_vm11  ;;  %vm160_vm11 = vcmp.ge.s32.totalorder %v28_v5, 36 }
  0x4a   :  { %vm140_vm3 = vmxor %vm131_vm0, %vm6558_vm10 }
  0x86   :  { %v354_v13 = vpop.f32.mrf.mxu0 }
  0x87   :  { %v4492_v23 = vadd.f32 %v4120_v17, %v354_v13  ;;  %v29_v13 = vadd.s32 40, %v4573_v59 }
  0x89   :  { %vm40_vm9 = vcmp.le.s32.totalorder %v4576_v61, %v29_v13 }
  0x8e   :  { %v357_v14 = vpop.f32.mrf.mxu0 }
  0x8f   :  { %v4504_v28 = vadd.f32 %v4120_v17, %v357_v14 }
  0x96   :  { %v360_v15 = vpop.f32.mrf.mxu0 }
  0x97   :  { %v4522_v32 = vadd.f32 %v4120_v17, %v360_v15 }
  0x99   :  { %v4526_v33 = vpack.i.bf16 %v4504_v28, %v4522_v32 }
  0x9e   :  { %v363_v16 = vpop.f32.mrf.mxu0 }
  0x9f   :  { %v4488_v21 = vadd.f32 %v4120_v17, %v363_v16 }
  0xa6   :  { %v366_v18 = vpop.f32.mrf.mxu0 }
  0xa7   :  { %v4484_v19 = vadd.f32 %v4120_v17, %v366_v18  ;;  %v6588_v18 = vmov 0 }
  0xa9   :  { %399 = vrot.lane.b32.xlu2 %v4484_v19, %s4406_s13  ;;  %v4542_v35 = vpack.i.bf16 %v4488_v21, %v4484_v19 }
  0xae   :  { %v369_v20 = vpop.f32.mrf.mxu0 }
  0xaf   :  { %v4500_v26 = vadd.f32 %v4120_v17, %v369_v20  ;;  %v30_v20 = vadd.s32 48, %v4573_v59 }
  0xb1   :  { %397 = vrot.lane.b32.xlu2 %v4488_v21, %s4406_s13 }
  0xb6   :  { %v372_v22 = vpop.f32.mrf.mxu0 }
  0xb7   :  { %v4494_v24 = vadd.f32 %v4120_v17, %v372_v22 }
  0xb9   :  { %403 = vrot.lane.b32.xlu1 %v4494_v24, %s4406_s13  ;;  %391 = vrot.lane.b32.xlu2 %v4492_v23, %s4406_s13  ;;  %v4516_v31 = vpack.i.bf16 %v4500_v26, %v4494_v24 }
  0xbe   :  { %v375_v25 = vpop.f32.mrf.mxu0 }
  0xbf   :  { %v4512_v30 = vadd.f32 %v4120_v17, %v375_v25  ;;  %v6593_v25 = vmov 0 }
  0xc1   :  { %401 = vrot.lane.b32.xlu1 %v4500_v26, %s4406_s13 }
  0xc6   :  { %v378_v27 = vpop.f32.mrf.mxu0 }
  0xc7   :  { %v4506_v29 = vadd.f32 %v4120_v17, %v378_v27 }
  0xc9   :  { %407 = vrot.lane.b32.xlu0 %v4506_v29, %s4406_s13  ;;  %393 = vrot.lane.b32.xlu1 %v4504_v28, %s4406_s13  ;;  %v4534_v34 = vpack.i.bf16 %v4512_v30, %v4506_v29 }
  0xd1   :  { %405 = vrot.lane.b32.xlu0 %v4512_v30, %s4406_s13  ;;  %4041 = vrot.lane.b32.xlu1 %v4516_v31, %s4407_s14 }
  0xd9   :  { %395 = vrot.lane.b32.xlu0 %v4522_v32, %s4406_s13  ;;  %4056 = vrot.lane.b32.xlu1 %v4526_v33, %s4407_s14 }
  0xe1   :  { %4046 = vrot.lane.b32.xlu0 %v4534_v34, %s4407_s14  ;;  %590 = vrot.lane.b32.xlu1 %v4492_v23, %s4407_s14 }
  0xe9   :  { %4051 = vrot.lane.b32.xlu0 %v4542_v35, %s4407_s14 }
 0x103   :  { %v400_v41 = vpop.permute.xlu2 %399 }
 0x10b   :  { %v398_v44 = vpop.permute.xlu2 %397 }
 0x113   :  { %v392_v54 = vpop.permute.xlu2 %391 }
 0x12b   :  { %v404_v36 = vpop.permute.xlu1 %403 }
 0x133   :  { %v402_v38 = vpop.permute.xlu1 %401 }
 0x13b   :  { %v408_v37 = vpop.permute.xlu0 %407  ;;  %v394_v40 = vpop.permute.xlu1 %393 }
 0x13c   :  { %3842 = vmatpush.xpose.msk.msra.mxu1 %vm6557_vm1, %v408_v37  ;;  %v6595_v37 = vmov 0 }
 0x143   :  { %v406_v39 = vpop.permute.xlu0 %405  ;;  %v4042_v43 = vpop.permute.xlu1 %4041 }
 0x144   :  { %3843 = vmatpush.xpose.msk.msra.mxu1 %vm6557_vm1, %v406_v39  ;;  %v4043_v48 = vunpack.i.l.bf16 %v4042_v43  ;;  %v4044_v49 = vunpack.i.h.bf16 %v4042_v43  ;;  %v31_v39 = vadd.s32 56, %v4573_v59 }
 0x148   :  { %3844 = vmatpush.xpose.msk.msra.mxu1 %vm6557_vm1, %v404_v36 }
 0x14b   :  { %v396_v42 = vpop.permute.xlu0 %395  ;;  %v4057_v50 = vpop.permute.xlu1 %4056 }
 0x14c   :  { %3845 = vmatpush.xpose.msk.msra.mxu1 %vm6557_vm1, %v402_v38  ;;  %v4058_v55 = vunpack.i.l.bf16 %v4057_v50  ;;  %v4059_v56 = vunpack.i.h.bf16 %v4057_v50 }
 0x150   :  { %3846 = vmatpush.xpose.msk.msra.mxu1 %vm6557_vm1, %v400_v41 }
 0x153   :  { %v4047_v45 = vpop.permute.xlu0 %4046  ;;  %v591_v57 = vpop.permute.xlu1 %590 }
 0x154   :  { %3847 = vmatpush.xpose.msk.msra.mxu1 %vm6557_vm1, %v398_v44  ;;  %v4048_v46 = vunpack.i.l.bf16 %v4047_v45  ;;  %v4049_v47 = vunpack.i.h.bf16 %v4047_v45  ;;  %v6601_v44 = vmov 0  ;;  %v32_v45 = vadd.s32 64, %v4573_v59 }
 0x156   :  { %651 = vmatpush.msra.mxu2 %v4048_v46 }
 0x158   :  { %3848 = vmatpush.xpose.msk.msra.mxu1 %vm6557_vm1, %v396_v42  ;;  %652 = vmatpush.msra.mxu2 %v4049_v47 }
 0x15a   :  { %653 = vmatpush.msra.mxu2 %v4043_v48 }
 0x15b   :  { %v4052_v51 = vpop.permute.xlu0 %4051 }
 0x15c   :  { %3849 = vmatpush.xpose.msk.msra.mxu1 %vm6557_vm1, %v394_v40  ;;  %654 = vmatpush.msra.mxu2 %v4044_v49  ;;  %v4053_v52 = vunpack.i.l.bf16 %v4052_v51  ;;  %v4054_v53 = vunpack.i.h.bf16 %v4052_v51 }
 0x15e   :  { %655 = vmatpush.msra.mxu2 %v4053_v52 }
 0x160   :  { %3850 = vmatpush.xpose.msk.msra.mxu1 %vm6557_vm1, %v392_v54  ;;  %656 = vmatpush.msra.mxu2 %v4054_v53 }
 0x162   :  { %657 = vmatpush.msra.mxu2 %v4058_v55 }
 0x163   :  { %3851 = vmatmul.msk.f32.vlgmr.msra.gmra.mxu1 %vm6557_vm1, %v4492_v23 }
 0x164   :  { %658 = vmatpush.msra.mxu2 %v4059_v56 }
 0x166   :  { %659 = vmatpush.msra.mxu2 %v591_v57 }
 0x16b   :  { %3852 = vmatmul.msk.f32.gmra.mxu1 %vm6557_vm1, %v4504_v28 }
 0x173   :  { %3853 = vmatmul.msk.f32.gmra.mxu1 %vm6557_vm1, %v4522_v32 }
 0x17b   :  { %3854 = vmatmul.msk.f32.gmra.mxu1 %vm6557_vm1, %v4488_v21 }
 0x183   :  { %3855 = vmatmul.msk.f32.gmra.mxu1 %vm6557_vm1, %v4484_v19 }
 0x18b   :  { %3856 = vmatmul.msk.f32.gmra.mxu1 %vm6557_vm1, %v4500_v26 }
 0x193   :  { %3857 = vmatmul.msk.f32.gmra.mxu1 %vm6557_vm1, %v4494_v24 }
 0x19b   :  { %3858 = vmatmul.msk.f32.gmra.mxu1 %vm6557_vm1, %v4512_v30 }
 0x1a3   :  { %3859 = vmatmul.msk.f32.gmra.mxu1 %vm6557_vm1, %v4506_v29  ;;  %vm4645_vm1 = vmand %vm39_vm7, %vm4598_vm12 }
 0x1a4   :  { %vm169_vm7 = vmand %vm155_vm2, %vm160_vm11  ;;  %vm41_vm11 = vcmp.le.s32.totalorder %v4576_v61, %v30_v20 }
 0x1e0   :  { %v463_v63 = vpop.f32.mrf.mxu1 }
 0x1e1   :  { %v4587_v0 = vsel %vm6556_vm4, %v463_v63, -1e+30  ;;  %vm112_vm4 = vmand %vm4630_vm13, %vm4621_vm8 }
 0x1e2   :  { %v500_v1 = vsel %vm6566_vm5, %v4587_v0, -inf  ;;  %vm113_vm13 = vmand %vm4645_vm1, %vm4621_vm8  ;;  %vm6592_vm1 = vmmov 1  }
 0x1e3   :  { %501 = vmax.xlane.f32.xlu2 %v500_v1  ;;  %vm4667_vm0 = vmand %vm112_vm4, %vm140_vm3 }
 0x1e4   :  { %v6589_v18 = vsel %vm4667_vm0, 4294967295, %v6588_v18  ;;  %vm150_vm10 = vmand %vm113_vm13, %vm4652_vm6 }
 0x1e5   :  { %vm178_vm4 = vmxor %vm169_vm7, %vm6592_vm1  ;;  %vm198_vm7 = vcmp.ge.s32.totalorder %v29_v13, 45 }
 0x1e6   :  { %vm4683_vm3 = vmxor %vm155_vm2, %vm6592_vm1  ;;  %vm6568_vm2 = vcmp.lt.s32.totalorder %v4576_v61, 45 }
 0x1e7   :  { %v6594_v25 = vsel %vm4683_vm3, 4294967295, %v6593_v25 }
 0x1e8   :  { %v466_v6 = vpop.f32.mrf.mxu1 }
 0x1e9   :  { %v4616_v7 = vsel %vm4605_vm15, %v466_v6, -1e+30  ;;  %vm78_vm15 = vmand %vm41_vm11, %vm4598_vm12 }
 0x1ea   :  { %v503_v9 = vsel %vm6566_vm5, %v4616_v7, -inf }
 0x1eb   :  { %504 = vmax.xlane.f32.xlu0 %v503_v9 }
 0x1f0   :  { %v469_v14 = vpop.f32.mrf.mxu1 }
 0x1f1   :  { %v4659_v16 = vsel %vm4634_vm14, %v469_v14, -1e+30  ;;  %vm4677_vm14 = vmand %vm40_vm9, %vm4598_vm12 }
 0x1f2   :  { %v506_v17 = vsel %vm6566_vm5, %v4659_v16, -inf  ;;  %vm114_vm13 = vmand %vm4677_vm14, %vm4621_vm8 }
 0x1f3   :  { %507 = vmax.xlane.f32.xlu1 %v506_v17  ;;  %vm4696_vm9 = vmand %vm150_vm10, %vm178_vm4 }
 0x1f4   :  { %v6596_v37 = vsel %vm4696_vm9, 4294967295, %v6595_v37  ;;  %vm151_vm14 = vmand %vm114_vm13, %vm4652_vm6 }
 0x1f5   :  { %vm207_vm10 = vmand %vm6568_vm2, %vm198_vm7  ;;  %vm6599_vm13 = vnez %v6596_v37  ;;  %vm6600_vm7 = vcmask 588800   ;;  %vm236_vm2 = vcmp.ge.s32.totalorder %v30_v20, 54 }
 0x1f6   :  { %vm115_vm4 = vmand %vm78_vm15, %vm4621_vm8 }
 0x1f7   :  { %vm216_vm9 = vmxor %vm207_vm10, %vm6592_vm1 }
 0x1f8   :  { %v472_v27 = vpop.f32.mrf.mxu1  ;;  %vm4718_vm11 = vmand %vm115_vm4, %vm4652_vm6  ;;  %vm6570_vm4 = vcmp.lt.s32.totalorder %v4576_v61, 54 }
 0x1f9   :  { %v4694_v36 = vsel %vm4667_vm0, %v472_v27, -1e+30  ;;  %vm188_vm0 = vmand %vm151_vm14, %vm4683_vm3 }
 0x1fa   :  { %v509_v38 = vsel %vm6566_vm5, %v4694_v36, -inf  ;;  %vm42_vm5 = vcmp.le.s32.totalorder %v4576_v61, %v31_v39  ;;  %vm4730_vm14 = vmand %vm188_vm0, %vm216_vm9 }
 0x1fb   :  { %510 = vmax.xlane.f32.xlu2 %v509_v38  ;;  %vm79_vm15 = vmand %vm42_vm5, %vm4598_vm12  ;;  %v6602_v44 = vsel %vm4730_vm14, 4294967295, %v6601_v44  ;;  %vm6603_vm5 = vcmp.lt.s32.totalorder %v4576_v61, 45 }
 0x1fc   :  { %vm189_vm10 = vmand %vm4718_vm11, %vm4683_vm3 }
 0x1fd   :  { %vm4745_vm0 = vmxor %vm6603_vm5, %vm6592_vm1 }
 0x1fe   :  { %vm245_vm9 = vmand %vm6570_vm4, %vm236_vm2 }
 0x1ff   :  { %vm254_vm5 = vmxor %vm245_vm9, %vm6592_vm1  ;;  %vm266_vm9 = vcmp.lt.s32.totalorder %v4576_v61, 63 }
 0x200   :  { %v475_v40 = vpop.f32.mrf.mxu1 }
 0x201   :  { %v4724_v42 = vsel %vm6599_vm13, %v475_v40, -1e+30  ;;  %vm116_vm13 = vmand %vm79_vm15, %vm4621_vm8  ;;  %vm43_vm15 = vcmp.le.s32.totalorder %v4576_v61, %v32_v45  ;;  %vm6606_vm8 = vcmask 588800  }
 0x202   :  { %v512_v43 = vsel %vm6600_vm7, %v4724_v42, -inf  ;;  %vm153_vm11 = vmand %vm116_vm13, %vm4652_vm6 }
 0x203   :  { %513 = vmax.xlane.f32.xlu2 %v512_v43  ;;  %vm226_vm7 = vmand %vm189_vm10, %vm4745_vm0 }
 0x204   :  { %vm190_vm2 = vmand %vm153_vm11, %vm4683_vm3  ;;  %vm6612_vm3 = vcmp.lt.s32.totalorder %v4576_v61, 54 }
 0x205   :  { %vm80_vm13 = vmand %vm43_vm15, %vm4598_vm12 }
 0x206   :  { %vm4767_vm4 = vmand %vm226_vm7, %vm254_vm5 }
 0x207   :  { %vm4773_vm10 = vmand %vm190_vm2, %vm4745_vm0  ;;  %vm6616_vm2 = vnez %v6594_v25 }
 0x208   :  { %v478_v47 = vpop.f32.mrf.mxu1  ;;  %vm4783_vm12 = vmxor %vm6612_vm3, %vm6592_vm1 }
 0x209   :  { %v4758_v48 = vsel %vm4730_vm14, %v478_v47, -1e+30  ;;  %vm6611_vm14 = vnez %v6579_v8  ;;  %vm264_vm3 = vmand %vm4773_vm10, %vm4783_vm12 }
 0x20a   :  { %v515_v49 = vsel %vm6606_vm8, %v4758_v48, -inf  ;;  %vm274_vm8 = vcmp.ge.s32.totalorder %v31_v39, 63  ;;  %vm117_vm11 = vmand %vm80_vm13, %vm6611_vm14  ;;  %vm6615_vm14 = vcmask 588800  }
 0x20b   :  { %516 = vmax.xlane.f32.xlu2 %v515_v49  ;;  %vm283_vm7 = vmand %vm266_vm9, %vm274_vm8 }
 0x20c   :  { %vm154_vm15 = vmand %vm117_vm11, %vm4652_vm6 }
 0x20d   :  { %vm292_vm5 = vmxor %vm283_vm7, %vm6592_vm1 }
 0x20e   :  { %vm191_vm13 = vmand %vm154_vm15, %vm6616_vm2 }
 0x20f   :  { %vm4804_vm8 = vmand %vm264_vm3, %vm292_vm5 }
 0x210   :  { %v481_v53 = vpop.f32.mrf.mxu1  ;;  %vm228_vm6 = vmand %vm191_vm13, %vm4745_vm0 }
 0x211   :  { %v4791_v54 = vsel %vm4767_vm4, %v481_v53, -1e+30  ;;  %vm6619_vm10 = vmmov %vm6615_vm14 }
 0x212   :  { %v518_v55 = vsel %vm6615_vm14, %v4791_v54, -inf  ;;  %vm265_vm11 = vmand %vm228_vm6, %vm4783_vm12 }
 0x213   :  { %519 = vmax.xlane.f32.xlu0 %v518_v55  ;;  %vm293_vm7 = vmxor %vm266_vm9, %vm6592_vm1 }
 0x214   :  { %vm4821_vm15 = vmand %vm265_vm11, %vm293_vm7 }
 0x215   :  { %vm6622_vm0 = vmmov %vm6619_vm10 }
 0x216   :  { %vm6623_vm1 = vmmov %vm6622_vm0 }
 0x217   :  { %vm6624_vm9 = vmmov %vm6622_vm0 }
 0x218   :  { %v484_v57 = vpop.f32.mrf.mxu1  ;;  %vm6625_vm12 = vmmov %vm6622_vm0 }
 0x219   :  { %v4812_v58 = vsel %vm4804_vm8, %v484_v57, -1e+30  ;;  %vm6626_vm14 = vmmov %vm6622_vm0 }
 0x21a   :  { %v521_v60 = vsel %vm6619_vm10, %v4812_v58, -inf  ;;  %vm6627_vm3 = vmmov %vm6622_vm0 }
 0x21b   :  { %522 = vmax.xlane.f32.xlu2 %v521_v60  ;;  %vm6628_vm5 = vmmov %vm6622_vm0 }
 0x21c   :  { %vm6629_vm2 = vmmov %vm6622_vm0 }
 0x21d   :  { %vm6630_vm13 = vmmov %vm6622_vm0 }
 0x21e   :  { %vm6631_vm6 = vmmov %vm6622_vm0 }
 0x21f   :  { %vm6632_vm10 = vmmov %vm6622_vm0 }
 0x220   :  { %v487_v63 = vpop.f32.mrf.mxu1  ;;  %vm6633_vm11 = vmmov %vm6622_vm0 }
 0x221   :  { %v4827_v1 = vsel %vm4821_vm15, %v487_v63, -1e+30  ;;  %vm6634_vm7 = vmmov %vm6622_vm0 }
 0x222   :  { %v524_v2 = vsel %vm6622_vm0, %v4827_v1, -inf }
 0x223   :  { %525 = vmax.xlane.f32.xlu0 %v524_v2 }
 0x256   :  { %v502_v3 = vpop.xlane.xlu2 %501 }
 0x257   :  { %v527_v5 = vsub.f32 %v4587_v0, %v502_v3 }
 0x259   :  { %v536_v6 = vmul.f32 1.442695, %v527_v5 }
 0x25b   :  { %4143 = vpow2.f32 %v536_v6 }
 0x25e   :  { %v505_v8 = vpop.xlane.xlu0 %504 }
 0x25f   :  { %v528_v9 = vsub.f32 %v4616_v7, %v505_v8 }
 0x261   :  { %v4144_v10 = vpop.eup %4143  ;;  %v538_v12 = vmul.f32 1.442695, %v528_v9  ;;  %v697_v9 = vld [vmem:[%s6551_s1 + $0x20] sm:$0xff] }
 0x262   :  { %3860 = vmatmul.msk.f32.vlgmr.msra.gmra.mxu2 %vm6623_vm1, %v4144_v10  ;;  %v554_v13 = vsel %vm6624_vm9, %v4144_v10, 0.0  ;;  %vm6635_vm1 = vmmov %vm6622_vm0 }
 0x263   :  { %4145 = vpow2.f32 %v538_v12  ;;  %555 = vadd.xlane.f32.xlu1 %v554_v13  ;;  %vm6636_vm9 = vmmov %vm6622_vm0 }
 0x266   :  { %v508_v14 = vpop.xlane.xlu1 %507 }
 0x267   :  { %v529_v15 = vsub.f32 %v4659_v16, %v508_v14 }
 0x269   :  { %v4146_v17 = vpop.eup %4145  ;;  %v540_v20 = vmul.f32 1.442695, %v529_v15 }
 0x26a   :  { %3861 = vmatmul.msk.f32.gmra.mxu2 %vm6625_vm12, %v4146_v17  ;;  %v557_v0 = vsel %vm6626_vm14, %v4146_v17, 0.0  ;;  %vm6637_vm12 = vmmov %vm6622_vm0 }
 0x26b   :  { %4147 = vpow2.f32 %v540_v20  ;;  %558 = vadd.xlane.f32.xlu2 %v557_v0  ;;  %vm6638_vm14 = vmmov %vm6622_vm0 }
 0x26e   :  { %v511_v7 = vpop.xlane.xlu2 %510 }
 0x26f   :  { %v530_v22 = vsub.f32 %v4694_v36, %v511_v7 }
 0x271   :  { %v4148_v25 = vpop.eup %4147  ;;  %v542_v27 = vmul.f32 1.442695, %v530_v22 }
 0x272   :  { %3862 = vmatmul.msk.f32.gmra.mxu2 %vm6627_vm3, %v4148_v25  ;;  %v560_v38 = vsel %vm6628_vm5, %v4148_v25, 0.0  ;;  %vm6639_vm3 = vmmov %vm6622_vm0  ;;  %vm6640_vm5 = vcmask 130048  }
 0x273   :  { %4149 = vpow2.f32 %v542_v27  ;;  %561 = vadd.xlane.f32.xlu0 %v560_v38 }
 0x276   :  { %v514_v16 = vpop.xlane.xlu2 %513 }
 0x277   :  { %v531_v39 = vsub.f32 %v4724_v42, %v514_v16 }
 0x279   :  { %v4150_v40 = vpop.eup %4149  ;;  %v544_v41 = vmul.f32 1.442695, %v531_v39 }
 0x27a   :  { %3863 = vmatmul.msk.f32.gmra.mxu2 %vm6629_vm2, %v4150_v40  ;;  %v563_v43 = vsel %vm6630_vm13, %v4150_v40, 0.0  ;;  %vm6641_vm2 = vmmov %vm6640_vm5 }
 0x27b   :  { %4151 = vpow2.f32 %v544_v41  ;;  %564 = vadd.xlane.f32.xlu1 %v563_v43  ;;  %vm6642_vm13 = vmmov %vm6641_vm2 }
 0x27e   :  { %v517_v36 = vpop.xlane.xlu2 %516 }
 0x27f   :  { %v532_v45 = vsub.f32 %v4758_v48, %v517_v36 }
 0x281   :  { %v4152_v46 = vpop.eup %4151  ;;  %v546_v47 = vmul.f32 1.442695, %v532_v45 }
 0x282   :  { %3864 = vmatmul.msk.f32.gmra.mxu2 %vm6631_vm6, %v4152_v46  ;;  %v566_v49 = vsel %vm6632_vm10, %v4152_v46, 0.0  ;;  %vm6643_vm6 = vmmov %vm6641_vm2 }
 0x283   :  { %4153 = vpow2.f32 %v546_v47  ;;  %567 = vadd.xlane.f32.xlu2 %v566_v49  ;;  %vm6644_vm10 = vmmov %vm6641_vm2 }
 0x286   :  { %v520_v42 = vpop.xlane.xlu0 %519 }
 0x287   :  { %v533_v51 = vsub.f32 %v4791_v54, %v520_v42  ;;  %812 = vrot.lane.b32.xlu0 %v4512_v30, %s4409_s15 }
 0x289   :  { %v4154_v52 = vpop.eup %4153  ;;  %v548_v53 = vmul.f32 1.442695, %v533_v51 }
 0x28a   :  { %3865 = vmatmul.msk.f32.gmra.mxu2 %vm6633_vm11, %v4154_v52  ;;  %v569_v6 = vsel %vm6637_vm12, %v4154_v52, 0.0  ;;  %vm6645_vm11 = vmmov %vm6641_vm2 }
 0x28b   :  { %4155 = vpow2.f32 %v548_v53 }
 0x28e   :  { %v523_v48 = vpop.xlane.xlu2 %522 }
 0x28f   :  { %v534_v55 = vsub.f32 %v4812_v58, %v523_v48 }
 0x291   :  { %v4156_v57 = vpop.eup %4155  ;;  %v550_v60 = vmul.f32 1.442695, %v534_v55 }
 0x292   :  { %3866 = vmatmul.msk.f32.gmra.mxu2 %vm6634_vm7, %v4156_v57  ;;  %v572_v63 = vsel %vm6622_vm0, %v4156_v57, 0.0  ;;  %vm6646_vm7 = vmmov %vm6641_vm2 }
 0x293   :  { %4157 = vpow2.f32 %v550_v60  ;;  %573 = vadd.xlane.f32.xlu2 %v572_v63  ;;  %vm6647_vm0 = vmmov %vm6641_vm2 }
 0x294   :  { %814 = vrot.lane.b32.xlu1 %v4506_v29, %s4409_s15  ;;  %vm6650_vm12 = vmmov %vm6647_vm0 }
 0x296   :  { %v526_v54 = vpop.xlane.xlu0 %525 }
 0x297   :  { %v535_v2 = vsub.f32 %v4827_v1, %v526_v54  ;;  %v698_v1 = vld [vmem:[%s6551_s1 + $0x28] sm:$0xff] }
 0x298   :  { %740 = vmatpush.msra.mxu3 %v698_v1 }
 0x299   :  { %v4158_v3 = vpop.eup %4157  ;;  %v552_v5 = vmul.f32 1.442695, %v535_v2 }
 0x29a   :  { %3867 = vmatmul.msk.f32.gmra.mxu2 %vm6635_vm1, %v4158_v3  ;;  %v575_v8 = vsel %vm6638_vm14, %v4158_v3, 0.0  ;;  %741 = vmatpush.msra.mxu3 %v697_v9  ;;  %vm6648_vm1 = vmmov %vm6647_vm0 }
 0x29b   :  { %4159 = vpow2.f32 %v552_v5  ;;  %vm6651_vm14 = vmmov %vm6647_vm0 }
 0x2a1   :  { %v4160_v58 = vpop.eup %4159 }
 0x2a2   :  { %3868 = vmatmul.msk.f32.gmra.mxu2 %vm6636_vm9, %v4160_v58  ;;  %v578_v10 = vsel %vm6639_vm3, %v4160_v58, 0.0  ;;  %vm6649_vm9 = vmmov %vm6647_vm0 }
 0x2a3   :  { %vm6652_vm3 = vmmov %vm6647_vm0 }
 0x2ab   :  { %810 = vrot.lane.b32.xlu2 %v4494_v24, %s4409_s15 }
 0x2b1   :  { %570 = vadd.xlane.f32.xlu0 %v569_v6 }
 0x2be   :  { %576 = vadd.xlane.f32.xlu1 %v575_v8 }
 0x2c5   :  { %808 = vrot.lane.b32.xlu0 %v4500_v26, %s4409_s15 }
 0x2cd   :  { %806 = vrot.lane.b32.xlu0 %v4484_v19, %s4409_s15 }
 0x2d4   :  { %579 = vadd.xlane.f32.xlu2 %v578_v10 }
 0x2d5   :  { %804 = vrot.lane.b32.xlu0 %v4488_v21, %s4409_s15 }
 0x2d6   :  { %v556_v12 = vpop.xlane.xlu1 %555 }
 0x2d7   :  { %798 = vrot.lane.b32.xlu1 %v4492_v23, %s4409_s15  ;;  %4161 = vrcp.f32 %v556_v12 }
 0x2dd   :  { %802 = vrot.lane.b32.xlu0 %v4522_v32, %s4409_s15  ;;  %v4162_v14 = vpop.eup %4161 }
 0x2de   :  { %v559_v13 = vpop.xlane.xlu2 %558 }
 0x2df   :  { %790 = vrot.lane.b32.xlu1 %v4500_v26, %s4410_s20  ;;  %4163 = vrcp.f32 %v559_v13 }
 0x2e5   :  { %v661_v15 = vpop.f32.mrf.mxu2  ;;  %800 = vrot.lane.b32.xlu0 %v4504_v28, %s4409_s15  ;;  %v4164_v0 = vpop.eup %4163 }
 0x2e6   :  { %v688_v17 = vmul.f32 %v4162_v14, %v661_v15  ;;  %v562_v20 = vpop.xlane.xlu0 %561 }
 0x2e7   :  { %794 = vrot.lane.b32.xlu1 %v4512_v30, %s4410_s20  ;;  %4165 = vrcp.f32 %v562_v20 }
 0x2e8   :  { %3869 = vmatmul.msk.f32.vlgmr.msra.gmra.mxu3 %vm6640_vm5, %v688_v17  ;;  %vm6653_vm5 = vmmov %vm6647_vm0 }
 0x2ec   :  { %784 = vrot.lane.b32.xlu2 %v4522_v32, %s4410_s20 }
 0x2ed   :  { %v664_v7 = vpop.f32.mrf.mxu2  ;;  %780 = vrot.lane.b32.xlu0 %v4492_v23, %s4410_s20  ;;  %v4166_v22 = vpop.eup %4165 }
 0x2ee   :  { %v689_v26 = vmul.f32 %v4164_v0, %v664_v7  ;;  %v565_v30 = vpop.xlane.xlu1 %564 }
 0x2ef   :  { %4066 = vrot.lane.b32.xlu1 %v4516_v31, %s4411_s21  ;;  %4167 = vrcp.f32 %v565_v30 }
 0x2f0   :  { %3870 = vmatmul.msk.f32.gmra.mxu3 %vm6641_vm2, %v689_v26  ;;  %vm6654_vm2 = vmmov %vm6647_vm0 }
 0x2f4   :  { %796 = vrot.lane.b32.xlu2 %v4506_v29, %s4410_s20 }
 0x2f5   :  { %v667_v25 = vpop.f32.mrf.mxu2  ;;  %782 = vrot.lane.b32.xlu0 %v4504_v28, %s4410_s20  ;;  %v4168_v31 = vpop.eup %4167 }
 0x2f6   :  { %v690_v32 = vmul.f32 %v4166_v22, %v667_v25  ;;  %v568_v27 = vpop.xlane.xlu2 %567 }
 0x2f7   :  { %4076 = vrot.lane.b32.xlu1 %v4526_v33, %s4411_s21  ;;  %4169 = vrcp.f32 %v568_v27 }
 0x2f8   :  { %3871 = vmatmul.msk.f32.gmra.mxu3 %vm6642_vm13, %v690_v32  ;;  %vm6655_vm13 = vmmov %vm6647_vm0 }
 0x2fd   :  { %v670_v38 = vpop.f32.mrf.mxu2  ;;  %786 = vrot.lane.b32.xlu0 %v4488_v21, %s4410_s20  ;;  %v4170_v28 = vpop.eup %4169 }
 0x2fe   :  { %v691_v16 = vmul.f32 %v4168_v31, %v670_v38  ;;  %v813_v21 = vpop.permute.xlu0 %812 }
 0x2ff   :  { %995 = vrot.lane.b32.xlu1 %v4492_v23, %s4411_s21 }
 0x300   :  { %3872 = vmatmul.msk.f32.gmra.mxu3 %vm6643_vm6, %v691_v16  ;;  %vm6656_vm6 = vmmov %vm6647_vm0 }
 0x305   :  { %v673_v29 = vpop.f32.mrf.mxu2  ;;  %788 = vrot.lane.b32.xlu0 %v4484_v19, %s4410_s20 }
 0x306   :  { %v692_v33 = vmul.f32 %v4170_v28, %v673_v29  ;;  %v815_v39 = vpop.permute.xlu1 %814  ;;  %v574_v40 = vpop.xlane.xlu2 %573 }
 0x307   :  { %3878 = vmatpush.xpose.msk.msrb.mxu3 %vm6644_vm10, %v815_v39  ;;  %vm6657_vm10 = vmmov %vm6647_vm0 }
 0x308   :  { %3873 = vmatmul.msk.f32.gmra.mxu3 %vm6645_vm11, %v692_v33  ;;  %vm6658_vm11 = vmmov %vm6647_vm0 }
 0x30b   :  { %3879 = vmatpush.xpose.msk.msrb.mxu3 %vm6646_vm7, %v813_v21  ;;  %vm6659_vm7 = vmmov %vm6647_vm0 }
 0x30d   :  { %792 = vrot.lane.b32.xlu0 %v4494_v24, %s4410_s20  ;;  %v676_v41 = vpop.f32.mrf.mxu2 }
 0x30e   :  { %v811_v23 = vpop.permute.xlu2 %810 }
 0x30f   :  { %3880 = vmatpush.xpose.msk.msrb.mxu3 %vm6647_vm0, %v811_v23 }
 0x315   :  { %4061 = vrot.lane.b32.xlu0 %v4534_v34, %s4411_s21  ;;  %v679_v45 = vpop.f32.mrf.mxu2 }
 0x31d   :  { %4071 = vrot.lane.b32.xlu0 %v4542_v35, %s4411_s21  ;;  %v682_v35 = vpop.f32.mrf.mxu2 }
 0x324   :  { %v571_v19 = vpop.xlane.xlu0 %570 }
 0x325   :  { %4171 = vrcp.f32 %v571_v19  ;;  %v685_v55 = vpop.f32.mrf.mxu2 }
 0x326   :  { %4173 = vrcp.f32 %v574_v40 }
 0x32b   :  { %v4172_v43 = vpop.eup %4171 }
 0x32c   :  { %v693_v36 = vmul.f32 %v4172_v43, %v676_v41  ;;  %v4174_v24 = vpop.eup %4173 }
 0x32d   :  { %v694_v47 = vmul.f32 %v4174_v24, %v679_v45 }
 0x32e   :  { %3874 = vmatmul.msk.f32.gmra.mxu3 %vm6648_vm1, %v693_v36  ;;  %vm6660_vm1 = vmmov %vm6647_vm0 }
 0x331   :  { %v577_v46 = vpop.xlane.xlu1 %576 }
 0x332   :  { %4175 = vrcp.f32 %v577_v46 }
 0x336   :  { %3875 = vmatmul.msk.f32.gmra.mxu3 %vm6649_vm9, %v694_v47  ;;  %vm6661_vm9 = vmmov %vm6647_vm0 }
 0x337   :  { %v809_v49 = vpop.permute.xlu0 %808 }
 0x338   :  { %3881 = vmatpush.xpose.msk.msrb.mxu3 %vm6650_vm12, %v809_v49  ;;  %v4176_v34 = vpop.eup %4175  ;;  %vm6662_vm12 = vmmov %vm6647_vm0 }
 0x339   :  { %v695_v42 = vmul.f32 %v4176_v34, %v682_v35 }
 0x33e   :  { %3876 = vmatmul.msk.f32.gmra.mxu3 %vm6651_vm14, %v695_v42  ;;  %vm6663_vm14 = vmmov %vm6647_vm0 }
 0x33f   :  { %v807_v51 = vpop.permute.xlu0 %806 }
 0x340   :  { %3882 = vmatpush.xpose.msk.msrb.mxu3 %vm6652_vm3, %v807_v51  ;;  %vm6664_vm3 = vmmov %vm6647_vm0 }
 0x347   :  { %v580_v52 = vpop.xlane.xlu2 %579  ;;  %v805_v53 = vpop.permute.xlu0 %804 }
 0x348   :  { %4177 = vrcp.f32 %v580_v52  ;;  %3883 = vmatpush.xpose.msk.msrb.mxu3 %vm6653_vm5, %v805_v53  ;;  %vm6665_vm5 = vmmov %vm6647_vm0 }
 0x349   :  { %v799_v54 = vpop.permute.xlu1 %798 }
 0x34e   :  { %v4178_v48 = vpop.eup %4177 }
 0x34f   :  { %v803_v57 = vpop.permute.xlu0 %802  ;;  %v696_v60 = vmul.f32 %v4178_v48, %v685_v55  ;;  %v785_v5 = vpop.permute.xlu2 %784 }
 0x350   :  { %3884 = vmatpush.xpose.msk.msrb.mxu3 %vm6654_vm2, %v803_v57  ;;  %vm6666_vm2 = vcmp.le.s32.totalorder %v4576_v61, %v4573_v59 }
 0x351   :  { %3877 = vmatmul.msk.f32.gmra.mxu3 %vm6655_vm13, %v696_v60  ;;  %v791_v6 = vpop.permute.xlu1 %790  ;;  %vm6667_vm13 = vcmask 588800  }
 0x357   :  { %v801_v63 = vpop.permute.xlu0 %800  ;;  %v797_v31 = vpop.permute.xlu2 %796 }
 0x358   :  { %3885 = vmatpush.xpose.msk.msrb.mxu3 %vm6656_vm6, %v801_v63  ;;  %vm6668_vm6 = vnez %v6577_v4 }
 0x359   :  { %v795_v1 = vpop.permute.xlu1 %794 }
 0x35c   :  { %3886 = vmatpush.xpose.msk.msrb.mxu3 %vm6657_vm10, %v799_v54  ;;  %vm6669_vm10 = vmmov %vm6667_vm13 }
 0x35f   :  { %v781_v2 = vpop.permute.xlu0 %780 }
 0x360   :  { %3887 = vmatmul.msk.f32.vlgmr.msrb.gmra.mxu3 %vm6658_vm11, %v781_v2  ;;  %vm6670_vm11 = vnez %v6583_v11 }
 0x361   :  { %v4067_v10 = vpop.permute.xlu1 %4066 }
 0x362   :  { %v4068_v15 = vunpack.i.l.bf16 %v4067_v10  ;;  %v4069_v20 = vunpack.i.h.bf16 %v4067_v10 }
 0x367   :  { %v783_v3 = vpop.permute.xlu0 %782 }
 0x368   :  { %3888 = vmatmul.msk.f32.gmra.mxu3 %vm6659_vm7, %v783_v3  ;;  %vm6671_vm7 = vmmov %vm6669_vm10 }
 0x369   :  { %v4077_v17 = vpop.permute.xlu1 %4076 }
 0x36a   :  { %v4078_v22 = vunpack.i.l.bf16 %v4077_v17  ;;  %v4079_v25 = vunpack.i.h.bf16 %v4077_v17 }
 0x36b   :  { %v4934_v0 = vpop.f32.mrf.mxu3 }
 0x36f   :  { %v787_v58 = vpop.permute.xlu0 %786 }
 0x370   :  { %3889 = vmatmul.msk.f32.gmra.mxu3 %vm6647_vm0, %v785_v5  ;;  %vm6672_vm0 = vnez %v6589_v18 }
 0x371   :  { %v996_v32 = vpop.permute.xlu1 %995 }
 0x373   :  { %v4938_v27 = vpop.f32.mrf.mxu3 }
 0x377   :  { %v789_v8 = vpop.permute.xlu0 %788 }
 0x378   :  { %3890 = vmatmul.msk.f32.gmra.mxu3 %vm6660_vm1, %v787_v58  ;;  %vm6673_vm1 = vmmov %vm6671_vm7 }
 0x37b   :  { %v4941_v38 = vpop.f32.mrf.mxu3 }
 0x37f   :  { %v793_v9 = vpop.permute.xlu0 %792 }
 0x380   :  { %3891 = vmatmul.msk.f32.gmra.mxu3 %vm6661_vm9, %v789_v8  ;;  %vm6674_vm9 = vnez %v6596_v37 }
 0x383   :  { %v4943_v16 = vpop.f32.mrf.mxu3 }
 0x387   :  { %v4062_v12 = vpop.permute.xlu0 %4061 }
 0x388   :  { %3892 = vmatmul.msk.f32.gmra.mxu3 %vm6662_vm12, %v791_v6  ;;  %v4063_v13 = vunpack.i.l.bf16 %v4062_v12  ;;  %v4064_v14 = vunpack.i.h.bf16 %v4062_v12  ;;  %vm6675_vm12 = vmmov %vm6673_vm1 }
 0x38a   :  { %1056 = vmatpush.msrb.mxu0 %v4063_v13  ;;  %4022 = vmatpush.msrb.mxu2 %v4063_v13 }
 0x38b   :  { %v4945_v28 = vpop.f32.mrf.mxu3 }
 0x38c   :  { %1057 = vmatpush.msrb.mxu0 %v4064_v14  ;;  %4023 = vmatpush.msrb.mxu2 %v4064_v14 }
 0x38e   :  { %1058 = vmatpush.msrb.mxu0 %v4068_v15  ;;  %4024 = vmatpush.msrb.mxu2 %v4068_v15 }
 0x38f   :  { %v4072_v7 = vpop.permute.xlu0 %4071 }
 0x390   :  { %3893 = vmatmul.msk.f32.gmra.mxu3 %vm6663_vm14, %v793_v9  ;;  %1059 = vmatpush.msrb.mxu0 %v4069_v20  ;;  %v4073_v26 = vunpack.i.l.bf16 %v4072_v7  ;;  %v4074_v30 = vunpack.i.h.bf16 %v4072_v7  ;;  %vm6676_vm14 = vnez %v6602_v44 }
 0x391   :  { %4025 = vmatpush.msrb.mxu2 %v4069_v20 }
 0x392   :  { %1060 = vmatpush.msrb.mxu0 %v4073_v26 }
 0x393   :  { %4026 = vmatpush.msrb.mxu2 %v4073_v26 }
 0x394   :  { %1061 = vmatpush.msrb.mxu0 %v4074_v30 }
 0x395   :  { %4027 = vmatpush.msrb.mxu2 %v4074_v30 }
 0x396   :  { %1062 = vmatpush.msrb.mxu0 %v4078_v22 }
 0x397   :  { %4028 = vmatpush.msrb.mxu2 %v4078_v22 }
 0x398   :  { %3894 = vmatmul.msk.f32.gmra.mxu3 %vm6664_vm3, %v795_v1  ;;  %1063 = vmatpush.msrb.mxu0 %v4079_v25  ;;  %vm6677_vm3 = vmmov %vm6673_vm1 }
 0x399   :  { %4029 = vmatpush.msrb.mxu2 %v4079_v25 }
 0x39a   :  { %1064 = vmatpush.msrb.mxu0 %v996_v32 }
 0x39b   :  { %4030 = vmatpush.msrb.mxu2 %v996_v32 }
 0x3a0   :  { %3895 = vmatmul.msk.f32.gmra.mxu3 %vm6665_vm5, %v797_v31  ;;  %vm6678_vm5 = vmmov %vm6673_vm1 }
 0x3b1   :  { %v4947_v29 = vpop.f32.mrf.mxu3 }
 0x3b9   :  { %v4949_v33 = vpop.f32.mrf.mxu3 }
 0x3c1   :  { %v4951_v39 = vpop.f32.mrf.mxu3 }
 0x3d4   :  { %v4953_v40 = vpop.f32.mrf.mxu3 }
 0x3e3   :  { %v869_v21 = vpop.f32.mrf.mxu3 }
 0x3e4   :  { %v896_v23 = vsel %vm6666_vm2, %v869_v21, -1e+30  ;;  %vm6679_vm2 = vmmov %vm6673_vm1 }
 0x3e5   :  { %v905_v19 = vsel %vm6667_vm13, %v896_v23, -inf  ;;  %vm6680_vm13 = vmmov %vm6673_vm1 }
 0x3e6   :  { %906 = vmax.xlane.f32.xlu2 %v905_v19 }
 0x3eb   :  { %v872_v41 = vpop.f32.mrf.mxu3 }
 0x3ec   :  { %v897_v43 = vsel %vm6668_vm6, %v872_v41, -1e+30 }
 0x3ed   :  { %v908_v36 = vsel %vm6669_vm10, %v897_v43, -inf  ;;  %vm6681_vm10 = vmmov %vm6673_vm1 }
 0x3ee   :  { %909 = vmax.xlane.f32.xlu0 %v908_v36 }
 0x3f3   :  { %v875_v45 = vpop.f32.mrf.mxu3 }
 0x3f4   :  { %v898_v46 = vsel %vm6670_vm11, %v875_v45, -1e+30 }
 0x3f5   :  { %v911_v24 = vsel %vm6671_vm7, %v898_v46, -inf  ;;  %vm6682_vm7 = vmmov %vm6673_vm1 }
 0x3f6   :  { %912 = vmax.xlane.f32.xlu1 %v911_v24 }
 0x3fb   :  { %v878_v47 = vpop.f32.mrf.mxu3 }
 0x3fc   :  { %v899_v49 = vsel %vm6672_vm0, %v878_v47, -1e+30 }
 0x3fd   :  { %v914_v34 = vsel %vm6673_vm1, %v899_v49, -inf }
 0x3fe   :  { %915 = vmax.xlane.f32.xlu2 %v914_v34 }
 0x403   :  { %v881_v35 = vpop.f32.mrf.mxu3 }
 0x404   :  { %v900_v42 = vsel %vm6674_vm9, %v881_v35, -1e+30 }
 0x405   :  { %v917_v51 = vsel %vm6675_vm12, %v900_v42, -inf  ;;  %vm6683_vm12 = vmmov %vm6673_vm1 }
 0x406   :  { %918 = vmax.xlane.f32.xlu2 %v917_v51 }
 0x40b   :  { %v884_v52 = vpop.f32.mrf.mxu3 }
 0x40c   :  { %v901_v53 = vsel %vm6676_vm14, %v884_v52, -1e+30 }
 0x40d   :  { %v920_v48 = vsel %vm6677_vm3, %v901_v53, -inf  ;;  %vm6684_vm3 = vmmov %vm6673_vm1 }
 0x40e   :  { %921 = vmax.xlane.f32.xlu0 %v920_v48 }
 0x413   :  { %v887_v55 = vpop.f32.mrf.mxu3 }
 0x414   :  { %v902_v57 = vsel %vm4767_vm4, %v887_v55, -1e+30 }
 0x415   :  { %v923_v60 = vsel %vm6678_vm5, %v902_v57, -inf  ;;  %vm6685_vm5 = vmmov %vm6673_vm1 }
 0x416   :  { %924 = vmax.xlane.f32.xlu2 %v923_v60 }
 0x41b   :  { %v890_v63 = vpop.f32.mrf.mxu3 }
 0x41c   :  { %v4979_v54 = vsel %vm4804_vm8, %v890_v63, -1e+30 }
 0x41d   :  { %v926_v2 = vsel %vm6679_vm2, %v4979_v54, -inf  ;;  %vm6686_vm2 = vmmov %vm6673_vm1 }
 0x41e   :  { %927 = vmax.xlane.f32.xlu0 %v926_v2 }
 0x423   :  { %v893_v3 = vpop.f32.mrf.mxu3 }
 0x424   :  { %v4985_v5 = vsel %vm4821_vm15, %v893_v3, -1e+30 }
 0x425   :  { %v929_v58 = vsel %vm6680_vm13, %v4985_v5, -inf  ;;  %vm6687_vm13 = vmmov %vm6673_vm1 }
 0x426   :  { %930 = vmax.xlane.f32.xlu1 %v929_v58 }
 0x459   :  { %v907_v6 = vpop.xlane.xlu2 %906 }
 0x45a   :  { %v932_v8 = vsub.f32 %v896_v23, %v907_v6 }
 0x45c   :  { %v941_v1 = vmul.f32 1.442695, %v932_v8 }
 0x45e   :  { %4179 = vpow2.f32 %v941_v1  ;;  %v1102_v1 = vld [vmem:[%s6551_s1 + $0x30] sm:$0xff] }
 0x461   :  { %v910_v9 = vpop.xlane.xlu0 %909 }
 0x462   :  { %v933_v10 = vsub.f32 %v897_v43, %v910_v9 }
 0x464   :  { %v4180_v12 = vpop.eup %4179  ;;  %v943_v13 = vmul.f32 1.442695, %v933_v10 }
 0x465   :  { %3896 = vmatmul.msk.f32.vlgmr.msrb.gmra.mxu0 %vm6681_vm10, %v4180_v12  ;;  %v959_v14 = vsel %vm6682_vm7, %v4180_v12, 0.0  ;;  %vm6688_vm10 = vmmov %vm6673_vm1 }
 0x466   :  { %4181 = vpow2.f32 %v943_v13  ;;  %960 = vadd.xlane.f32.xlu2 %v959_v14  ;;  %vm6689_vm7 = vmmov %vm6673_vm1 }
 0x469   :  { %v913_v15 = vpop.xlane.xlu1 %912 }
 0x46a   :  { %v934_v17 = vsub.f32 %v898_v46, %v913_v15 }
 0x46c   :  { %v4182_v20 = vpop.eup %4181  ;;  %v945_v7 = vmul.f32 1.442695, %v934_v17 }
 0x46d   :  { %3897 = vmatmul.msk.f32.gmra.mxu0 %vm6673_vm1, %v4182_v20  ;;  %v962_v26 = vsel %vm6683_vm12, %v4182_v20, 0.0  ;;  %vm6690_vm12 = vmmov %vm6673_vm1 }
 0x46e   :  { %4183 = vpow2.f32 %v945_v7  ;;  %963 = vadd.xlane.f32.xlu0 %v962_v26 }
 0x471   :  { %v916_v30 = vpop.xlane.xlu2 %915 }
 0x472   :  { %v935_v22 = vsub.f32 %v899_v49, %v916_v30  ;;  %v1103_v49 = vld [vmem:[%s6551_s1 + $0x38] sm:$0xff] }
 0x473   :  { %1145 = vmatpush.msrb.mxu1 %v1103_v49  ;;  %4031 = vmatpush.msra.mxu2 %v1103_v49 }
 0x474   :  { %v4184_v25 = vpop.eup %4183  ;;  %v947_v32 = vmul.f32 1.442695, %v935_v22 }
 0x475   :  { %3898 = vmatmul.msk.f32.gmra.mxu0 %vm6684_vm3, %v4184_v25  ;;  %v965_v31 = vsel %vm6685_vm5, %v4184_v25, 0.0  ;;  %vm6691_vm3 = vmmov %vm6673_vm1  ;;  %1146 = vmatpush.msrb.mxu1 %v1102_v1 }
 0x476   :  { %4185 = vpow2.f32 %v947_v32  ;;  %966 = vadd.xlane.f32.xlu1 %v965_v31  ;;  %vm6692_vm5 = vmmov %vm6673_vm1  ;;  %4032 = vmatpush.msra.mxu2 %v1102_v1 }
 0x479   :  { %v919_v21 = vpop.xlane.xlu2 %918 }
 0x47a   :  { %v936_v23 = vsub.f32 %v900_v42, %v919_v21 }
 0x47c   :  { %v4186_v19 = vpop.eup %4185  ;;  %v949_v41 = vmul.f32 1.442695, %v936_v23 }
 0x47d   :  { %3899 = vmatmul.msk.f32.gmra.mxu0 %vm6686_vm2, %v4186_v19  ;;  %v968_v43 = vsel %vm6687_vm13, %v4186_v19, 0.0  ;;  %vm6693_vm2 = vmmov %vm6673_vm1 }
 0x47e   :  { %4187 = vpow2.f32 %v949_v41  ;;  %969 = vadd.xlane.f32.xlu2 %v968_v43  ;;  %vm6694_vm13 = vmmov %vm6673_vm1 }
 0x481   :  { %v922_v36 = vpop.xlane.xlu0 %921 }
 0x482   :  { %v937_v45 = vsub.f32 %v901_v53, %v922_v36 }
 0x484   :  { %v4188_v46 = vpop.eup %4187  ;;  %v951_v24 = vmul.f32 1.442695, %v937_v45 }
 0x485   :  { %3900 = vmatmul.msk.f32.gmra.mxu0 %vm6688_vm10, %v4188_v46  ;;  %v971_v47 = vsel %vm6689_vm7, %v4188_v46, 0.0  ;;  %vm6695_vm10 = vmmov %vm6673_vm1 }
 0x486   :  { %4189 = vpow2.f32 %v951_v24  ;;  %972 = vadd.xlane.f32.xlu0 %v971_v47  ;;  %vm6696_vm7 = vmmov %vm6673_vm1 }
 0x489   :  { %v925_v34 = vpop.xlane.xlu2 %924 }
 0x48a   :  { %v938_v35 = vsub.f32 %v902_v57, %v925_v34 }
 0x48c   :  { %v4190_v42 = vpop.eup %4189  ;;  %v953_v51 = vmul.f32 1.442695, %v938_v35 }
 0x48d   :  { %3901 = vmatmul.msk.f32.gmra.mxu0 %vm6673_vm1, %v4190_v42  ;;  %v974_v52 = vsel %vm6690_vm12, %v4190_v42, 0.0  ;;  %vm6697_vm1 = vcmask 130048  }
 0x48e   :  { %4191 = vpow2.f32 %v953_v51  ;;  %975 = vadd.xlane.f32.xlu1 %v974_v52  ;;  %vm6698_vm12 = vmmov %vm6697_vm1 }
 0x491   :  { %v928_v53 = vpop.xlane.xlu0 %927 }
 0x492   :  { %v939_v48 = vsub.f32 %v4979_v54, %v928_v53 }
 0x494   :  { %v4192_v55 = vpop.eup %4191  ;;  %v955_v60 = vmul.f32 1.442695, %v939_v48 }
 0x495   :  { %3902 = vmatmul.msk.f32.gmra.mxu0 %vm6691_vm3, %v4192_v55  ;;  %v977_v63 = vsel %vm6692_vm5, %v4192_v55, 0.0  ;;  %vm6699_vm3 = vmmov %vm6697_vm1 }
 0x496   :  { %4193 = vpow2.f32 %v955_v60  ;;  %978 = vadd.xlane.f32.xlu2 %v977_v63  ;;  %vm6700_vm5 = vmmov %vm6697_vm1  ;;  %v5027_v63 = vld [vmem:[%s6553_s2 + $0x1] ss:$0 sm:$0xff] }
 0x499   :  { %v931_v57 = vpop.xlane.xlu1 %930 }
 0x49a   :  { %v940_v2 = vsub.f32 %v4985_v5, %v931_v57  ;;  %v771_v57 = vadd.f32 %v5027_v63, %v4934_v0 }
 0x49c   :  { %v4194_v3 = vpop.eup %4193  ;;  %v957_v58 = vmul.f32 1.442695, %v940_v2 }
 0x49d   :  { %3903 = vmatmul.msk.f32.gmra.mxu0 %vm6693_vm2, %v4194_v3  ;;  %v980_v6 = vsel %vm6694_vm13, %v4194_v3, 0.0  ;;  %vm6701_vm2 = vmmov %vm6697_vm1 }
 0x49e   :  { %4195 = vpow2.f32 %v957_v58  ;;  %981 = vadd.xlane.f32.xlu0 %v980_v6  ;;  %vm6702_vm13 = vmmov %vm6697_vm1  ;;  %v4397_v58 = vld [vmem:[%s6552_s0] sm:$0xff] }
 0x4a4   :  { %v4196_v54 = vpop.eup %4195 }
 0x4a5   :  { %3904 = vmatmul.msk.f32.vlgmr.msrb.gmra.mxu2 %vm6695_vm10, %v4196_v54  ;;  %v983_v8 = vsel %vm6696_vm7, %v4196_v54, 0.0  ;;  %vm6703_vm10 = vmmov %vm6697_vm1 }
 0x4a6   :  { %984 = vadd.xlane.f32.xlu1 %v983_v8  ;;  %vm6704_vm7 = vmmov %vm6697_vm1  ;;  %v772_v8 = vadd.f32 %v5027_v63, %v4938_v27 }
 0x4d9   :  { %v961_v5 = vpop.xlane.xlu2 %960 }
 0x4da   :  { %4197 = vrcp.f32 %v961_v5 }
 0x4e0   :  { %v4198_v10 = vpop.eup %4197 }
 0x4e1   :  { %v964_v9 = vpop.xlane.xlu0 %963 }
 0x4e2   :  { %v1066_v12 = vpop.f32.mrf.mxu0  ;;  %4199 = vrcp.f32 %v964_v9  ;;  %v4398_v9 = vld [vmem:[%s6552_s0 + $0x8] sm:$0xff] }
 0x4e3   :  { %v1093_v13 = vmul.f32 %v4198_v10, %v1066_v12  ;;  %v773_v12 = vadd.f32 %v5027_v63, %v4941_v38  ;;  %v4400_v38 = vld [vmem:[%s6552_s0 + $0x18] sm:$0xff] }
 0x4e5   :  { %3905 = vmatmul.msk.f32.vlgmr.msrb.gmra.mxu1 %vm6697_vm1, %v1093_v13 }
 0x4e8   :  { %v4200_v15 = vpop.eup %4199 }
 0x4e9   :  { %v967_v14 = vpop.xlane.xlu1 %966 }
 0x4ea   :  { %v1069_v17 = vpop.f32.mrf.mxu0  ;;  %4201 = vrcp.f32 %v967_v14 }
 0x4eb   :  { %v1094_v20 = vmul.f32 %v4200_v15, %v1069_v17  ;;  %v4399_v15 = vld [vmem:[%s6552_s0 + $0x10] sm:$0xff] }
 0x4ed   :  { %3906 = vmatmul.msk.f32.gmra.mxu1 %vm6698_vm12, %v1094_v20  ;;  %vm6705_vm12 = vcmask 261120   ;;  %v774_v20 = vadd.f32 %v5027_v63, %v4943_v16  ;;  %v4401_v16 = vld [vmem:[%s6552_s0 + $0x20] sm:$0xff] }
 0x4f0   :  { %v4202_v26 = vpop.eup %4201 }
 0x4f1   :  { %v970_v7 = vpop.xlane.xlu2 %969 }
 0x4f2   :  { %v1072_v30 = vpop.f32.mrf.mxu0  ;;  %4203 = vrcp.f32 %v970_v7 }
 0x4f3   :  { %v1095_v22 = vmul.f32 %v4202_v26, %v1072_v30 }
 0x4f5   :  { %3907 = vmatmul.msk.f32.gmra.mxu1 %vm6699_vm3, %v1095_v22  ;;  %vm6706_vm3 = vmmov %vm6705_vm12 }
 0x4f8   :  { %v4204_v32 = vpop.eup %4203 }
 0x4f9   :  { %v973_v25 = vpop.xlane.xlu0 %972 }
 0x4fa   :  { %v1075_v31 = vpop.f32.mrf.mxu0  ;;  %4205 = vrcp.f32 %v973_v25  ;;  %v775_v25 = vadd.f32 %v5027_v63, %v4945_v28  ;;  %v4402_v28 = vld [vmem:[%s6552_s0 + $0x28] sm:$0xff] }
 0x4fb   :  { %v1096_v21 = vmul.f32 %v4204_v32, %v1075_v31 }
 0x4fd   :  { %3908 = vmatmul.msk.f32.gmra.mxu1 %vm6700_vm5, %v1096_v21  ;;  %vm6707_vm5 = vmmov %vm6706_vm3 }
 0x500   :  { %v4206_v19 = vpop.eup %4205 }
 0x501   :  { %v976_v23 = vpop.xlane.xlu1 %975 }
 0x502   :  { %v1078_v41 = vpop.f32.mrf.mxu0  ;;  %4207 = vrcp.f32 %v976_v23 }
 0x503   :  { %v1097_v43 = vmul.f32 %v4206_v19, %v1078_v41  ;;  %v776_v19 = vadd.f32 %v5027_v63, %v4947_v29  ;;  %v4403_v29 = vld [vmem:[%s6552_s0 + $0x30] sm:$0xff] }
 0x505   :  { %3909 = vmatmul.msk.f32.vlgmr.msra.gmra.mxu2 %vm6701_vm2, %v1097_v43  ;;  %vm6708_vm2 = vmmov %vm6706_vm3 }
 0x508   :  { %v4208_v45 = vpop.eup %4207 }
 0x509   :  { %v979_v36 = vpop.xlane.xlu2 %978 }
 0x50a   :  { %v1081_v46 = vpop.f32.mrf.mxu0  ;;  %4209 = vrcp.f32 %v979_v36 }
 0x50b   :  { %v1098_v24 = vmul.f32 %v4208_v45, %v1081_v46  ;;  %v777_v46 = vadd.f32 %v5027_v63, %v4949_v33 }
 0x50d   :  { %3910 = vmatmul.msk.f32.gmra.mxu2 %vm6702_vm13, %v1098_v24  ;;  %vm6709_vm13 = vmmov %vm6708_vm2 }
 0x510   :  { %v4210_v49 = vpop.eup %4209 }
 0x511   :  { %v982_v47 = vpop.xlane.xlu0 %981 }
 0x512   :  { %v1084_v34 = vpop.f32.mrf.mxu0  ;;  %4211 = vrcp.f32 %v982_v47 }
 0x513   :  { %v1099_v35 = vmul.f32 %v4210_v49, %v1084_v34 }
 0x515   :  { %3911 = vmatmul.msk.f32.gmra.mxu2 %vm6703_vm10, %v1099_v35  ;;  %vm6710_vm10 = vmmov %vm6708_vm2  ;;  %v4412_v35 = vmov 32.0  }
 0x518   :  { %v4212_v42 = vpop.eup %4211 }
 0x519   :  { %v985_v53 = vpop.xlane.xlu1 %984 }
 0x51a   :  { %v1087_v51 = vpop.f32.mrf.mxu0  ;;  %4213 = vrcp.f32 %v985_v53 }
 0x51b   :  { %v1100_v52 = vmul.f32 %v4212_v42, %v1087_v51  ;;  %4215 = vrcp.f32 %v4412_v35 }
 0x51d   :  { %3912 = vmatmul.msk.f32.gmra.mxu2 %vm6704_vm7, %v1100_v52  ;;  %vm6711_vm7 = vmmov %vm6708_vm2 }
 0x520   :  { %v4214_v48 = vpop.eup %4213 }
 0x521   :  { %v4216_v42 = vpop.eup %4215 }
 0x522   :  { %v1223_v51 = vmul.f32 32.0, %v4216_v42 }
 0x524   :  { %v1224_v52 = vsub.f32 1.0, %v1223_v51 }
 0x526   :  { %v1225_v53 = vmul.f32 %v4216_v42, %v1224_v52 }
 0x528   :  { %v1090_v55 = vpop.f32.mrf.mxu2 }
 0x529   :  { %v1101_v60 = vmul.f32 %v4214_v48, %v1090_v55  ;;  %v1226_v48 = vadd.f32 %v4216_v42, %v1225_v53 }
 0x52b   :  { %3913 = vmatmul.msk.f32.gmra.mxu2 %vm6697_vm1, %v1101_v60  ;;  %vm1227_vm1 = vweird.f32 %v4216_v42 }
 0x52c   :  { %v5086_v33 = vsel %vm1227_vm1, %v4216_v42, %v1226_v48  ;;  %vm6718_vm1 = vmmov %vm6708_vm2 }
 0x562   :  { %v1148_v2 = vpop.f32.mrf.mxu1 }
 0x563   :  { %v1175_v3 = vadd.f32 %v1148_v2, %v771_v57 }
 0x565   :  { %v1184_v6 = vadd.f32 %v4397_v58, %v1175_v3  ;;  %v778_v3 = vadd.f32 %v5027_v63, %v4951_v39  ;;  %v779_v39 = vadd.f32 %v5027_v63, %v4953_v40  ;;  %v4405_v40 = vld [vmem:[%s6552_s0 + $0x40] sm:$0xff] }
 0x567   :  { %v1195_v54 = vsel %vm6705_vm12, %v1184_v6, 0.0  ;;  %vm6712_vm12 = vmmov %vm6708_vm2 }
 0x568   :  { %1196 = vadd.xlane.f32.xlu2 %v1195_v54 }
 0x56a   :  { %v1151_v1 = vpop.f32.mrf.mxu1 }
 0x56b   :  { %v1176_v5 = vadd.f32 %v1151_v1, %v772_v8 }
 0x56d   :  { %v1185_v0 = vadd.f32 %v4398_v9, %v1176_v5 }
 0x56f   :  { %v1198_v10 = vsel %vm6706_vm3, %v1185_v0, 0.0  ;;  %vm6713_vm3 = vmmov %vm6708_vm2 }
 0x570   :  { %1199 = vadd.xlane.f32.xlu0 %v1198_v10 }
 0x572   :  { %v1154_v13 = vpop.f32.mrf.mxu1 }
 0x573   :  { %v1177_v14 = vadd.f32 %v1154_v13, %v773_v12 }
 0x575   :  { %v5046_v27 = vadd.f32 %v4399_v15, %v1177_v14 }
 0x577   :  { %v1201_v17 = vsel %vm6707_vm5, %v5046_v27, 0.0  ;;  %vm6714_vm5 = vmmov %vm6708_vm2 }
 0x578   :  { %1202 = vadd.xlane.f32.xlu1 %v1201_v17 }
 0x57a   :  { %v1157_v7 = vpop.f32.mrf.mxu1 }
 0x57b   :  { %v1178_v26 = vadd.f32 %v1157_v7, %v774_v20 }
 0x57d   :  { %v5055_v30 = vadd.f32 %v4400_v38, %v1178_v26 }
 0x57f   :  { %v1204_v22 = vsel %vm6708_vm2, %v5055_v30, 0.0 }
 0x580   :  { %1205 = vadd.xlane.f32.xlu2 %v1204_v22 }
 0x588   :  { %v1160_v32 = vpop.f32.mrf.mxu2 }
 0x589   :  { %v1179_v31 = vadd.f32 %v1160_v32, %v775_v25 }
 0x58b   :  { %v5064_v21 = vadd.f32 %v4401_v16, %v1179_v31 }
 0x58d   :  { %v1207_v23 = vsel %vm6709_vm13, %v5064_v21, 0.0  ;;  %vm6715_vm13 = vmmov %vm6708_vm2 }
 0x58e   :  { %1208 = vadd.xlane.f32.xlu0 %v1207_v23 }
 0x590   :  { %v1163_v41 = vpop.f32.mrf.mxu2 }
 0x591   :  { %v1180_v43 = vadd.f32 %v1163_v41, %v776_v19 }
 0x593   :  { %v5073_v36 = vadd.f32 %v4402_v28, %v1180_v43 }
 0x595   :  { %v1210_v45 = vsel %vm6710_vm10, %v5073_v36, 0.0  ;;  %vm6716_vm10 = vmmov %vm6708_vm2 }
 0x596   :  { %1211 = vadd.xlane.f32.xlu1 %v1210_v45 }
 0x598   :  { %v1166_v24 = vpop.f32.mrf.mxu2 }
 0x599   :  { %v1181_v47 = vadd.f32 %v1166_v24, %v777_v46 }
 0x59b   :  { %v5082_v49 = vadd.f32 %v4403_v29, %v1181_v47 }
 0x59d   :  { %v1213_v34 = vsel %vm6711_vm7, %v5082_v49, 0.0  ;;  %vm6717_vm7 = vmmov %vm6708_vm2 }
 0x59e   :  { %1214 = vadd.xlane.f32.xlu0 %v1213_v34 }
 0x5a0   :  { %v1169_v2 = vpop.f32.mrf.mxu2 }
 0x5a1   :  { %v1182_v54 = vadd.f32 %v1169_v2, %v778_v3 }
 0x5ae   :  { %v1172_v12 = vpop.f32.mrf.mxu2 }
 0x5af   :  { %v1183_v14 = vadd.f32 %v1172_v12, %v779_v39 }
 0x5b1   :  { %v1192_v63 = vadd.f32 %v4405_v40, %v1183_v14 }
 0x5b3   :  { %v1219_v22 = vsel %vm6715_vm13, %v1192_v63, 0.0 }
 0x5db   :  { %v1197_v55 = vpop.xlane.xlu2 %1196 }
 0x5dc   :  { %v1229_v60 = vmul.f32 %v5086_v33, %v1197_v55 }
 0x5de   :  { %v5089_v57 = vsub.f32 %v1184_v6, %v1229_v60  ;;  %v4404_v6 = vld [vmem:[%s6552_s0 + $0x38] sm:$0xff] }
 0x5df   :  { %v1191_v10 = vadd.f32 %v4404_v6, %v1182_v54 }
 0x5e0   :  { %v1247_v58 = vmul.f32 %v5089_v57, %v5089_v57 }
 0x5e1   :  { %v1216_v17 = vsel %vm6714_vm5, %v1191_v10, 0.0 }
 0x5e2   :  { %v1256_v8 = vsel %vm6712_vm12, %v1247_v58, 0.0  ;;  %vm6719_vm12 = vmmov %vm6718_vm1 }
 0x5e3   :  { %v1200_v1 = vpop.xlane.xlu0 %1199  ;;  %1257 = vadd.xlane.f32.xlu2 %v1256_v8 }
 0x5e4   :  { %v1230_v5 = vmul.f32 %v5086_v33, %v1200_v1 }
 0x5e6   :  { %v5097_v9 = vsub.f32 %v1185_v0, %v1230_v5 }
 0x5e8   :  { %v1248_v13 = vmul.f32 %v5097_v9, %v5097_v9 }
 0x5ea   :  { %v1259_v15 = vsel %vm6713_vm3, %v1248_v13, 0.0  ;;  %vm6720_vm3 = vmmov %vm6718_vm1 }
 0x5eb   :  { %v1203_v20 = vpop.xlane.xlu1 %1202  ;;  %1260 = vadd.xlane.f32.xlu1 %v1259_v15  ;;  %1217 = vadd.xlane.f32.xlu2 %v1216_v17 }
 0x5ec   :  { %v1231_v0 = vmul.f32 %v5086_v33, %v1203_v20 }
 0x5ee   :  { %v5110_v7 = vsub.f32 %v5046_v27, %v1231_v0 }
 0x5f0   :  { %v1249_v26 = vmul.f32 %v5110_v7, %v5110_v7 }
 0x5f2   :  { %v1262_v38 = vsel %vm6708_vm2, %v1249_v26, 0.0  ;;  %v5164_v26 = vld [vmem:[%s6553_s2 + $0x3] ss:$0 sm:$0xff] }
 0x5f3   :  { %v1206_v25 = vpop.xlane.xlu2 %1205  ;;  %1263 = vadd.xlane.f32.xlu0 %v1262_v38  ;;  %1220 = vadd.xlane.f32.xlu1 %v1219_v22 }
 0x5f4   :  { %v1232_v32 = vmul.f32 %v5086_v33, %v1206_v25 }
 0x5f6   :  { %v5121_v27 = vsub.f32 %v5055_v30, %v1232_v32  ;;  %v5171_v32 = vld [vmem:[%s6553_s2 + $0x4] ss:$0 sm:$0xff] }
 0x5f8   :  { %v1250_v31 = vmul.f32 %v5121_v27, %v5121_v27 }
 0x5fa   :  { %v1265_v16 = vsel %vm6716_vm10, %v1250_v31, 0.0  ;;  %vm6721_vm10 = vmmov %vm6718_vm1 }
 0x5fb   :  { %1266 = vadd.xlane.f32.xlu2 %v1265_v16 }
 0x601   :  { %v1209_v23 = vpop.xlane.xlu0 %1208 }
 0x602   :  { %v1233_v19 = vmul.f32 %v5086_v33, %v1209_v23 }
 0x604   :  { %v5128_v41 = vsub.f32 %v5064_v21, %v1233_v19 }
 0x606   :  { %v1251_v43 = vmul.f32 %v5128_v41, %v5128_v41 }
 0x608   :  { %v1268_v28 = vsel %vm6717_vm7, %v1251_v43, 0.0  ;;  %v5178_v43 = vld [vmem:[%s6553_s2 + $0x2] ss:$0 sm:$0xff] }
 0x609   :  { %v1212_v45 = vpop.xlane.xlu1 %1211  ;;  %1269 = vadd.xlane.f32.xlu0 %v1268_v28 }
 0x60a   :  { %v1234_v30 = vmul.f32 %v5086_v33, %v1212_v45 }
 0x60c   :  { %v5135_v46 = vsub.f32 %v5073_v36, %v1234_v30 }
 0x60e   :  { %v1252_v24 = vmul.f32 %v5135_v46, %v5135_v46 }
 0x610   :  { %v1271_v47 = vsel %vm6718_vm1, %v1252_v24, 0.0 }
 0x611   :  { %v1215_v29 = vpop.xlane.xlu0 %1214  ;;  %1272 = vadd.xlane.f32.xlu1 %v1271_v47 }
 0x612   :  { %v1235_v21 = vmul.f32 %v5086_v33, %v1215_v29 }
 0x614   :  { %v5142_v34 = vsub.f32 %v5082_v49, %v1235_v21 }
 0x616   :  { %v1253_v35 = vmul.f32 %v5142_v34, %v5142_v34 }
 0x618   :  { %v1274_v42 = vsel %vm6719_vm12, %v1253_v35, 0.0 }
 0x619   :  { %1275 = vadd.xlane.f32.xlu2 %v1274_v42 }
 0x656   :  { %v1258_v36 = vpop.xlane.xlu2 %1257 }
 0x657   :  { %v1283_v51 = vmul.f32 %v1258_v36, %v5086_v33 }
 0x659   :  { %v1292_v52 = vadd.f32 1e-05, %v1283_v51 }
 0x65b   :  { %4217 = vrsqrt.f32 %v1292_v52  ;;  %vm1307_vm2 = vweird.f32 %v1292_v52 }
 0x65e   :  { %v1261_v53 = vpop.xlane.xlu1 %1260  ;;  %v1218_v48 = vpop.xlane.xlu2 %1217 }
 0x65f   :  { %v1284_v55 = vmul.f32 %v1261_v53, %v5086_v33  ;;  %v1236_v60 = vmul.f32 %v5086_v33, %v1218_v48 }
 0x661   :  { %v4218_v2 = vpop.eup %4217  ;;  %v1293_v49 = vadd.f32 1e-05, %v1284_v55  ;;  %v5150_v3 = vsub.f32 %v1191_v10, %v1236_v60 }
 0x662   :  { %v1302_v58 = vmul.f32 %v4218_v2, %v1292_v52  ;;  %vm1308_vm5 = vweird.f32 %v4218_v2 }
 0x663   :  { %4219 = vrsqrt.f32 %v1293_v49  ;;  %v1254_v54 = vmul.f32 %v5150_v3, %v5150_v3  ;;  %vm1309_vm13 = vmor %vm1307_vm2, %vm1308_vm5  ;;  %vm1317_vm1 = vweird.f32 %v1293_v49 }
 0x664   :  { %v1303_v8 = vmul.f32 %v4218_v2, %v1302_v58 }
 0x665   :  { %v1277_v1 = vsel %vm6720_vm3, %v1254_v54, 0.0 }
 0x666   :  { %v1304_v5 = vmul.f32 0.5, %v1303_v8  ;;  %v1264_v6 = vpop.xlane.xlu0 %1263  ;;  %1278 = vadd.xlane.f32.xlu0 %v1277_v1  ;;  %v1221_v12 = vpop.xlane.xlu1 %1220 }
 0x667   :  { %v1285_v39 = vmul.f32 %v1264_v6, %v5086_v33  ;;  %v1237_v13 = vmul.f32 %v5086_v33, %v1221_v12 }
 0x668   :  { %v1305_v14 = vsub.f32 1.5, %v1304_v5 }
 0x669   :  { %v4220_v10 = vpop.eup %4219  ;;  %v1294_v15 = vadd.f32 1e-05, %v1285_v39  ;;  %v5157_v17 = vsub.f32 %v1192_v63, %v1237_v13 }
 0x66a   :  { %v1306_v20 = vmul.f32 %v4218_v2, %v1305_v14  ;;  %v1312_v0 = vmul.f32 %v4220_v10, %v1293_v49  ;;  %vm1318_vm7 = vweird.f32 %v4220_v10 }
 0x66b   :  { %4221 = vrsqrt.f32 %v1294_v15  ;;  %v1255_v40 = vmul.f32 %v5157_v17, %v5157_v17  ;;  %vm1319_vm12 = vmor %vm1317_vm1, %vm1318_vm7  ;;  %vm1327_vm2 = vweird.f32 %v1294_v15 }
 0x66c   :  { %v1313_v38 = vmul.f32 %v4220_v10, %v1312_v0  ;;  %v1310_v22 = vsel %vm1309_vm13, %v4218_v2, %v1306_v20 }
 0x66d   :  { %v1280_v25 = vsel %vm6721_vm10, %v1255_v40, 0.0  ;;  %v1391_v63 = vmul.f32 %v1310_v22, %v5089_v57  ;;  %vm6722_vm10 = vmmov %vm6720_vm3 }
 0x66e   :  { %v1314_v31 = vmul.f32 0.5, %v1313_v38  ;;  %v1267_v16 = vpop.xlane.xlu2 %1266  ;;  %1281 = vadd.xlane.f32.xlu1 %v1280_v25 }
 0x66f   :  { %v1286_v23 = vmul.f32 %v1267_v16, %v5086_v33  ;;  %v1401_v19 = vmul.f32 %v5164_v26, %v1391_v63 }
 0x670   :  { %v1315_v28 = vsub.f32 1.5, %v1314_v31 }
 0x671   :  { %v4222_v57 = vpop.eup %4221  ;;  %v1295_v45 = vadd.f32 1e-05, %v1286_v23  ;;  %v1411_v30 = vadd.f32 %v5171_v32, %v1401_v19 }
 0x672   :  { %v1316_v24 = vmul.f32 %v4220_v10, %v1315_v28  ;;  %v1322_v47 = vmul.f32 %v4222_v57, %v1294_v15  ;;  %vm1328_vm5 = vweird.f32 %v4222_v57 }
 0x673   :  { %4223 = vrsqrt.f32 %v1295_v45  ;;  %v5182_v29 = vadd.f32 %v5178_v43, %v1411_v30  ;;  %vm1329_vm13 = vmor %vm1327_vm2, %vm1328_vm5  ;;  %vm1337_vm1 = vweird.f32 %v1295_v45 }
 0x674   :  { %v1323_v21 = vmul.f32 %v4222_v57, %v1322_v47  ;;  %v1320_v35 = vsel %vm1319_vm12, %v4220_v10, %v1316_v24  ;;  %vm6723_vm5 = vmmov %vm6720_vm3 }
 0x675   :  { %v1433_v42 = vsel %vm6720_vm3, %v5182_v29, 0.0  ;;  %v1392_v36 = vmul.f32 %v1320_v35, %v5097_v9 }
 0x676   :  { %v1324_v51 = vmul.f32 0.5, %v1323_v21  ;;  %1434 = vadd.xlane.f32.xlu2 %v1433_v42 }
 0x677   :  { %v1402_v52 = vmul.f32 %v5164_v26, %v1392_v36 }
 0x678   :  { %v1325_v53 = vsub.f32 1.5, %v1324_v51 }
 0x679   :  { %v4224_v48 = vpop.eup %4223  ;;  %v1412_v55 = vadd.f32 %v5171_v32, %v1402_v52 }
 0x67a   :  { %v1326_v60 = vmul.f32 %v4222_v57, %v1325_v53  ;;  %v1332_v2 = vmul.f32 %v4224_v48, %v1295_v45  ;;  %vm1338_vm7 = vweird.f32 %v4224_v48 }
 0x67b   :  { %v5190_v49 = vadd.f32 %v5178_v43, %v1412_v55  ;;  %vm1339_vm12 = vmor %vm1337_vm1, %vm1338_vm7 }
 0x67c   :  { %v1333_v58 = vmul.f32 %v4224_v48, %v1332_v2  ;;  %v1270_v54 = vpop.xlane.xlu0 %1269  ;;  %v1330_v8 = vsel %vm1329_vm13, %v4222_v57, %v1326_v60 }
 0x67d   :  { %v1287_v9 = vmul.f32 %v1270_v54, %v5086_v33  ;;  %v1436_v1 = vsel %vm6722_vm10, %v5190_v49, 0.0  ;;  %v1393_v5 = vmul.f32 %v1330_v8, %v5110_v7 }
 0x67e   :  { %v1334_v6 = vmul.f32 0.5, %v1333_v58  ;;  %1437 = vadd.xlane.f32.xlu0 %v1436_v1 }
 0x67f   :  { %v1296_v12 = vadd.f32 1e-05, %v1287_v9  ;;  %v1403_v39 = vmul.f32 %v5164_v26, %v1393_v5 }
 0x680   :  { %v1335_v13 = vsub.f32 1.5, %v1334_v6 }
 0x681   :  { %4225 = vrsqrt.f32 %v1296_v12  ;;  %v1413_v14 = vadd.f32 %v5171_v32, %v1403_v39  ;;  %vm1347_vm13 = vweird.f32 %v1296_v12 }
 0x682   :  { %v1336_v10 = vmul.f32 %v4224_v48, %v1335_v13 }
 0x683   :  { %v5199_v15 = vadd.f32 %v5178_v43, %v1413_v14 }
 0x684   :  { %v1273_v20 = vpop.xlane.xlu1 %1272  ;;  %v1340_v0 = vsel %vm1339_vm12, %v4224_v48, %v1336_v10 }
 0x685   :  { %v1288_v7 = vmul.f32 %v1273_v20, %v5086_v33  ;;  %v1439_v40 = vsel %vm6720_vm3, %v5199_v15, 0.0  ;;  %v1394_v38 = vmul.f32 %v1340_v0, %v5121_v27 }
 0x686   :  { %1440 = vadd.xlane.f32.xlu1 %v1439_v40 }
 0x687   :  { %v4226_v22 = vpop.eup %4225  ;;  %v1297_v25 = vadd.f32 1e-05, %v1288_v7  ;;  %v1404_v63 = vmul.f32 %v5164_v26, %v1394_v38 }
 0x688   :  { %v1342_v31 = vmul.f32 %v4226_v22, %v1296_v12  ;;  %vm1348_vm2 = vweird.f32 %v4226_v22 }
 0x689   :  { %4227 = vrsqrt.f32 %v1297_v25  ;;  %v1414_v16 = vadd.f32 %v5171_v32, %v1404_v63  ;;  %vm1349_vm10 = vmor %vm1347_vm13, %vm1348_vm2  ;;  %vm1357_vm1 = vweird.f32 %v1297_v25 }
 0x68a   :  { %v1343_v23 = vmul.f32 %v4226_v22, %v1342_v31 }
 0x68b   :  { %v5208_v19 = vadd.f32 %v5178_v43, %v1414_v16 }
 0x68c   :  { %v1344_v28 = vmul.f32 0.5, %v1343_v23  ;;  %v1276_v57 = vpop.xlane.xlu2 %1275 }
 0x68d   :  { %v1289_v45 = vmul.f32 %v1276_v57, %v5086_v33  ;;  %v1442_v27 = vsel %vm6723_vm5, %v5208_v19, 0.0 }
 0x68e   :  { %v1345_v30 = vsub.f32 1.5, %v1344_v28  ;;  %1443 = vadd.xlane.f32.xlu2 %v1442_v27 }
 0x68f   :  { %v4228_v24 = vpop.eup %4227  ;;  %v1298_v47 = vadd.f32 1e-05, %v1289_v45 }
 0x690   :  { %v1346_v21 = vmul.f32 %v4226_v22, %v1345_v30  ;;  %v1352_v35 = vmul.f32 %v4228_v24, %v1297_v25  ;;  %vm1358_vm7 = vweird.f32 %v4228_v24 }
 0x691   :  { %4229 = vrsqrt.f32 %v1298_v47  ;;  %vm1359_vm12 = vmor %vm1357_vm1, %vm1358_vm7  ;;  %vm1367_vm2 = vweird.f32 %v1298_v47 }
 0x692   :  { %v1353_v42 = vmul.f32 %v4228_v24, %v1352_v35  ;;  %v1350_v36 = vsel %vm1349_vm10, %v4226_v22, %v1346_v21  ;;  %vm6724_vm10 = vmmov %vm6720_vm3 }
 0x693   :  { %v1395_v51 = vmul.f32 %v1350_v36, %v5128_v41  ;;  %vm6725_vm7 = vmmov %vm6720_vm3 }
 0x694   :  { %v1354_v52 = vmul.f32 0.5, %v1353_v42 }
 0x695   :  { %v1405_v53 = vmul.f32 %v5164_v26, %v1395_v51 }
 0x696   :  { %v1355_v48 = vsub.f32 1.5, %v1354_v52 }
 0x697   :  { %v4230_v55 = vpop.eup %4229  ;;  %v1415_v60 = vadd.f32 %v5171_v32, %v1405_v53 }
 0x698   :  { %v1356_v2 = vmul.f32 %v4228_v24, %v1355_v48  ;;  %v1362_v58 = vmul.f32 %v4230_v55, %v1298_v47  ;;  %vm1368_vm5 = vweird.f32 %v4230_v55 }
 0x699   :  { %v5217_v54 = vadd.f32 %v5178_v43, %v1415_v60  ;;  %vm1369_vm13 = vmor %vm1367_vm2, %vm1368_vm5 }
 0x69a   :  { %v1363_v8 = vmul.f32 %v4230_v55, %v1362_v58  ;;  %v1360_v9 = vsel %vm1359_vm12, %v4228_v24, %v1356_v2  ;;  %vm6726_vm5 = vmmov %vm6725_vm7 }
 0x69b   :  { %v1445_v41 = vsel %vm6720_vm3, %v5217_v54, 0.0  ;;  %v1396_v1 = vmul.f32 %v1360_v9, %v5135_v46 }
 0x69c   :  { %v1364_v5 = vmul.f32 0.5, %v1363_v8  ;;  %1446 = vadd.xlane.f32.xlu0 %v1445_v41 }
 0x69d   :  { %v1406_v6 = vmul.f32 %v5164_v26, %v1396_v1 }
 0x69e   :  { %v1365_v12 = vsub.f32 1.5, %v1364_v5 }
 0x69f   :  { %v1416_v39 = vadd.f32 %v5171_v32, %v1406_v6 }
 0x6a0   :  { %v1366_v13 = vmul.f32 %v4230_v55, %v1365_v12 }
 0x6a1   :  { %v5225_v14 = vadd.f32 %v5178_v43, %v1416_v39 }
 0x6a2   :  { %v1370_v10 = vsel %vm1369_vm13, %v4230_v55, %v1366_v13 }
 0x6a3   :  { %v1448_v20 = vsel %vm6724_vm10, %v5225_v14, 0.0  ;;  %v1397_v46 = vmul.f32 %v1370_v10, %v5142_v34 }
 0x6a4   :  { %1449 = vadd.xlane.f32.xlu1 %v1448_v20 }
 0x6a5   :  { %v1407_v0 = vmul.f32 %v5164_v26, %v1397_v46 }
 0x6a7   :  { %v1417_v7 = vadd.f32 %v5171_v32, %v1407_v0 }
 0x6a9   :  { %v5233_v40 = vadd.f32 %v5178_v43, %v1417_v7 }
 0x6ab   :  { %v1451_v38 = vsel %vm6725_vm7, %v5233_v40, 0.0  ;;  %vm6727_vm7 = vmmov %vm6726_vm5 }
 0x6ac   :  { %1452 = vadd.xlane.f32.xlu0 %v1451_v38 }
 0x6d9   :  { %v1279_v22 = vpop.xlane.xlu0 %1278 }
 0x6da   :  { %v1290_v25 = vmul.f32 %v1279_v22, %v5086_v33 }
 0x6dc   :  { %v1299_v63 = vadd.f32 1e-05, %v1290_v25 }
 0x6de   :  { %4231 = vrsqrt.f32 %v1299_v63  ;;  %vm1377_vm12 = vweird.f32 %v1299_v63 }
 0x6e1   :  { %v1282_v31 = vpop.xlane.xlu1 %1281 }
 0x6e2   :  { %v1291_v34 = vmul.f32 %v1282_v31, %v5086_v33 }
 0x6e4   :  { %v4232_v16 = vpop.eup %4231  ;;  %v1300_v23 = vadd.f32 1e-05, %v1291_v34 }
 0x6e5   :  { %v1372_v28 = vmul.f32 %v4232_v16, %v1299_v63  ;;  %vm1378_vm1 = vweird.f32 %v4232_v16 }
 0x6e6   :  { %4233 = vrsqrt.f32 %v1300_v23  ;;  %vm1379_vm3 = vmor %vm1377_vm12, %vm1378_vm1  ;;  %vm1387_vm13 = vweird.f32 %v1300_v23 }
 0x6e7   :  { %v1373_v57 = vmul.f32 %v4232_v16, %v1372_v28  ;;  %vm6728_vm1 = vmmov %vm6726_vm5 }
 0x6e8   :  { %vm6729_vm12 = vmmov %vm6728_vm1 }
 0x6e9   :  { %v1374_v45 = vmul.f32 0.5, %v1373_v57  ;;  %v1435_v27 = vpop.xlane.xlu2 %1434 }
 0x6ea   :  { %v1460_v30 = vmul.f32 %v1435_v27, %v5086_v33 }
 0x6eb   :  { %v1375_v24 = vsub.f32 1.5, %v1374_v45 }
 0x6ec   :  { %v4234_v47 = vpop.eup %4233  ;;  %v5241_v21 = vsub.f32 %v5182_v29, %v1460_v30 }
 0x6ed   :  { %v1376_v35 = vmul.f32 %v4232_v16, %v1375_v24  ;;  %v1382_v42 = vmul.f32 %v4234_v47, %v1300_v23  ;;  %vm1388_vm2 = vweird.f32 %v4234_v47 }
 0x6ee   :  { %v1478_v36 = vmul.f32 %v5241_v21, %v5241_v21  ;;  %vm1389_vm10 = vmor %vm1387_vm13, %vm1388_vm2 }
 0x6ef   :  { %v1383_v51 = vmul.f32 %v4234_v47, %v1382_v42  ;;  %v1380_v52 = vsel %vm1379_vm3, %v4232_v16, %v1376_v35  ;;  %vm6730_vm3 = vmmov %vm6728_vm1  ;;  %v1653_v35 = vld [vmem:[%s6551_s1 + $0x50] sm:$0xff]  ;;  %v1651_v42 = vld [vmem:[%s6551_s1 + $0x40] sm:$0xff] }
 0x6f0   :  { %v1487_v53 = vsel %vm6726_vm5, %v1478_v36, 0.0  ;;  %v1398_v48 = vmul.f32 %v1380_v52, %v5150_v3  ;;  %vm6731_vm5 = vmmov %vm6728_vm1 }
 0x6f1   :  { %v1384_v55 = vmul.f32 0.5, %v1383_v51  ;;  %v1438_v60 = vpop.xlane.xlu0 %1437  ;;  %1488 = vadd.xlane.f32.xlu2 %v1487_v53  ;;  %vm6732_vm2 = vmmov %vm6728_vm1 }
 0x6f2   :  { %v1461_v2 = vmul.f32 %v1438_v60, %v5086_v33  ;;  %v1408_v29 = vmul.f32 %v5164_v26, %v1398_v48  ;;  %vm6733_vm13 = vmmov %vm6728_vm1 }
 0x6f3   :  { %v1385_v58 = vsub.f32 1.5, %v1384_v55 }
 0x6f4   :  { %v5250_v8 = vsub.f32 %v5190_v49, %v1461_v2  ;;  %v1418_v9 = vadd.f32 %v5171_v32, %v1408_v29 }
 0x6f5   :  { %v1386_v41 = vmul.f32 %v4234_v47, %v1385_v58 }
 0x6f6   :  { %v1429_v1 = vadd.f32 %v5178_v43, %v1418_v9  ;;  %v1479_v3 = vmul.f32 %v5250_v8, %v5250_v8 }
 0x6f7   :  { %v1390_v5 = vsel %vm1389_vm10, %v4234_v47, %v1386_v41  ;;  %vm6734_vm10 = vmmov %vm6728_vm1 }
 0x6f8   :  { %v1454_v6 = vsel %vm6727_vm7, %v1429_v1, 0.0  ;;  %v1490_v12 = vsel %vm6728_vm1, %v1479_v3, 0.0  ;;  %v1399_v39 = vmul.f32 %v1390_v5, %v5157_v17  ;;  %vm6735_vm7 = vmmov %vm6728_vm1 }
 0x6f9   :  { %1455 = vadd.xlane.f32.xlu2 %v1454_v6  ;;  %1491 = vadd.xlane.f32.xlu1 %v1490_v12  ;;  %v1441_v49 = vpop.xlane.xlu1 %1440 }
 0x6fa   :  { %v1462_v13 = vmul.f32 %v1441_v49, %v5086_v33  ;;  %v1409_v10 = vmul.f32 %v5164_v26, %v1399_v39 }
 0x6fc   :  { %v5262_v20 = vsub.f32 %v5199_v15, %v1462_v13  ;;  %v1419_v46 = vadd.f32 %v5171_v32, %v1409_v10 }
 0x6fe   :  { %v5266_v0 = vadd.f32 %v5178_v43, %v1419_v46  ;;  %v1480_v7 = vmul.f32 %v5262_v20, %v5262_v20 }
 0x700   :  { %v1457_v17 = vsel %vm6729_vm12, %v5266_v0, 0.0  ;;  %v1493_v38 = vsel %vm6730_vm3, %v1480_v7, 0.0 }
 0x701   :  { %v1444_v22 = vpop.xlane.xlu2 %1443  ;;  %1458 = vadd.xlane.f32.xlu1 %v1457_v17  ;;  %1494 = vadd.xlane.f32.xlu0 %v1493_v38 }
 0x702   :  { %v1463_v26 = vmul.f32 %v1444_v22, %v5086_v33  ;;  %v5329_v22 = vld [vmem:[%s6553_s2 + $0x5] ss:$0 sm:$0xff] }
 0x704   :  { %v5275_v15 = vsub.f32 %v5208_v19, %v1463_v26 }
 0x706   :  { %v1481_v32 = vmul.f32 %v5275_v15, %v5275_v15 }
 0x708   :  { %v1496_v43 = vsel %vm6731_vm5, %v1481_v32, 0.0  ;;  %vm6736_vm5 = vmmov %vm6732_vm2 }
 0x709   :  { %1497 = vadd.xlane.f32.xlu2 %v1496_v43 }
 0x70f   :  { %v1447_v25 = vpop.xlane.xlu0 %1446 }
 0x710   :  { %v1464_v63 = vmul.f32 %v1447_v25, %v5086_v33 }
 0x712   :  { %v5282_v31 = vsub.f32 %v5217_v54, %v1464_v63  ;;  %v5338_v63 = vld [vmem:[%s6553_s2 + $0x6] ss:$0 sm:$0xff] }
 0x714   :  { %v1482_v34 = vmul.f32 %v5282_v31, %v5282_v31 }
 0x716   :  { %v1499_v16 = vsel %vm6732_vm2, %v1482_v34, 0.0 }
 0x717   :  { %1500 = vadd.xlane.f32.xlu0 %v1499_v16  ;;  %v1450_v19 = vpop.xlane.xlu1 %1449 }
 0x718   :  { %v1465_v23 = vmul.f32 %v1450_v19, %v5086_v33 }
 0x71a   :  { %v5289_v28 = vsub.f32 %v5225_v14, %v1465_v23  ;;  %v1654_v14 = vld [vmem:[%s6551_s1 + $0x58] sm:$0xff] }
 0x71b   :  { %1696 = vmatpush.msra.mxu1 %v1654_v14 }
 0x71c   :  { %v1483_v57 = vmul.f32 %v5289_v28, %v5289_v28 }
 0x71d   :  { %1697 = vmatpush.msra.mxu1 %v1653_v35 }
 0x71e   :  { %v1502_v45 = vsel %vm6733_vm13, %v1483_v57, 0.0 }
 0x71f   :  { %v1453_v27 = vpop.xlane.xlu0 %1452  ;;  %1503 = vadd.xlane.f32.xlu1 %v1502_v45 }
 0x720   :  { %v1466_v54 = vmul.f32 %v1453_v27, %v5086_v33 }
 0x722   :  { %v5296_v30 = vsub.f32 %v5233_v40, %v1466_v54  ;;  %v1652_v40 = vld [vmem:[%s6551_s1 + $0x48] sm:$0xff] }
 0x723   :  { %1698 = vmatpush.msra.mxu1 %v1652_v40 }
 0x724   :  { %v1484_v24 = vmul.f32 %v5296_v30, %v5296_v30 }
 0x725   :  { %1699 = vmatpush.msra.mxu1 %v1651_v42 }
 0x726   :  { %v1505_v47 = vsel %vm6734_vm10, %v1484_v24, 0.0 }
 0x727   :  { %1506 = vadd.xlane.f32.xlu2 %v1505_v47 }
 0x764   :  { %v1489_v36 = vpop.xlane.xlu2 %1488 }
 0x765   :  { %v1514_v51 = vmul.f32 %v1489_v36, %v5086_v33 }
 0x767   :  { %v1523_v52 = vadd.f32 1e-05, %v1514_v51 }
 0x769   :  { %4235 = vrsqrt.f32 %v1523_v52  ;;  %vm1538_vm12 = vweird.f32 %v1523_v52 }
 0x76c   :  { %v1456_v53 = vpop.xlane.xlu2 %1455  ;;  %v1492_v48 = vpop.xlane.xlu1 %1491 }
 0x76d   :  { %v1467_v55 = vmul.f32 %v1456_v53, %v5086_v33  ;;  %v1515_v60 = vmul.f32 %v1492_v48, %v5086_v33 }
 0x76f   :  { %v4236_v2 = vpop.eup %4235  ;;  %v5316_v29 = vsub.f32 %v1429_v1, %v1467_v55  ;;  %v1524_v58 = vadd.f32 1e-05, %v1515_v60 }
 0x770   :  { %v1533_v9 = vmul.f32 %v4236_v2, %v1523_v52  ;;  %vm1539_vm1 = vweird.f32 %v4236_v2 }
 0x771   :  { %4237 = vrsqrt.f32 %v1524_v58  ;;  %v1485_v41 = vmul.f32 %v5316_v29, %v5316_v29  ;;  %vm1540_vm3 = vmor %vm1538_vm12, %vm1539_vm1  ;;  %vm1548_vm13 = vweird.f32 %v1524_v58 }
 0x772   :  { %v1534_v3 = vmul.f32 %v4236_v2, %v1533_v9 }
 0x773   :  { %v1508_v5 = vsel %vm6735_vm7, %v1485_v41, 0.0  ;;  %vm6737_vm7 = vmmov %vm6736_vm5 }
 0x774   :  { %v1535_v6 = vmul.f32 0.5, %v1534_v3  ;;  %1509 = vadd.xlane.f32.xlu0 %v1508_v5  ;;  %v1495_v12 = vpop.xlane.xlu0 %1494  ;;  %v1459_v39 = vpop.xlane.xlu1 %1458 }
 0x775   :  { %v1516_v49 = vmul.f32 %v1495_v12, %v5086_v33  ;;  %v1468_v13 = vmul.f32 %v1459_v39, %v5086_v33 }
 0x776   :  { %v1536_v10 = vsub.f32 1.5, %v1535_v6 }
 0x777   :  { %v4238_v1 = vpop.eup %4237  ;;  %v1525_v46 = vadd.f32 1e-05, %v1516_v49  ;;  %v5324_v7 = vsub.f32 %v5266_v0, %v1468_v13 }
 0x778   :  { %v1537_v17 = vmul.f32 %v4236_v2, %v1536_v10  ;;  %v1543_v38 = vmul.f32 %v4238_v1, %v1524_v58  ;;  %vm1549_vm2 = vweird.f32 %v4238_v1 }
 0x779   :  { %4239 = vrsqrt.f32 %v1525_v46  ;;  %v1486_v26 = vmul.f32 %v5324_v7, %v5324_v7  ;;  %vm1550_vm10 = vmor %vm1548_vm13, %vm1549_vm2  ;;  %vm1558_vm12 = vweird.f32 %v1525_v46 }
 0x77a   :  { %v1541_v32 = vsel %vm1540_vm3, %v4236_v2, %v1537_v17  ;;  %v1544_v43 = vmul.f32 %v4238_v1, %v1543_v38 }
 0x77b   :  { %v1622_v25 = vmul.f32 %v1541_v32, %v5241_v21  ;;  %v1511_v0 = vsel %vm6736_vm5, %v1486_v26, 0.0  ;;  %v1752_v26 = vld [vmem:[%s6551_s1 + $0xd8] sm:$0xff]  ;;  %v1751_v32 = vld [vmem:[%s6551_s1 + $0xd0] sm:$0xff] }
 0x77c   :  { %v1545_v34 = vmul.f32 0.5, %v1544_v43  ;;  %v1498_v16 = vpop.xlane.xlu2 %1497  ;;  %1512 = vadd.xlane.f32.xlu1 %v1511_v0  ;;  %1755 = vmatpush.msra.mxu3 %v1752_v26  ;;  %v1738_v26 = vld [vmem:[%s6551_s1 + $0x68] sm:$0xff] }
 0x77d   :  { %v1632_v19 = vmul.f32 %v5329_v22, %v1622_v25  ;;  %v1517_v23 = vmul.f32 %v1498_v16, %v5086_v33  ;;  %v1749_v16 = vld [vmem:[%s6551_s1 + $0xc0] sm:$0xff] }
 0x77e   :  { %v1546_v57 = vsub.f32 1.5, %v1545_v34  ;;  %1756 = vmatpush.msra.mxu3 %v1751_v32  ;;  %v1737_v32 = vld [vmem:[%s6551_s1 + $0x60] sm:$0xff] }
 0x77f   :  { %v4240_v45 = vpop.eup %4239  ;;  %v1526_v27 = vadd.f32 1e-05, %v1517_v23  ;;  %v5343_v21 = vadd.f32 %v5338_v63, %v1632_v19 }
 0x780   :  { %v1547_v54 = vmul.f32 %v4238_v1, %v1546_v57  ;;  %v1553_v24 = vmul.f32 %v4240_v45, %v1525_v46  ;;  %vm1559_vm1 = vweird.f32 %v4240_v45 }
 0x781   :  { %4241 = vrsqrt.f32 %v1526_v27  ;;  %3914 = vmatmul.msk.f32.vlgmr.msra.gmra.mxu1 %vm6737_vm7, %v5343_v21  ;;  %vm1560_vm3 = vmor %vm1558_vm12, %vm1559_vm1  ;;  %vm1568_vm13 = vweird.f32 %v1526_v27 }
 0x782   :  { %v1551_v47 = vsel %vm1550_vm10, %v4238_v1, %v1547_v54  ;;  %v1554_v14 = vmul.f32 %v4240_v45, %v1553_v24  ;;  %vm6738_vm7 = vmmov %vm6736_vm5 }
 0x783   :  { %v1623_v35 = vmul.f32 %v1551_v47, %v5250_v8  ;;  %vm6739_vm1 = vmmov %vm6736_vm5 }
 0x784   :  { %v1555_v40 = vmul.f32 0.5, %v1554_v14 }
 0x785   :  { %v1633_v42 = vmul.f32 %v5329_v22, %v1623_v35 }
 0x786   :  { %v1556_v36 = vsub.f32 1.5, %v1555_v40 }
 0x787   :  { %v4242_v51 = vpop.eup %4241  ;;  %v5350_v52 = vadd.f32 %v5338_v63, %v1633_v42 }
 0x788   :  { %v1557_v53 = vmul.f32 %v4240_v45, %v1556_v36  ;;  %v1563_v48 = vmul.f32 %v4242_v51, %v1526_v27  ;;  %vm1569_vm2 = vweird.f32 %v4242_v51 }
 0x789   :  { %3915 = vmatmul.msk.f32.gmra.mxu1 %vm6736_vm5, %v5350_v52  ;;  %vm1570_vm10 = vmor %vm1568_vm13, %vm1569_vm2 }
 0x78a   :  { %v1564_v55 = vmul.f32 %v4242_v51, %v1563_v48  ;;  %v1501_v60 = vpop.xlane.xlu0 %1500  ;;  %v1561_v2 = vsel %vm1560_vm3, %v4240_v45, %v1557_v53  ;;  %v1748_v45 = vld [vmem:[%s6551_s1 + $0xb8] sm:$0xff] }
 0x78b   :  { %v1518_v8 = vmul.f32 %v1501_v60, %v5086_v33  ;;  %v1624_v58 = vmul.f32 %v1561_v2, %v5262_v20 }
 0x78c   :  { %v1565_v9 = vmul.f32 0.5, %v1564_v55 }
 0x78d   :  { %v1527_v41 = vadd.f32 1e-05, %v1518_v8  ;;  %v1634_v3 = vmul.f32 %v5329_v22, %v1624_v58 }
 0x78e   :  { %v1566_v5 = vsub.f32 1.5, %v1565_v9 }
 0x78f   :  { %4243 = vrsqrt.f32 %v1527_v41  ;;  %v5358_v6 = vadd.f32 %v5338_v63, %v1634_v3  ;;  %vm1578_vm3 = vweird.f32 %v1527_v41 }
 0x790   :  { %v1567_v12 = vmul.f32 %v4242_v51, %v1566_v5 }
 0x791   :  { %3916 = vmatmul.msk.f32.gmra.mxu1 %vm6738_vm7, %v5358_v6  ;;  %vm6740_vm7 = vmmov %vm6739_vm1 }
 0x792   :  { %v1571_v39 = vsel %vm1570_vm10, %v4242_v51, %v1567_v12  ;;  %v1504_v49 = vpop.xlane.xlu1 %1503 }
 0x793   :  { %v1519_v20 = vmul.f32 %v1504_v49, %v5086_v33  ;;  %v1625_v13 = vmul.f32 %v1571_v39, %v5275_v15  ;;  %v1750_v15 = vld [vmem:[%s6551_s1 + $0xc8] sm:$0xff]  ;;  %v1747_v39 = vld [vmem:[%s6551_s1 + $0xb0] sm:$0xff] }
 0x794   :  { %1757 = vmatpush.msra.mxu3 %v1750_v15  ;;  %v1746_v49 = vld [vmem:[%s6551_s1 + $0xa8] sm:$0xff] }
 0x795   :  { %v4244_v10 = vpop.eup %4243  ;;  %v1528_v1 = vadd.f32 1e-05, %v1519_v20  ;;  %v1635_v46 = vmul.f32 %v5329_v22, %v1625_v13  ;;  %v1744_v20 = vld [vmem:[%s6551_s1 + $0x98] sm:$0xff]  ;;  %v1743_v13 = vld [vmem:[%s6551_s1 + $0x90] sm:$0xff] }
 0x796   :  { %v1573_v17 = vmul.f32 %v4244_v10, %v1527_v41  ;;  %vm1579_vm12 = vweird.f32 %v4244_v10  ;;  %1758 = vmatpush.msra.mxu3 %v1749_v16 }
 0x797   :  { %4245 = vrsqrt.f32 %v1528_v1  ;;  %v5366_v38 = vadd.f32 %v5338_v63, %v1635_v46  ;;  %vm1580_vm5 = vmor %vm1578_vm3, %vm1579_vm12  ;;  %vm1588_vm13 = vweird.f32 %v1528_v1  ;;  %v1740_v46 = vld [vmem:[%s6551_s1 + $0x78] sm:$0xff] }
 0x798   :  { %v1574_v43 = vmul.f32 %v4244_v10, %v1573_v17  ;;  %1759 = vmatpush.msra.mxu3 %v1748_v45  ;;  %v1739_v17 = vld [vmem:[%s6551_s1 + $0x70] sm:$0xff] }
 0x799   :  { %3917 = vmatmul.msk.f32.gmra.mxu1 %vm6739_vm1, %v5366_v38 }
 0x79a   :  { %v1575_v25 = vmul.f32 0.5, %v1574_v43  ;;  %v1507_v0 = vpop.xlane.xlu2 %1506  ;;  %1760 = vmatpush.msra.mxu3 %v1747_v39 }
 0x79b   :  { %v1520_v34 = vmul.f32 %v1507_v0, %v5086_v33 }
 0x79c   :  { %v1576_v19 = vsub.f32 1.5, %v1575_v25  ;;  %1761 = vmatpush.msra.mxu3 %v1746_v49 }
 0x79d   :  { %v4246_v23 = vpop.eup %4245  ;;  %v1529_v57 = vadd.f32 1e-05, %v1520_v34 }
 0x79e   :  { %v1577_v27 = vmul.f32 %v4244_v10, %v1576_v19  ;;  %v1583_v54 = vmul.f32 %v4246_v23, %v1528_v1  ;;  %vm1589_vm2 = vweird.f32 %v4246_v23  ;;  %v1741_v1 = vld [vmem:[%s6551_s1 + $0x80] sm:$0xff] }
 0x79f   :  { %4247 = vrsqrt.f32 %v1529_v57  ;;  %vm1590_vm10 = vmor %vm1588_vm13, %vm1589_vm2  ;;  %vm1598_vm12 = vweird.f32 %v1529_v57 }
 0x7a0   :  { %v1584_v24 = vmul.f32 %v4246_v23, %v1583_v54  ;;  %v1581_v47 = vsel %vm1580_vm5, %v4244_v10, %v1577_v27  ;;  %vm6741_vm5 = vmmov %vm6740_vm7  ;;  %v1742_v10 = vld [vmem:[%s6551_s1 + $0x88] sm:$0xff] }
 0x7a1   :  { %v1626_v14 = vmul.f32 %v1581_v47, %v5282_v31  ;;  %vm6742_vm2 = vmmov %vm6741_vm5 }
 0x7a2   :  { %v1585_v35 = vmul.f32 0.5, %v1584_v24 }
 0x7a3   :  { %v1636_v40 = vmul.f32 %v5329_v22, %v1626_v14  ;;  %v4127_v14 = vld [vmem:[%s6553_s2 + $0x7] ss:$0 sm:$0xff] }
 0x7a4   :  { %v1586_v42 = vsub.f32 1.5, %v1585_v35 }
 0x7a5   :  { %v4248_v36 = vpop.eup %4247  ;;  %v5389_v51 = vadd.f32 %v5338_v63, %v1636_v40 }
 0x7a6   :  { %v1587_v53 = vmul.f32 %v4246_v23, %v1586_v42  ;;  %v1593_v48 = vmul.f32 %v4248_v36, %v1529_v57  ;;  %vm1599_vm1 = vweird.f32 %v4248_v36 }
 0x7a7   :  { %3918 = vmatmul.msk.f32.gmra.mxu1 %vm6740_vm7, %v5389_v51  ;;  %vm1600_vm3 = vmor %vm1598_vm12, %vm1599_vm1 }
 0x7a8   :  { %v1591_v55 = vsel %vm1590_vm10, %v4246_v23, %v1587_v53  ;;  %v1594_v60 = vmul.f32 %v4248_v36, %v1593_v48 }
 0x7a9   :  { %v1627_v31 = vmul.f32 %v1591_v55, %v5289_v28 }
 0x7aa   :  { %v1595_v2 = vmul.f32 0.5, %v1594_v60 }
 0x7ab   :  { %v1637_v8 = vmul.f32 %v5329_v22, %v1627_v31 }
 0x7ac   :  { %v1596_v58 = vsub.f32 1.5, %v1595_v2 }
 0x7ad   :  { %v5396_v9 = vadd.f32 %v5338_v63, %v1637_v8 }
 0x7ae   :  { %v1597_v41 = vmul.f32 %v4248_v36, %v1596_v58 }
 0x7af   :  { %3919 = vmatmul.msk.f32.gmra.mxu1 %vm6741_vm5, %v5396_v9  ;;  %vm6743_vm5 = vmmov %vm6742_vm2 }
 0x7b0   :  { %v1601_v3 = vsel %vm1600_vm3, %v4248_v36, %v1597_v41 }
 0x7b1   :  { %v1628_v5 = vmul.f32 %v1601_v3, %v5296_v30  ;;  %v1745_v30 = vld [vmem:[%s6551_s1 + $0xa0] sm:$0xff] }
 0x7b2   :  { %1762 = vmatpush.msra.mxu3 %v1745_v30 }
 0x7b3   :  { %v1638_v12 = vmul.f32 %v5329_v22, %v1628_v5 }
 0x7b4   :  { %1763 = vmatpush.msra.mxu3 %v1744_v20 }
 0x7b5   :  { %v5403_v28 = vadd.f32 %v5338_v63, %v1638_v12 }
 0x7b6   :  { %1764 = vmatpush.msra.mxu3 %v1743_v13 }
 0x7b7   :  { %3920 = vmatmul.msk.f32.gmra.mxu1 %vm6742_vm2, %v5403_v28 }
 0x7b8   :  { %1765 = vmatpush.msra.mxu3 %v1742_v10 }
 0x7ba   :  { %1766 = vmatpush.msra.mxu3 %v1741_v1 }
 0x7bc   :  { %1767 = vmatpush.msra.mxu3 %v1740_v46 }
 0x7be   :  { %1768 = vmatpush.msra.mxu3 %v1739_v17 }
 0x7c0   :  { %1769 = vmatpush.msra.mxu3 %v1738_v26 }
 0x7c2   :  { %1770 = vmatpush.msra.mxu3 %v1737_v32 }
 0x7e7   :  { %v1510_v43 = vpop.xlane.xlu0 %1509 }
 0x7e8   :  { %v1521_v15 = vmul.f32 %v1510_v43, %v5086_v33 }
 0x7ea   :  { %v1530_v25 = vadd.f32 1e-05, %v1521_v15 }
 0x7ec   :  { %4249 = vrsqrt.f32 %v1530_v25  ;;  %vm1608_vm10 = vweird.f32 %v1530_v25 }
 0x7ef   :  { %v1513_v0 = vpop.xlane.xlu1 %1512 }
 0x7f0   :  { %v1522_v34 = vmul.f32 %v1513_v0, %v5086_v33 }
 0x7f2   :  { %v4250_v16 = vpop.eup %4249  ;;  %v1531_v19 = vadd.f32 1e-05, %v1522_v34  ;;  %v5462_v34 = vld [vmem:[%s6553_s2 + $0x8] ss:$0 sm:$0xff] }
 0x7f3   :  { %v1603_v23 = vmul.f32 %v4250_v16, %v1530_v25  ;;  %vm1609_vm13 = vweird.f32 %v4250_v16 }
 0x7f4   :  { %4251 = vrsqrt.f32 %v1531_v19  ;;  %vm1610_vm7 = vmor %vm1608_vm10, %vm1609_vm13  ;;  %vm1618_vm12 = vweird.f32 %v1531_v19 }
 0x7f5   :  { %v1604_v57 = vmul.f32 %v4250_v16, %v1603_v23  ;;  %vm6744_vm13 = vmmov %vm6742_vm2 }
 0x7f6   :  { %vm6745_vm10 = vmmov %vm6742_vm2 }
 0x7f7   :  { %v1605_v45 = vmul.f32 0.5, %v1604_v57 }
 0x7f9   :  { %v1606_v27 = vsub.f32 1.5, %v1605_v45 }
 0x7fa   :  { %v4252_v54 = vpop.eup %4251 }
 0x7fb   :  { %v1607_v24 = vmul.f32 %v4250_v16, %v1606_v27  ;;  %v1613_v47 = vmul.f32 %v4252_v54, %v1531_v19  ;;  %vm1619_vm1 = vweird.f32 %v4252_v54 }
 0x7fc   :  { %vm1620_vm3 = vmor %vm1618_vm12, %vm1619_vm1 }
 0x7fd   :  { %v1614_v35 = vmul.f32 %v4252_v54, %v1613_v47  ;;  %v1611_v40 = vsel %vm1610_vm7, %v4250_v16, %v1607_v24  ;;  %vm6746_vm7 = vmmov %vm6742_vm2 }
 0x7fe   :  { %v1701_v42 = vpop.f32.mrf.mxu1  ;;  %v1629_v36 = vmul.f32 %v1611_v40, %v5316_v29  ;;  %vm6747_vm1 = vmmov %vm6742_vm2 }
 0x7ff   :  { %v1615_v53 = vmul.f32 0.5, %v1614_v35  ;;  %v1702_v48 = vadd.f32 %v4127_v14, %v1701_v42  ;;  %vm6748_vm12 = vmmov %vm6747_vm1 }
 0x800   :  { %v1639_v55 = vmul.f32 %v5329_v22, %v1629_v36 }
 0x801   :  { %v1616_v60 = vsub.f32 1.5, %v1615_v53  ;;  %v1728_v31 = vmax.f32 %v1702_v48, 0.0 }
 0x802   :  { %v5448_v2 = vadd.f32 %v5338_v63, %v1639_v55 }
 0x803   :  { %v1617_v8 = vmul.f32 %v4252_v54, %v1616_v60  ;;  %1771 = vmatmul.f32.vlgmr.msra.gmra.mxu3 %v1728_v31 }
 0x804   :  { %3921 = vmatmul.msk.f32.gmra.mxu1 %vm6743_vm5, %v5448_v2  ;;  %vm6750_vm5 = vmmov %vm6747_vm1 }
 0x805   :  { %v1621_v58 = vsel %vm1620_vm3, %v4252_v54, %v1617_v8  ;;  %vm6749_vm3 = vmmov %vm6747_vm1 }
 0x806   :  { %v1704_v41 = vpop.f32.mrf.mxu1  ;;  %v1630_v29 = vmul.f32 %v1621_v58, %v5324_v7 }
 0x807   :  { %v1705_v3 = vadd.f32 %v4127_v14, %v1704_v41 }
 0x808   :  { %v1640_v5 = vmul.f32 %v5329_v22, %v1630_v29 }
 0x809   :  { %v1729_v12 = vmax.f32 %v1705_v3, 0.0 }
 0x80a   :  { %v5455_v39 = vadd.f32 %v5338_v63, %v1640_v5 }
 0x80b   :  { %1774 = vmatmul.f32.gmra.mxu3 %v1729_v12 }
 0x80c   :  { %3922 = vmatmul.msk.f32.gmra.mxu1 %vm6742_vm2, %v5455_v39  ;;  %vm6751_vm2 = vmmov %vm6747_vm1 }
 0x80e   :  { %v1707_v49 = vpop.f32.mrf.mxu1 }
 0x80f   :  { %v1708_v30 = vadd.f32 %v4127_v14, %v1707_v49 }
 0x811   :  { %v1730_v20 = vmax.f32 %v1708_v30, 0.0 }
 0x813   :  { %1777 = vmatmul.f32.gmra.mxu3 %v1730_v20 }
 0x816   :  { %v1710_v13 = vpop.f32.mrf.mxu1 }
 0x817   :  { %v1711_v10 = vadd.f32 %v4127_v14, %v1710_v13 }
 0x819   :  { %v1731_v1 = vmax.f32 %v1711_v10, 0.0 }
 0x81b   :  { %1780 = vmatmul.f32.gmra.mxu3 %v1731_v1 }
 0x824   :  { %v1713_v7 = vpop.f32.mrf.mxu1 }
 0x825   :  { %v1714_v46 = vadd.f32 %v4127_v14, %v1713_v7 }
 0x827   :  { %v1732_v17 = vmax.f32 %v1714_v46, 0.0 }
 0x829   :  { %1783 = vmatmul.f32.gmra.mxu3 %v1732_v17 }
 0x82c   :  { %v1716_v22 = vpop.f32.mrf.mxu1 }
 0x82d   :  { %v1717_v26 = vadd.f32 %v4127_v14, %v1716_v22 }
 0x82f   :  { %v1733_v63 = vmax.f32 %v1717_v26, 0.0 }
 0x831   :  { %1786 = vmatmul.f32.gmra.mxu3 %v1733_v63 }
 0x834   :  { %v1719_v32 = vpop.f32.mrf.mxu1 }
 0x835   :  { %v1720_v43 = vadd.f32 %v4127_v14, %v1719_v32 }
 0x837   :  { %v1734_v15 = vmax.f32 %v1720_v43, 0.0 }
 0x839   :  { %1789 = vmatmul.f32.gmra.mxu3 %v1734_v15 }
 0x881   :  { %v1722_v25 = vpop.f32.mrf.mxu1 }
 0x882   :  { %v1723_v0 = vadd.f32 %v4127_v14, %v1722_v25 }
 0x884   :  { %v1735_v16 = vmax.f32 %v1723_v0, 0.0 }
 0x886   :  { %v1772_v19 = vpop.f32.mrf.mxu3  ;;  %1792 = vmatmul.f32.gmra.mxu3 %v1735_v16 }
 0x887   :  { %v1773_v23 = vadd.f32 %v5462_v34, %v1772_v19 }
 0x889   :  { %v1725_v57 = vpop.f32.mrf.mxu1  ;;  %v1799_v45 = vadd.f32 %v1773_v23, %v5343_v21 }
 0x88a   :  { %v1726_v27 = vadd.f32 %v4127_v14, %v1725_v57 }
 0x88b   :  { %v1810_v54 = vsel %vm6744_vm13, %v1799_v45, 0.0  ;;  %vm6752_vm13 = vmmov %vm6747_vm1 }
 0x88c   :  { %v1736_v24 = vmax.f32 %v1726_v27, 0.0  ;;  %1811 = vadd.xlane.f32.xlu2 %v1810_v54 }
 0x88e   :  { %v1775_v47 = vpop.f32.mrf.mxu3  ;;  %1795 = vmatmul.f32.gmra.mxu3 %v1736_v24 }
 0x88f   :  { %v1776_v35 = vadd.f32 %v5462_v34, %v1775_v47 }
 0x891   :  { %v1800_v40 = vadd.f32 %v1776_v35, %v5350_v52 }
 0x893   :  { %v1813_v42 = vsel %vm6745_vm10, %v1800_v40, 0.0  ;;  %vm6753_vm10 = vmmov %vm6747_vm1 }
 0x894   :  { %1814 = vadd.xlane.f32.xlu0 %v1813_v42 }
 0x896   :  { %v1778_v36 = vpop.f32.mrf.mxu3 }
 0x897   :  { %v1779_v53 = vadd.f32 %v5462_v34, %v1778_v36 }
 0x899   :  { %v1801_v48 = vadd.f32 %v1779_v53, %v5358_v6 }
 0x89b   :  { %v1816_v21 = vsel %vm6746_vm7, %v1801_v48, 0.0  ;;  %vm6754_vm7 = vmmov %vm6747_vm1 }
 0x89c   :  { %1817 = vadd.xlane.f32.xlu1 %v1816_v21 }
 0x89e   :  { %v1781_v14 = vpop.f32.mrf.mxu3 }
 0x89f   :  { %v1782_v55 = vadd.f32 %v5462_v34, %v1781_v14 }
 0x8a1   :  { %v1802_v60 = vadd.f32 %v1782_v55, %v5366_v38 }
 0x8a3   :  { %v1819_v31 = vsel %vm6747_vm1, %v1802_v60, 0.0 }
 0x8a4   :  { %1820 = vadd.xlane.f32.xlu2 %v1819_v31 }
 0x8ac   :  { %v1784_v52 = vpop.f32.mrf.mxu3 }
 0x8ad   :  { %v1785_v8 = vadd.f32 %v5462_v34, %v1784_v52 }
 0x8af   :  { %v1803_v58 = vadd.f32 %v1785_v8, %v5389_v51 }
 0x8b1   :  { %v1822_v41 = vsel %vm6748_vm12, %v1803_v58, 0.0  ;;  %vm6755_vm12 = vmmov %vm6747_vm1 }
 0x8b2   :  { %1823 = vadd.xlane.f32.xlu0 %v1822_v41  ;;  %v2030_v41 = vld [vmem:[%s6551_s1 + $0xf0] sm:$0xff] }
 0x8b4   :  { %v1787_v6 = vpop.f32.mrf.mxu3 }
 0x8b5   :  { %v1788_v29 = vadd.f32 %v5462_v34, %v1787_v6  ;;  %v2029_v6 = vld [vmem:[%s6551_s1 + $0xe8] sm:$0xff] }
 0x8b7   :  { %v1804_v3 = vadd.f32 %v1788_v29, %v5396_v9  ;;  %v2028_v29 = vld [vmem:[%s6551_s1 + $0xe0] sm:$0xff] }
 0x8b9   :  { %v1825_v5 = vsel %vm6749_vm3, %v1804_v3, 0.0  ;;  %vm6756_vm3 = vmmov %vm6747_vm1 }
 0x8ba   :  { %1826 = vadd.xlane.f32.xlu1 %v1825_v5 }
 0x8bc   :  { %v1790_v38 = vpop.f32.mrf.mxu3 }
 0x8bd   :  { %v1791_v12 = vadd.f32 %v5462_v34, %v1790_v38 }
 0x8bf   :  { %v1805_v49 = vadd.f32 %v1791_v12, %v5403_v28 }
 0x8c1   :  { %v1828_v30 = vsel %vm6750_vm5, %v1805_v49, 0.0  ;;  %vm6757_vm5 = vmmov %vm6747_vm1 }
 0x8c2   :  { %1829 = vadd.xlane.f32.xlu0 %v1828_v30 }
 0x8ff   :  { %v1812_v51 = vpop.xlane.xlu2 %1811 }
 0x900   :  { %v1837_v20 = vmul.f32 %v1812_v51, %v5086_v33 }
 0x902   :  { %v5486_v13 = vsub.f32 %v1799_v45, %v1837_v20 }
 0x904   :  { %v1855_v10 = vmul.f32 %v5486_v13, %v5486_v13 }
 0x906   :  { %v1864_v9 = vsel %vm6751_vm2, %v1855_v10, 0.0  ;;  %vm6758_vm2 = vmmov %vm6747_vm1 }
 0x907   :  { %1865 = vadd.xlane.f32.xlu2 %v1864_v9  ;;  %v1815_v1 = vpop.xlane.xlu0 %1814 }
 0x908   :  { %v1838_v7 = vmul.f32 %v1815_v1, %v5086_v33 }
 0x909   :  { %v1793_v46 = vpop.f32.mrf.mxu3 }
 0x90a   :  { %v5492_v17 = vsub.f32 %v1800_v40, %v1838_v7  ;;  %v1794_v28 = vadd.f32 %v5462_v34, %v1793_v46 }
 0x90c   :  { %v1806_v22 = vadd.f32 %v1794_v28, %v5448_v2  ;;  %v1856_v26 = vmul.f32 %v5492_v17, %v5492_v17 }
 0x90e   :  { %v1831_v63 = vsel %vm6752_vm13, %v1806_v22, 0.0  ;;  %v1867_v32 = vsel %vm6753_vm10, %v1856_v26, 0.0  ;;  %vm6759_vm13 = vmmov %vm6747_vm1 }
 0x90f   :  { %1832 = vadd.xlane.f32.xlu2 %v1831_v63  ;;  %1868 = vadd.xlane.f32.xlu1 %v1867_v32  ;;  %v1818_v43 = vpop.xlane.xlu1 %1817 }
 0x910   :  { %v1839_v15 = vmul.f32 %v1818_v43, %v5086_v33 }
 0x911   :  { %v1796_v25 = vpop.f32.mrf.mxu3 }
 0x912   :  { %v5501_v0 = vsub.f32 %v1801_v48, %v1839_v15  ;;  %v1797_v16 = vadd.f32 %v5462_v34, %v1796_v25 }
 0x914   :  { %v5505_v19 = vadd.f32 %v1797_v16, %v5455_v39  ;;  %v1857_v2 = vmul.f32 %v5501_v0, %v5501_v0 }
 0x916   :  { %v1834_v23 = vsel %vm6754_vm7, %v5505_v19, 0.0  ;;  %v1870_v57 = vsel %vm6747_vm1, %v1857_v2, 0.0 }
 0x917   :  { %v1821_v45 = vpop.xlane.xlu2 %1820  ;;  %1835 = vadd.xlane.f32.xlu1 %v1834_v23  ;;  %1871 = vadd.xlane.f32.xlu0 %v1870_v57 }
 0x918   :  { %v1840_v27 = vmul.f32 %v1821_v45, %v5086_v33  ;;  %v5564_v45 = vld [vmem:[%s6553_s2 + $0x9] ss:$0 sm:$0xff] }
 0x91a   :  { %v5513_v54 = vsub.f32 %v1802_v60, %v1840_v27 }
 0x91c   :  { %v1858_v34 = vmul.f32 %v5513_v54, %v5513_v54 }
 0x91e   :  { %v1873_v39 = vsel %vm6755_vm12, %v1858_v34, 0.0  ;;  %vm6760_vm12 = vmmov %vm6758_vm2 }
 0x91f   :  { %1874 = vadd.xlane.f32.xlu2 %v1873_v39 }
 0x925   :  { %v1824_v24 = vpop.xlane.xlu0 %1823 }
 0x926   :  { %v1841_v47 = vmul.f32 %v1824_v24, %v5086_v33 }
 0x928   :  { %v5519_v35 = vsub.f32 %v1803_v58, %v1841_v47  ;;  %v2031_v58 = vld [vmem:[%s6551_s1 + $0xf8] sm:$0xff]  ;;  %v5573_v47 = vld [vmem:[%s6553_s2 + $0xa] ss:$0 sm:$0xff] }
 0x929   :  { %2073 = vmatpush.msra.mxu0 %v2031_v58 }
 0x92a   :  { %v1859_v40 = vmul.f32 %v5519_v35, %v5519_v35 }
 0x92b   :  { %2074 = vmatpush.msra.mxu0 %v2030_v41 }
 0x92c   :  { %v1876_v42 = vsel %vm6756_vm3, %v1859_v40, 0.0 }
 0x92d   :  { %1877 = vadd.xlane.f32.xlu0 %v1876_v42  ;;  %v1827_v36 = vpop.xlane.xlu1 %1826  ;;  %2075 = vmatpush.msra.mxu0 %v2029_v6 }
 0x92e   :  { %v1842_v53 = vmul.f32 %v1827_v36, %v5086_v33 }
 0x92f   :  { %2076 = vmatpush.msra.mxu0 %v2028_v29 }
 0x930   :  { %v5525_v48 = vsub.f32 %v1804_v3, %v1842_v53 }
 0x932   :  { %v1860_v21 = vmul.f32 %v5525_v48, %v5525_v48 }
 0x934   :  { %v1879_v14 = vsel %vm6757_vm5, %v1860_v21, 0.0 }
 0x935   :  { %v1830_v55 = vpop.xlane.xlu0 %1829  ;;  %1880 = vadd.xlane.f32.xlu1 %v1879_v14 }
 0x936   :  { %v1843_v60 = vmul.f32 %v1830_v55, %v5086_v33 }
 0x938   :  { %v5531_v31 = vsub.f32 %v1805_v49, %v1843_v60 }
 0x93a   :  { %v1861_v52 = vmul.f32 %v5531_v31, %v5531_v31 }
 0x93c   :  { %v1882_v8 = vsel %vm6758_vm2, %v1861_v52, 0.0 }
 0x93d   :  { %1883 = vadd.xlane.f32.xlu2 %v1882_v8 }
 0x97a   :  { %v1866_v3 = vpop.xlane.xlu2 %1865 }
 0x97b   :  { %v1891_v5 = vmul.f32 %v1866_v3, %v5086_v33 }
 0x97d   :  { %v1900_v38 = vadd.f32 1e-05, %v1891_v5 }
 0x97f   :  { %4253 = vrsqrt.f32 %v1900_v38  ;;  %vm1915_vm7 = vweird.f32 %v1900_v38 }
 0x982   :  { %v1833_v12 = vpop.xlane.xlu2 %1832  ;;  %v1869_v49 = vpop.xlane.xlu1 %1868 }
 0x983   :  { %v1844_v30 = vmul.f32 %v1833_v12, %v5086_v33  ;;  %v1892_v51 = vmul.f32 %v1869_v49, %v5086_v33 }
 0x985   :  { %v4254_v20 = vpop.eup %4253  ;;  %v5551_v10 = vsub.f32 %v1806_v22, %v1844_v30  ;;  %v1901_v9 = vadd.f32 1e-05, %v1892_v51 }
 0x986   :  { %v1910_v1 = vmul.f32 %v4254_v20, %v1900_v38  ;;  %vm1916_vm10 = vweird.f32 %v4254_v20 }
 0x987   :  { %4255 = vrsqrt.f32 %v1901_v9  ;;  %v1862_v7 = vmul.f32 %v5551_v10, %v5551_v10  ;;  %vm1917_vm1 = vmor %vm1915_vm7, %vm1916_vm10  ;;  %vm1925_vm5 = vweird.f32 %v1901_v9 }
 0x988   :  { %v1911_v46 = vmul.f32 %v4254_v20, %v1910_v1 }
 0x989   :  { %v1885_v28 = vsel %vm6759_vm13, %v1862_v7, 0.0  ;;  %vm6761_vm13 = vmmov %vm6760_vm12 }
 0x98a   :  { %v1912_v26 = vmul.f32 0.5, %v1911_v46  ;;  %1886 = vadd.xlane.f32.xlu0 %v1885_v28  ;;  %v1872_v63 = vpop.xlane.xlu0 %1871  ;;  %v1836_v32 = vpop.xlane.xlu1 %1835 }
 0x98b   :  { %v1893_v43 = vmul.f32 %v1872_v63, %v5086_v33  ;;  %v1845_v15 = vmul.f32 %v1836_v32, %v5086_v33 }
 0x98c   :  { %v1913_v25 = vsub.f32 1.5, %v1912_v26 }
 0x98d   :  { %v4256_v22 = vpop.eup %4255  ;;  %v1902_v16 = vadd.f32 1e-05, %v1893_v43  ;;  %v5559_v2 = vsub.f32 %v5505_v19, %v1845_v15 }
 0x98e   :  { %v1914_v23 = vmul.f32 %v4254_v20, %v1913_v25  ;;  %v1920_v57 = vmul.f32 %v4256_v22, %v1901_v9  ;;  %vm1926_vm3 = vweird.f32 %v4256_v22 }
 0x98f   :  { %4257 = vrsqrt.f32 %v1902_v16  ;;  %v1863_v27 = vmul.f32 %v5559_v2, %v5559_v2  ;;  %vm1927_vm2 = vmor %vm1925_vm5, %vm1926_vm3  ;;  %vm1935_vm7 = vweird.f32 %v1902_v16 }
 0x990   :  { %v1918_v34 = vsel %vm1917_vm1, %v4254_v20, %v1914_v23  ;;  %v1921_v39 = vmul.f32 %v4256_v22, %v1920_v57 }
 0x991   :  { %v1999_v24 = vmul.f32 %v1918_v34, %v5486_v13  ;;  %v1888_v19 = vsel %vm6760_vm12, %v1863_v27, 0.0 }
 0x992   :  { %v1922_v40 = vmul.f32 0.5, %v1921_v39  ;;  %v1875_v42 = vpop.xlane.xlu2 %1874  ;;  %1889 = vadd.xlane.f32.xlu1 %v1888_v19 }
 0x993   :  { %v2009_v36 = vmul.f32 %v5564_v45, %v1999_v24  ;;  %v1894_v53 = vmul.f32 %v1875_v42, %v5086_v33 }
 0x994   :  { %v1923_v21 = vsub.f32 1.5, %v1922_v40 }
 0x995   :  { %v4258_v14 = vpop.eup %4257  ;;  %v1903_v55 = vadd.f32 1e-05, %v1894_v53  ;;  %v5578_v13 = vadd.f32 %v5573_v47, %v2009_v36 }
 0x996   :  { %v1924_v60 = vmul.f32 %v4256_v22, %v1923_v21  ;;  %v1930_v52 = vmul.f32 %v4258_v14, %v1902_v16  ;;  %vm1936_vm10 = vweird.f32 %v4258_v14 }
 0x997   :  { %4259 = vrsqrt.f32 %v1903_v55  ;;  %3923 = vmatmul.msk.f32.vlgmr.msra.gmra.mxu0 %vm6761_vm13, %v5578_v13  ;;  %vm1937_vm1 = vmor %vm1935_vm7, %vm1936_vm10  ;;  %vm1945_vm5 = vweird.f32 %v1903_v55 }
 0x998   :  { %v1928_v8 = vsel %vm1927_vm2, %v4256_v22, %v1924_v60  ;;  %v1931_v58 = vmul.f32 %v4258_v14, %v1930_v52  ;;  %vm6762_vm13 = vmmov %vm6760_vm12 }
 0x999   :  { %v2000_v41 = vmul.f32 %v1928_v8, %v5492_v17  ;;  %vm6763_vm10 = vmmov %vm6760_vm12 }
 0x99a   :  { %v1932_v6 = vmul.f32 0.5, %v1931_v58 }
 0x99b   :  { %v2010_v29 = vmul.f32 %v5564_v45, %v2000_v41 }
 0x99c   :  { %v1933_v3 = vsub.f32 1.5, %v1932_v6 }
 0x99d   :  { %v4260_v5 = vpop.eup %4259  ;;  %v5585_v38 = vadd.f32 %v5573_v47, %v2010_v29 }
 0x99e   :  { %v1934_v12 = vmul.f32 %v4258_v14, %v1933_v3  ;;  %v1940_v49 = vmul.f32 %v4260_v5, %v1903_v55  ;;  %vm1946_vm3 = vweird.f32 %v4260_v5 }
 0x99f   :  { %3924 = vmatmul.msk.f32.gmra.mxu0 %vm6760_vm12, %v5585_v38  ;;  %vm1947_vm2 = vmor %vm1945_vm5, %vm1946_vm3 }
 0x9a0   :  { %v1941_v30 = vmul.f32 %v4260_v5, %v1940_v49  ;;  %v1878_v51 = vpop.xlane.xlu0 %1877  ;;  %v1938_v20 = vsel %vm1937_vm1, %v4258_v14, %v1934_v12 }
 0x9a1   :  { %v1895_v17 = vmul.f32 %v1878_v51, %v5086_v33  ;;  %v2001_v9 = vmul.f32 %v1938_v20, %v5501_v0 }
 0x9a2   :  { %v1942_v1 = vmul.f32 0.5, %v1941_v30 }
 0x9a3   :  { %v1904_v7 = vadd.f32 1e-05, %v1895_v17  ;;  %v2011_v46 = vmul.f32 %v5564_v45, %v2001_v9 }
 0x9a4   :  { %v1943_v28 = vsub.f32 1.5, %v1942_v1 }
 0x9a5   :  { %4261 = vrsqrt.f32 %v1904_v7  ;;  %v5593_v26 = vadd.f32 %v5573_v47, %v2011_v46  ;;  %vm1955_vm1 = vweird.f32 %v1904_v7 }
 0x9a6   :  { %v1944_v63 = vmul.f32 %v4260_v5, %v1943_v28 }
 0x9a7   :  { %3925 = vmatmul.msk.f32.gmra.mxu0 %vm6762_vm13, %v5593_v26  ;;  %vm6764_vm13 = vmmov %vm6763_vm10 }
 0x9a8   :  { %v1948_v32 = vsel %vm1947_vm2, %v4260_v5, %v1944_v63  ;;  %v1881_v43 = vpop.xlane.xlu1 %1880 }
 0x9a9   :  { %v1896_v0 = vmul.f32 %v1881_v43, %v5086_v33  ;;  %v2002_v15 = vmul.f32 %v1948_v32, %v5513_v54 }
 0x9ab   :  { %v4262_v25 = vpop.eup %4261  ;;  %v1905_v22 = vadd.f32 1e-05, %v1896_v0  ;;  %v2012_v16 = vmul.f32 %v5564_v45, %v2002_v15 }
 0x9ac   :  { %v1950_v23 = vmul.f32 %v4262_v25, %v1904_v7  ;;  %vm1956_vm7 = vweird.f32 %v4262_v25 }
 0x9ad   :  { %4263 = vrsqrt.f32 %v1905_v22  ;;  %v5601_v57 = vadd.f32 %v5573_v47, %v2012_v16  ;;  %vm1957_vm12 = vmor %vm1955_vm1, %vm1956_vm7  ;;  %vm1965_vm5 = vweird.f32 %v1905_v22 }
 0x9ae   :  { %v1951_v27 = vmul.f32 %v4262_v25, %v1950_v23 }
 0x9af   :  { %3926 = vmatmul.msk.f32.gmra.mxu0 %vm6763_vm10, %v5601_v57 }
 0x9b0   :  { %v1952_v34 = vmul.f32 0.5, %v1951_v27  ;;  %v1884_v39 = vpop.xlane.xlu2 %1883 }
 0x9b1   :  { %v1897_v24 = vmul.f32 %v1884_v39, %v5086_v33 }
 0x9b2   :  { %v1953_v19 = vsub.f32 1.5, %v1952_v34 }
 0x9b3   :  { %v4264_v54 = vpop.eup %4263  ;;  %v1906_v40 = vadd.f32 1e-05, %v1897_v24 }
 0x9b4   :  { %v1954_v42 = vmul.f32 %v4262_v25, %v1953_v19  ;;  %v1960_v36 = vmul.f32 %v4264_v54, %v1905_v22  ;;  %vm1966_vm3 = vweird.f32 %v4264_v54 }
 0x9b5   :  { %4265 = vrsqrt.f32 %v1906_v40  ;;  %vm1967_vm2 = vmor %vm1965_vm5, %vm1966_vm3  ;;  %vm1975_vm7 = vweird.f32 %v1906_v40 }
 0x9b6   :  { %v1958_v53 = vsel %vm1957_vm12, %v4262_v25, %v1954_v42  ;;  %v1961_v21 = vmul.f32 %v4264_v54, %v1960_v36  ;;  %vm6765_vm12 = vmmov %vm6764_vm13 }
 0x9b7   :  { %v2003_v14 = vmul.f32 %v1958_v53, %v5519_v35  ;;  %vm6766_vm3 = vmmov %vm6765_vm12 }
 0x9b8   :  { %v1962_v55 = vmul.f32 0.5, %v1961_v21 }
 0x9b9   :  { %v2013_v60 = vmul.f32 %v5564_v45, %v2003_v14 }
 0x9ba   :  { %v1963_v52 = vsub.f32 1.5, %v1962_v55 }
 0x9bb   :  { %v4266_v8 = vpop.eup %4265  ;;  %v5609_v58 = vadd.f32 %v5573_v47, %v2013_v60 }
 0x9bc   :  { %v1964_v41 = vmul.f32 %v4264_v54, %v1963_v52  ;;  %v1970_v6 = vmul.f32 %v4266_v8, %v1906_v40  ;;  %vm1976_vm10 = vweird.f32 %v4266_v8 }
 0x9bd   :  { %3927 = vmatmul.msk.f32.gmra.mxu0 %vm6764_vm13, %v5609_v58  ;;  %vm1977_vm1 = vmor %vm1975_vm7, %vm1976_vm10 }
 0x9be   :  { %v1968_v29 = vsel %vm1967_vm2, %v4264_v54, %v1964_v41  ;;  %v1971_v3 = vmul.f32 %v4266_v8, %v1970_v6 }
 0x9bf   :  { %v2004_v35 = vmul.f32 %v1968_v29, %v5525_v48 }
 0x9c0   :  { %v1972_v5 = vmul.f32 0.5, %v1971_v3 }
 0x9c1   :  { %v2014_v12 = vmul.f32 %v5564_v45, %v2004_v35 }
 0x9c2   :  { %v1973_v49 = vsub.f32 1.5, %v1972_v5 }
 0x9c3   :  { %v5616_v30 = vadd.f32 %v5573_v47, %v2014_v12 }
 0x9c4   :  { %v1974_v51 = vmul.f32 %v4266_v8, %v1973_v49 }
 0x9c5   :  { %3928 = vmatmul.msk.f32.gmra.mxu0 %vm6765_vm12, %v5616_v30  ;;  %vm6767_vm12 = vmmov %vm6766_vm3 }
 0x9c6   :  { %v1978_v20 = vsel %vm1977_vm1, %v4266_v8, %v1974_v51  ;;  %v4131_v8 = vld [vmem:[%s6553_s2 + $0xb] ss:$0 sm:$0xff] }
 0x9c7   :  { %v2005_v17 = vmul.f32 %v1978_v20, %v5531_v31 }
 0x9c9   :  { %v2015_v9 = vmul.f32 %v5564_v45, %v2005_v17 }
 0x9cb   :  { %v5623_v48 = vadd.f32 %v5573_v47, %v2015_v9 }
 0x9cd   :  { %3929 = vmatmul.msk.f32.gmra.mxu0 %vm6766_vm3, %v5623_v48 }
 0x9fd   :  { %v1887_v1 = vpop.xlane.xlu0 %1886 }
 0x9fe   :  { %v1898_v7 = vmul.f32 %v1887_v1, %v5086_v33 }
 0xa00   :  { %v1907_v46 = vadd.f32 1e-05, %v1898_v7 }
 0xa02   :  { %4267 = vrsqrt.f32 %v1907_v46  ;;  %vm1985_vm2 = vweird.f32 %v1907_v46 }
 0xa05   :  { %v1890_v28 = vpop.xlane.xlu1 %1889 }
 0xa06   :  { %v1899_v63 = vmul.f32 %v1890_v28, %v5086_v33 }
 0xa08   :  { %v4268_v32 = vpop.eup %4267  ;;  %v1908_v43 = vadd.f32 1e-05, %v1899_v63 }
 0xa09   :  { %v1980_v0 = vmul.f32 %v4268_v32, %v1907_v46  ;;  %vm1986_vm5 = vweird.f32 %v4268_v32 }
 0xa0a   :  { %4269 = vrsqrt.f32 %v1908_v43  ;;  %vm1987_vm13 = vmor %vm1985_vm2, %vm1986_vm5  ;;  %vm1995_vm7 = vweird.f32 %v1908_v43  ;;  %vm6768_vm5 = vcmask 130048  }
 0xa0b   :  { %v1981_v31 = vmul.f32 %v4268_v32, %v1980_v0  ;;  %vm6769_vm2 = vmmov %vm6768_vm5 }
 0xa0d   :  { %v1982_v15 = vmul.f32 0.5, %v1981_v31 }
 0xa0f   :  { %v1983_v25 = vsub.f32 1.5, %v1982_v15 }
 0xa10   :  { %v4270_v22 = vpop.eup %4269 }
 0xa11   :  { %v1984_v16 = vmul.f32 %v4268_v32, %v1983_v25  ;;  %v1990_v23 = vmul.f32 %v4270_v22, %v1908_v43  ;;  %vm1996_vm10 = vweird.f32 %v4270_v22 }
 0xa12   :  { %vm1997_vm1 = vmor %vm1995_vm7, %vm1996_vm10 }
 0xa13   :  { %v1988_v27 = vsel %vm1987_vm13, %v4268_v32, %v1984_v16  ;;  %v1991_v34 = vmul.f32 %v4270_v22, %v1990_v23  ;;  %vm6770_vm13 = vmmov %vm6769_vm2 }
 0xa14   :  { %v2006_v39 = vmul.f32 %v1988_v27, %v5551_v10  ;;  %v2078_v24 = vpop.f32.mrf.mxu0  ;;  %vm6771_vm10 = vmmov %vm6769_vm2 }
 0xa15   :  { %v1992_v19 = vmul.f32 0.5, %v1991_v34  ;;  %v5682_v20 = vadd.f32 %v4131_v8, %v2078_v24  ;;  %vm6772_vm7 = vmmov %vm6769_vm2 }
 0xa16   :  { %v2016_v54 = vmul.f32 %v5564_v45, %v2006_v39 }
 0xa17   :  { %v1993_v40 = vsub.f32 1.5, %v1992_v19 }
 0xa18   :  { %v5632_v42 = vadd.f32 %v5573_v47, %v2016_v54 }
 0xa19   :  { %v1994_v36 = vmul.f32 %v4270_v22, %v1993_v40 }
 0xa1a   :  { %3930 = vmatmul.msk.f32.gmra.mxu0 %vm6767_vm12, %v5632_v42 }
 0xa1b   :  { %v1998_v53 = vsel %vm1997_vm1, %v4270_v22, %v1994_v36  ;;  %vm6773_vm1 = vmmov %vm6769_vm2 }
 0xa1c   :  { %v2007_v21 = vmul.f32 %v1998_v53, %v5559_v2  ;;  %v2081_v14 = vpop.f32.mrf.mxu0  ;;  %vm6774_vm12 = vmmov %vm6773_vm1 }
 0xa1d   :  { %v5690_v17 = vadd.f32 %v4131_v8, %v2081_v14 }
 0xa1e   :  { %v2017_v10 = vmul.f32 %v5564_v45, %v2007_v21 }
 0xa20   :  { %v5639_v55 = vadd.f32 %v5573_v47, %v2017_v10 }
 0xa22   :  { %3931 = vmatmul.msk.f32.gmra.mxu0 %vm6766_vm3, %v5639_v55  ;;  %vm6775_vm3 = vmmov %vm6773_vm1 }
 0xa24   :  { %v2084_v60 = vpop.f32.mrf.mxu0 }
 0xa25   :  { %v5674_v51 = vadd.f32 %v4131_v8, %v2084_v60 }
 0xa27   :  { %v4105_v7 = vpack.i.bf16 %v5690_v17, %v5674_v51 }
 0xa2c   :  { %v2087_v52 = vpop.f32.mrf.mxu0 }
 0xa2d   :  { %v5664_v12 = vadd.f32 %v4131_v8, %v2087_v52 }
 0xa3a   :  { %v2090_v41 = vpop.f32.mrf.mxu0 }
 0xa3b   :  { %v5646_v6 = vadd.f32 %v4131_v8, %v2090_v41 }
 0xa3d   :  { %2123 = vrot.lane.b32.xlu2 %v5646_v6, %s4406_s13  ;;  %v4090_v1 = vpack.i.bf16 %v5664_v12, %v5646_v6 }
 0xa42   :  { %v2093_v2 = vpop.f32.mrf.mxu0 }
 0xa43   :  { %v5650_v45 = vadd.f32 %v4131_v8, %v2093_v2 }
 0xa45   :  { %2125 = vrot.lane.b32.xlu0 %v5650_v45, %s4406_s13 }
 0xa4a   :  { %v2096_v47 = vpop.f32.mrf.mxu0 }
 0xa4b   :  { %v5654_v29 = vadd.f32 %v4131_v8, %v2096_v47 }
 0xa4d   :  { %2127 = vrot.lane.b32.xlu1 %v5654_v29, %s4406_s13  ;;  %v4085_v9 = vpack.i.bf16 %v5650_v45, %v5654_v29 }
 0xa97   :  { %v2099_v3 = vpop.f32.mrf.mxu0  ;;  %v2124_v28 = vpop.permute.xlu2 %2123 }
 0xa98   :  { %v5658_v35 = vadd.f32 %v4131_v8, %v2099_v3 }
 0xa9a   :  { %2534 = vrot.lane.b32.xlu1 %v5658_v35, %s4409_s15  ;;  %2129 = vrot.lane.b32.xlu0 %v5658_v35, %s4406_s13 }
 0xa9f   :  { %v2102_v5 = vpop.f32.mrf.mxu0 }
 0xaa0   :  { %v5666_v49 = vadd.f32 %v4131_v8, %v2102_v5 }
 0xaa2   :  { %2121 = vrot.lane.b32.xlu1 %v5664_v12, %s4406_s13  ;;  %2532 = vrot.lane.b32.xlu0 %v5654_v29, %s4409_s15  ;;  %v4110_v46 = vpack.i.bf16 %v5658_v35, %v5666_v49 }
 0xaa3   :  { %2131 = vrot.lane.b32.xlu2 %v5666_v49, %s4406_s13 }
 0xaaa   :  { %2528 = vrot.lane.b32.xlu1 %v5646_v6, %s4409_s15  ;;  %2119 = vrot.lane.b32.xlu0 %v5674_v51, %s4406_s13 }
 0xaab   :  { %2536 = vrot.lane.b32.xlu2 %v5666_v49, %s4409_s15 }
 0xab2   :  { %2115 = vrot.lane.b32.xlu1 %v5682_v20, %s4406_s13  ;;  %2526 = vrot.lane.b32.xlu0 %v5664_v12, %s4409_s15 }
 0xab3   :  { %2530 = vrot.lane.b32.xlu2 %v5650_v45, %s4409_s15 }
 0xab7   :  { %v2126_v32 = vpop.permute.xlu0 %2125 }
 0xaba   :  { %2520 = vrot.lane.b32.xlu1 %v5682_v20, %s4409_s15  ;;  %2522 = vrot.lane.b32.xlu0 %v5690_v17, %s4409_s15 }
 0xabb   :  { %2117 = vrot.lane.b32.xlu2 %v5690_v17, %s4406_s13 }
 0xabf   :  { %v2128_v43 = vpop.permute.xlu1 %2127 }
 0xac2   :  { %2506 = vrot.lane.b32.xlu1 %v5674_v51, %s4410_s20  ;;  %2504 = vrot.lane.b32.xlu0 %v5690_v17, %s4410_s20 }
 0xac3   :  { %2524 = vrot.lane.b32.xlu2 %v5674_v51, %s4409_s15 }
 0xaca   :  { %2512 = vrot.lane.b32.xlu1 %v5650_v45, %s4410_s20  ;;  %2510 = vrot.lane.b32.xlu0 %v5646_v6, %s4410_s20 }
 0xacb   :  { %2502 = vrot.lane.b32.xlu2 %v5682_v20, %s4410_s20 }
 0xad2   :  { %2516 = vrot.lane.b32.xlu0 %v5658_v35, %s4410_s20  ;;  %2518 = vrot.lane.b32.xlu1 %v5666_v49, %s4410_s20 }
 0xad3   :  { %2508 = vrot.lane.b32.xlu2 %v5664_v12, %s4410_s20 }
 0xada   :  { %4086 = vrot.lane.b32.xlu0 %v4085_v9, %s4411_s21  ;;  %4081 = vrot.lane.b32.xlu1 %v4085_v9, %s4407_s14 }
 0xadb   :  { %2514 = vrot.lane.b32.xlu2 %v5654_v29, %s4410_s20 }
 0xae2   :  { %4091 = vrot.lane.b32.xlu0 %v4090_v1, %s4407_s14 }
 0xae3   :  { %4106 = vrot.lane.b32.xlu2 %v4105_v7, %s4411_s21 }
 0xaea   :  { %4096 = vrot.lane.b32.xlu0 %v4090_v1, %s4411_s21 }
 0xaeb   :  { %4111 = vrot.lane.b32.xlu2 %v4110_v46, %s4407_s14 }
 0xaf2   :  { %4101 = vrot.lane.b32.xlu0 %v4105_v7, %s4407_s14 }
 0xafa   :  { %4116 = vrot.lane.b32.xlu0 %v4110_v46, %s4411_s21 }
 0xafd   :  { %v2132_v63 = vpop.permute.xlu2 %2131 }
 0xafe   :  { %3932 = vmatpush.xpose.msk.msrb.mxu2 %vm6768_vm5, %v2132_v63  ;;  %vm6776_vm5 = vmmov %vm6773_vm1 }
 0xb05   :  { %v2537_v0 = vpop.permute.xlu2 %2536 }
 0xb06   :  { %3968 = vmatpush.xpose.msk.msrb.mxu0 %vm6769_vm2, %v2537_v0  ;;  %vm6777_vm2 = vmmov %vm6773_vm1 }
 0xb0c   :  { %v2130_v31 = vpop.permute.xlu0 %2129  ;;  %v2535_v15 = vpop.permute.xlu1 %2534 }
 0xb0d   :  { %v2531_v25 = vpop.permute.xlu2 %2530  ;;  %3933 = vmatpush.xpose.msk.msrb.mxu2 %vm6770_vm13, %v2130_v31  ;;  %3969 = vmatpush.xpose.msk.msrb.mxu0 %vm6771_vm10, %v2535_v15  ;;  %vm6778_vm13 = vmmov %vm6773_vm1 }
 0xb0e   :  { %vm6779_vm10 = vmmov %vm6773_vm1 }
 0xb11   :  { %3934 = vmatpush.xpose.msk.msrb.mxu2 %vm6772_vm7, %v2128_v43  ;;  %vm6780_vm7 = vmmov %vm6773_vm1 }
 0xb14   :  { %v2533_v22 = vpop.permute.xlu0 %2532  ;;  %v2122_v16 = vpop.permute.xlu1 %2121 }
 0xb15   :  { %v2118_v23 = vpop.permute.xlu2 %2117  ;;  %3935 = vmatpush.xpose.msk.msrb.mxu2 %vm6773_vm1, %v2126_v32  ;;  %3970 = vmatpush.xpose.msk.msrb.mxu0 %vm6774_vm12, %v2533_v22  ;;  %vm6781_vm12 = vmmov %vm6773_vm1 }
 0xb19   :  { %3936 = vmatpush.xpose.msk.msrb.mxu2 %vm6775_vm3, %v2124_v28  ;;  %3971 = vmatpush.xpose.msk.msrb.mxu0 %vm6776_vm5, %v2531_v25  ;;  %vm6782_vm3 = vmmov %vm6773_vm1 }
 0xb1a   :  { %vm6783_vm5 = vmmov %vm6773_vm1 }
 0xb1c   :  { %v2120_v27 = vpop.permute.xlu0 %2119  ;;  %v2529_v34 = vpop.permute.xlu1 %2528 }
 0xb1d   :  { %v2525_v39 = vpop.permute.xlu2 %2524  ;;  %3937 = vmatpush.xpose.msk.msrb.mxu2 %vm6777_vm2, %v2122_v16  ;;  %3972 = vmatpush.xpose.msk.msrb.mxu0 %vm6778_vm13, %v2529_v34  ;;  %vm6784_vm2 = vmmov %vm6773_vm1 }
 0xb1e   :  { %vm6785_vm13 = vmmov %vm6773_vm1 }
 0xb21   :  { %3938 = vmatpush.xpose.msk.msrb.mxu2 %vm6779_vm10, %v2120_v27  ;;  %vm6786_vm10 = vmmov %vm6773_vm1 }
 0xb24   :  { %v2527_v24 = vpop.permute.xlu0 %2526  ;;  %v2116_v19 = vpop.permute.xlu1 %2115 }
 0xb25   :  { %v2503_v54 = vpop.permute.xlu2 %2502  ;;  %3939 = vmatpush.xpose.msk.msrb.mxu2 %vm6780_vm7, %v2118_v23  ;;  %3973 = vmatpush.xpose.msk.msrb.mxu0 %vm6773_vm1, %v2527_v24  ;;  %vm6787_vm7 = vmmov %vm6773_vm1 }
 0xb29   :  { %3940 = vmatpush.xpose.msk.msrb.mxu2 %vm6781_vm12, %v2116_v19  ;;  %3974 = vmatpush.xpose.msk.msrb.mxu0 %vm6782_vm3, %v2525_v39  ;;  %vm6788_vm12 = vmmov %vm6773_vm1 }
 0xb2a   :  { %vm6789_vm3 = vmmov %vm6773_vm1 }
 0xb2c   :  { %v2523_v40 = vpop.permute.xlu0 %2522  ;;  %3941 = vmatmul.msk.f32.vlgmr.msrb.gmra.mxu2 %vm6783_vm5, %v5682_v20  ;;  %v2521_v36 = vpop.permute.xlu1 %2520  ;;  %vm6790_vm5 = vmmov %vm6773_vm1 }
 0xb2d   :  { %v2509_v53 = vpop.permute.xlu2 %2508  ;;  %3975 = vmatpush.xpose.msk.msrb.mxu0 %vm6784_vm2, %v2523_v40  ;;  %vm6791_vm2 = vmmov %vm6773_vm1 }
 0xb31   :  { %3976 = vmatpush.xpose.msk.msrb.mxu0 %vm6785_vm13, %v2521_v36  ;;  %vm6792_vm13 = vmmov %vm6773_vm1 }
 0xb34   :  { %v2505_v21 = vpop.permute.xlu0 %2504  ;;  %3942 = vmatmul.msk.f32.gmra.mxu2 %vm6786_vm10, %v5690_v17  ;;  %3977 = vmatmul.msk.f32.vlgmr.msrb.gmra.mxu0 %vm6787_vm7, %v2503_v54  ;;  %v2507_v14 = vpop.permute.xlu1 %2506  ;;  %vm6793_vm10 = vmmov %vm6773_vm1 }
 0xb35   :  { %v2515_v10 = vpop.permute.xlu2 %2514  ;;  %vm6794_vm7 = vmmov %vm6773_vm1 }
 0xb3c   :  { %v2511_v60 = vpop.permute.xlu0 %2510  ;;  %3943 = vmatmul.msk.f32.gmra.mxu2 %vm6773_vm1, %v5674_v51  ;;  %3978 = vmatmul.msk.f32.gmra.mxu0 %vm6788_vm12, %v2505_v21  ;;  %v2513_v52 = vpop.permute.xlu1 %2512  ;;  %vm6795_vm12 = vmmov %vm6773_vm1 }
 0xb3d   :  { %v4107_v8 = vpop.permute.xlu2 %4106 }
 0xb3e   :  { %v4108_v25 = vunpack.i.l.bf16 %v4107_v8  ;;  %v4109_v22 = vunpack.i.h.bf16 %v4107_v8 }
 0xb44   :  { %v2517_v41 = vpop.permute.xlu0 %2516  ;;  %3944 = vmatmul.msk.f32.gmra.mxu2 %vm6789_vm3, %v5664_v12  ;;  %3979 = vmatmul.msk.f32.gmra.mxu0 %vm6790_vm5, %v2507_v14  ;;  %v2519_v2 = vpop.permute.xlu1 %2518  ;;  %vm6796_vm3 = vmmov %vm6773_vm1 }
 0xb45   :  { %v4112_v47 = vpop.permute.xlu2 %4111  ;;  %vm6797_vm5 = vmmov %vm6773_vm1 }
 0xb46   :  { %v4113_v3 = vunpack.i.l.bf16 %v4112_v47  ;;  %v4114_v5 = vunpack.i.h.bf16 %v4112_v47 }
 0xb48   :  { %2373 = vmatpush.msrb.mxu1 %v4113_v3 }
 0xb4a   :  { %2374 = vmatpush.msrb.mxu1 %v4114_v5 }
 0xb4c   :  { %v4087_v17 = vpop.permute.xlu0 %4086  ;;  %3945 = vmatmul.msk.f32.gmra.mxu2 %vm6791_vm2, %v5646_v6  ;;  %3980 = vmatmul.msk.f32.gmra.mxu0 %vm6792_vm13, %v2509_v53  ;;  %v4082_v51 = vpop.permute.xlu1 %4081  ;;  %vm6798_vm2 = vmmov %vm6773_vm1 }
 0xb4d   :  { %v4083_v9 = vunpack.i.l.bf16 %v4082_v51  ;;  %v4084_v1 = vunpack.i.h.bf16 %v4082_v51  ;;  %vm6799_vm13 = vmmov %vm6773_vm1  ;;  %v4088_v0 = vunpack.i.l.bf16 %v4087_v17  ;;  %v4089_v31 = vunpack.i.h.bf16 %v4087_v17 }
 0xb4f   :  { %2375 = vmatpush.msrb.mxu1 %v4083_v9 }
 0xb51   :  { %2376 = vmatpush.msrb.mxu1 %v4084_v1 }
 0xb54   :  { %v4092_v12 = vpop.permute.xlu0 %4091  ;;  %3946 = vmatmul.msk.f32.gmra.mxu2 %vm6793_vm10, %v5650_v45  ;;  %3981 = vmatmul.msk.f32.gmra.mxu0 %vm6794_vm7, %v2511_v60  ;;  %vm6800_vm10 = vmmov %vm6773_vm1  ;;  %vm6801_vm7 = vcmp.le.s32.totalorder %v4576_v61, %v4573_v59 }
 0xb55   :  { %v4093_v7 = vunpack.i.l.bf16 %v4092_v12  ;;  %v4094_v46 = vunpack.i.h.bf16 %v4092_v12 }
 0xb57   :  { %2377 = vmatpush.msrb.mxu1 %v4093_v7 }
 0xb59   :  { %2378 = vmatpush.msrb.mxu1 %v4094_v46 }
 0xb5c   :  { %v4097_v28 = vpop.permute.xlu0 %4096  ;;  %3947 = vmatmul.msk.f32.gmra.mxu2 %vm6773_vm1, %v5654_v29  ;;  %3982 = vmatmul.msk.f32.gmra.mxu0 %vm6795_vm12, %v2513_v52  ;;  %vm6802_vm1 = vcmask 588800   ;;  %vm6803_vm12 = vmmov %vm6801_vm7 }
 0xb5d   :  { %v4099_v15 = vunpack.i.h.bf16 %v4097_v28 }
 0xb64   :  { %v4102_v6 = vpop.permute.xlu0 %4101  ;;  %3948 = vmatmul.msk.f32.gmra.mxu2 %vm6796_vm3, %v5658_v35  ;;  %3983 = vmatmul.msk.f32.gmra.mxu0 %vm6797_vm5, %v2515_v10  ;;  %v4098_v35 = vunpack.i.l.bf16 %v4097_v28  ;;  %vm6804_vm3 = vmmov %vm6802_vm1 }
 0xb65   :  { %v4103_v63 = vunpack.i.l.bf16 %v4102_v6  ;;  %v4104_v45 = vunpack.i.h.bf16 %v4102_v6  ;;  %vm6805_vm5 = vmmov %vm6802_vm1 }
 0xb67   :  { %2379 = vmatpush.msrb.mxu1 %v4103_v63 }
 0xb69   :  { %2380 = vmatpush.msrb.mxu1 %v4104_v45 }
 0xb6c   :  { %v4117_v32 = vpop.permute.xlu0 %4116  ;;  %3949 = vmatmul.msk.f32.gmra.mxu2 %vm6798_vm2, %v5666_v49  ;;  %3984 = vmatmul.msk.f32.gmra.mxu0 %vm6799_vm13, %v2517_v41  ;;  %vm6806_vm2 = vmmov %vm6802_vm1 }
 0xb6d   :  { %v4118_v43 = vunpack.i.l.bf16 %v4117_v32  ;;  %v4119_v29 = vunpack.i.h.bf16 %v4117_v32  ;;  %vm6807_vm13 = vmmov %vm6802_vm1 }
 0xb6f   :  { %2778 = vmatpush.msra.mxu2 %v4118_v43 }
 0xb71   :  { %2779 = vmatpush.msra.mxu2 %v4119_v29 }
 0xb73   :  { %2780 = vmatpush.msra.mxu2 %v4088_v0 }
 0xb74   :  { %3985 = vmatmul.msk.f32.gmra.mxu0 %vm6800_vm10, %v2519_v2  ;;  %vm6809_vm10 = vmmov %vm6802_vm1 }
 0xb75   :  { %2781 = vmatpush.msra.mxu2 %v4089_v31 }
 0xb77   :  { %2782 = vmatpush.msra.mxu2 %v4098_v35 }
 0xb79   :  { %2783 = vmatpush.msra.mxu2 %v4099_v15 }
 0xb7b   :  { %2784 = vmatpush.msra.mxu2 %v4108_v25 }
 0xb7d   :  { %2785 = vmatpush.msra.mxu2 %v4109_v22 }
 0xbaf   :  { %v2186_v49 = vpop.f32.mrf.mxu2 }
 0xbb0   :  { %v5782_v16 = vsel %vm6801_vm7, %v2186_v49, -1e+30  ;;  %vm6810_vm7 = vmmov %vm6802_vm1 }
 0xbb1   :  { %v2591_v23 = vpop.f32.mrf.mxu0  ;;  %v2222_v27 = vsel %vm6802_vm1, %v5782_v16, -inf }
 0xbb2   :  { %v5789_v34 = vsel %vm6803_vm12, %v2591_v23, -1e+30  ;;  %2223 = vmax.xlane.f32.xlu2 %v2222_v27  ;;  %vm6812_vm12 = vmmov %vm6802_vm1 }
 0xbb3   :  { %v2627_v39 = vsel %vm6804_vm3, %v5789_v34, -inf  ;;  %vm6813_vm3 = vmmov %vm6802_vm1 }
 0xbb4   :  { %2628 = vmax.xlane.f32.xlu1 %v2627_v39 }
 0xbb7   :  { %v2189_v24 = vpop.f32.mrf.mxu2 }
 0xbb8   :  { %v5795_v19 = vsel %vm6668_vm6, %v2189_v24, -1e+30 }
 0xbb9   :  { %v2594_v54 = vpop.f32.mrf.mxu0  ;;  %v2225_v40 = vsel %vm6805_vm5, %v5795_v19, -inf  ;;  %vm6815_vm5 = vmmov %vm6802_vm1 }
 0xbba   :  { %v5801_v36 = vsel %vm6668_vm6, %v2594_v54, -1e+30  ;;  %2226 = vmax.xlane.f32.xlu0 %v2225_v40  ;;  %vm6808_vm6 = vmmov %vm6802_vm1 }
 0xbbb   :  { %v2630_v59 = vsel %vm6806_vm2, %v5801_v36, -inf  ;;  %vm6816_vm2 = vmmov %vm6802_vm1 }
 0xbbc   :  { %2631 = vmax.xlane.f32.xlu1 %v2630_v59 }
 0xbbf   :  { %v2192_v61 = vpop.f32.mrf.mxu2 }
 0xbc0   :  { %v5847_v6 = vsel %vm6670_vm11, %v2192_v61, -1e+30 }
 0xbc1   :  { %v2597_v53 = vpop.f32.mrf.mxu0  ;;  %v2228_v45 = vsel %vm6812_vm12, %v5847_v6, -inf }
 0xbc2   :  { %v5807_v21 = vsel %vm6670_vm11, %v2597_v53, -1e+30  ;;  %vm6814_vm11 = vmmov %vm6802_vm1 }
 0xbc3   :  { %v2633_v14 = vsel %vm6807_vm13, %v5807_v21, -inf }
 0xbc4   :  { %2634 = vmax.xlane.f32.xlu0 %v2633_v14 }
 0xbc7   :  { %v2195_v10 = vpop.f32.mrf.mxu2 }
 0xbc8   :  { %v5869_v31 = vsel %vm6672_vm0, %v2195_v10, -1e+30 }
 0xbc9   :  { %v2600_v60 = vpop.f32.mrf.mxu0  ;;  %v2231_v44 = vsel %vm6816_vm2, %v5869_v31, -inf }
 0xbca   :  { %v5813_v4 = vsel %vm6672_vm0, %v2600_v60, -1e+30  ;;  %2717 = vrot.lane.b32.xlu2 %v5682_v20, %s4411_s21  ;;  %vm6818_vm0 = vmmov %vm6802_vm1 }
 0xbcb   :  { %v2636_v52 = vsel %vm6808_vm6, %v5813_v4, -inf  ;;  %vm6822_vm13 = vmmov %vm6818_vm0 }
 0xbcc   :  { %2637 = vmax.xlane.f32.xlu0 %v2636_v52  ;;  %vm6823_vm6 = vmmov %vm6818_vm0 }
 0xbcd   :  { %vm6828_vm12 = vmmov %vm6818_vm0 }
 0xbce   :  { %vm6832_vm2 = vmmov %vm6818_vm0 }
 0xbcf   :  { %v2198_v8 = vpop.f32.mrf.mxu2 }
 0xbd0   :  { %v5829_v3 = vsel %vm6674_vm9, %v2198_v8, -1e+30 }
 0xbd1   :  { %v2603_v41 = vpop.f32.mrf.mxu0  ;;  %v2234_v51 = vsel %vm6810_vm7, %v5829_v3, -inf  ;;  %vm6825_vm7 = vmmov %vm6818_vm0 }
 0xbd2   :  { %v5821_v2 = vsel %vm6674_vm9, %v2603_v41, -1e+30  ;;  %vm6811_vm9 = vmmov %vm6802_vm1 }
 0xbd3   :  { %v2639_v47 = vsel %vm6809_vm10, %v5821_v2, -inf  ;;  %vm6824_vm10 = vmmov %vm6818_vm0 }
 0xbd4   :  { %2640 = vmax.xlane.f32.xlu0 %v2639_v47 }
 0xbd5   :  { %2312 = vrot.lane.b32.xlu1 %v5682_v20, %s4407_s14 }
 0xbd7   :  { %v2201_v5 = vpop.f32.mrf.mxu2 }
 0xbd8   :  { %v5835_v9 = vsel %vm6676_vm14, %v2201_v5, -1e+30 }
 0xbd9   :  { %v2606_v17 = vpop.f32.mrf.mxu0  ;;  %v2237_v12 = vsel %vm6802_vm1, %v5835_v9, -inf }
 0xbda   :  { %v5859_v29 = vsel %vm6676_vm14, %v2606_v17, -1e+30  ;;  %vm6817_vm14 = vmmov %vm6802_vm1 }
 0xbdb   :  { %v2642_v0 = vsel %vm6814_vm11, %v5859_v29, -inf  ;;  %vm6826_vm1 = vmmov %vm6818_vm0 }
 0xbdc   :  { %2235 = vmax.xlane.f32.xlu0 %v2234_v51  ;;  %vm6830_vm11 = vmmov %vm6818_vm0 }
 0xbdf   :  { %v2204_v7 = vpop.f32.mrf.mxu2 }
 0xbe0   :  { %v5841_v37 = vsel %vm4767_vm4, %v2204_v7, -1e+30 }
 0xbe1   :  { %v2609_v1 = vpop.f32.mrf.mxu0  ;;  %v2240_v20 = vsel %vm6811_vm9, %v5841_v37, -inf  ;;  %vm6827_vm9 = vmmov %vm6818_vm0 }
 0xbe2   :  { %v5877_v15 = vsel %vm4767_vm4, %v2609_v1, -1e+30  ;;  %vm6819_vm4 = vmmov %vm6818_vm0 }
 0xbe3   :  { %v2645_v25 = vsel %vm6817_vm14, %v5877_v15, -inf  ;;  %vm6833_vm14 = vmmov %vm6818_vm0 }
 0xbe4   :  { %2238 = vmax.xlane.f32.xlu0 %v2237_v12 }
 0xbe7   :  { %v2207_v28 = vpop.f32.mrf.mxu2 }
 0xbe8   :  { %v5851_v63 = vsel %vm4804_vm8, %v2207_v28, -1e+30 }
 0xbe9   :  { %v2612_v46 = vpop.f32.mrf.mxu0  ;;  %v2243_v32 = vsel %vm6813_vm3, %v5851_v63, -inf  ;;  %vm6829_vm3 = vmmov %vm6818_vm0 }
 0xbea   :  { %v5883_v18 = vsel %vm4804_vm8, %v2612_v46, -1e+30  ;;  %vm6820_vm8 = vmmov %vm6818_vm0 }
 0xbeb   :  { %v2648_v49 = vsel %vm6818_vm0, %v5883_v18, -inf }
 0xbec   :  { %2241 = vmax.xlane.f32.xlu0 %v2240_v20 }
 0xbef   :  { %v2210_v22 = vpop.f32.mrf.mxu2 }
 0xbf0   :  { %v5889_v23 = vsel %vm4821_vm15, %v2210_v22, -1e+30 }
 0xbf1   :  { %v2615_v43 = vpop.f32.mrf.mxu0  ;;  %v2246_v50 = vsel %vm6819_vm4, %v5889_v23, -inf  ;;  %vm6834_vm4 = vmmov %vm6818_vm0 }
 0xbf2   :  { %v5863_v11 = vsel %vm4821_vm15, %v2615_v43, -1e+30  ;;  %vm6821_vm15 = vmmov %vm6818_vm0 }
 0xbf3   :  { %2229 = vmax.xlane.f32.xlu2 %v2228_v45  ;;  %v2651_v35 = vsel %vm6815_vm5, %v5863_v11, -inf  ;;  %vm6831_vm5 = vmmov %vm6818_vm0 }
 0xbf4   :  { %2244 = vmax.xlane.f32.xlu0 %v2243_v32 }
 0xbfb   :  { %2643 = vmax.xlane.f32.xlu2 %v2642_v0 }
 0xbfc   :  { %2652 = vmax.xlane.f32.xlu0 %v2651_v35 }
 0xbff   :  { %2232 = vmax.xlane.f32.xlu1 %v2231_v44 }
 0xc03   :  { %2646 = vmax.xlane.f32.xlu2 %v2645_v25 }
 0xc07   :  { %2649 = vmax.xlane.f32.xlu1 %v2648_v49 }
 0xc0b   :  { %2247 = vmax.xlane.f32.xlu2 %v2246_v50 }
 0xc25   :  { %v2224_v27 = vpop.xlane.xlu2 %2223 }
 0xc26   :  { %v2249_v39 = vsub.f32 %v5782_v16, %v2224_v27 }
 0xc27   :  { %v2629_v56 = vpop.xlane.xlu1 %2628 }
 0xc28   :  { %v2258_v24 = vmul.f32 1.442695, %v2249_v39  ;;  %v2654_v54 = vsub.f32 %v5789_v34, %v2629_v56 }
 0xc2a   :  { %4271 = vpow2.f32 %v2258_v24  ;;  %v2663_v40 = vmul.f32 1.442695, %v2654_v54 }
 0xc2c   :  { %4273 = vpow2.f32 %v2663_v40 }
 0xc2d   :  { %v2718_v59 = vpop.permute.xlu2 %2717  ;;  %v2227_v61 = vpop.xlane.xlu0 %2226 }
 0xc2e   :  { %v2250_v62 = vsub.f32 %v5795_v19, %v2227_v61  ;;  %2786 = vmatpush.msra.mxu2 %v2718_v59 }
 0xc2f   :  { %v2632_v53 = vpop.xlane.xlu1 %2631 }
 0xc30   :  { %v4272_v14 = vpop.eup %4271  ;;  %v2260_v10 = vmul.f32 1.442695, %v2250_v62  ;;  %v2655_v60 = vsub.f32 %v5801_v36, %v2632_v53 }
 0xc31   :  { %v2276_v52 = vsel %vm6820_vm8, %v4272_v14, 0.0  ;;  %vm6835_vm8 = vmmov %vm6818_vm0 }
 0xc32   :  { %v4274_v16 = vpop.eup %4273  ;;  %4275 = vpow2.f32 %v2260_v10  ;;  %v2665_v8 = vmul.f32 1.442695, %v2655_v60  ;;  %2277 = vadd.xlane.f32.xlu1 %v2276_v52 }
 0xc33   :  { %3986 = vmatmul.msk.f32.vlgmr.msra.gmra.mxu2 %vm6821_vm15, %v4274_v16  ;;  %v2681_v34 = vsel %vm6822_vm13, %v4274_v16, 0.0  ;;  %v2420_v16 = vld [vmem:[%s6551_s1 + $0x108] sm:$0xff]  ;;  %vm6836_vm15 = vmmov %vm6818_vm0 }
 0xc34   :  { %4277 = vpow2.f32 %v2665_v8  ;;  %2682 = vadd.xlane.f32.xlu0 %v2681_v34  ;;  %2462 = vmatpush.msrb.mxu3 %v2420_v16  ;;  %vm6837_vm13 = vmmov %vm6818_vm0 }
 0xc37   :  { %v2635_v41 = vpop.xlane.xlu0 %2634 }
 0xc38   :  { %v4276_v19 = vpop.eup %4275  ;;  %v2656_v47 = vsub.f32 %v5807_v21, %v2635_v41 }
 0xc39   :  { %v2279_v5 = vsel %vm6823_vm6, %v4276_v19, 0.0  ;;  %vm6838_vm6 = vmmov %vm6818_vm0 }
 0xc3a   :  { %v4278_v17 = vpop.eup %4277  ;;  %v2667_v36 = vmul.f32 1.442695, %v2656_v47  ;;  %2280 = vadd.xlane.f32.xlu2 %v2279_v5 }
 0xc3b   :  { %3987 = vmatmul.msk.f32.gmra.mxu2 %vm6824_vm10, %v4278_v17  ;;  %v2684_v12 = vsel %vm6825_vm7, %v4278_v17, 0.0  ;;  %vm6839_vm10 = vmmov %vm6818_vm0 }
 0xc3c   :  { %4279 = vpow2.f32 %v2667_v36  ;;  %vm6840_vm7 = vmmov %vm6818_vm0 }
 0xc3f   :  { %v2638_v51 = vpop.xlane.xlu0 %2637 }
 0xc40   :  { %v2657_v1 = vsub.f32 %v5813_v4, %v2638_v51 }
 0xc42   :  { %v4280_v7 = vpop.eup %4279  ;;  %v2669_v20 = vmul.f32 1.442695, %v2657_v1  ;;  %2685 = vadd.xlane.f32.xlu2 %v2684_v12  ;;  %v2825_v1 = vld [vmem:[%s6551_s1 + $0x118] sm:$0xff] }
 0xc43   :  { %3988 = vmatmul.msk.f32.gmra.mxu2 %vm6826_vm1, %v4280_v7  ;;  %v2687_v41 = vsel %vm6836_vm15, %v4280_v7, 0.0  ;;  %vm6841_vm1 = vmmov %vm6818_vm0 }
 0xc44   :  { %4281 = vpow2.f32 %v2669_v20  ;;  %vm6851_vm15 = vmmov %vm6818_vm0 }
 0xc47   :  { %v2641_v21 = vpop.xlane.xlu0 %2640  ;;  %v2313_v46 = vpop.permute.xlu1 %2312 }
 0xc48   :  { %v2658_v28 = vsub.f32 %v5821_v2, %v2641_v21  ;;  %2381 = vmatpush.msrb.mxu1 %v2313_v46 }
 0xc49   :  { %3950 = vmatmul.msk.f32.vlgmr.msrb.gmra.mxu1 %vm6827_vm9, %v4272_v14  ;;  %vm6842_vm9 = vmmov %vm6818_vm0 }
 0xc4a   :  { %v5908_v45 = vpop.eup %4281  ;;  %v2671_v32 = vmul.f32 1.442695, %v2658_v28  ;;  %2867 = vmatpush.msra.mxu1 %v2825_v1 }
 0xc4b   :  { %3989 = vmatmul.msk.f32.gmra.mxu2 %vm6828_vm12, %v5908_v45  ;;  %vm6843_vm12 = vmmov %vm6818_vm0 }
 0xc4c   :  { %4283 = vpow2.f32 %v2671_v32  ;;  %v2690_v32 = vsel %vm6842_vm9, %v5908_v45, 0.0 }
 0xc4f   :  { %v2236_v4 = vpop.xlane.xlu0 %2235 }
 0xc50   :  { %v2253_v43 = vsub.f32 %v5829_v3, %v2236_v4 }
 0xc51   :  { %3951 = vmatmul.msk.f32.gmra.mxu1 %vm6829_vm3, %v4276_v19  ;;  %vm6844_vm3 = vmmov %vm6818_vm0 }
 0xc52   :  { %v4284_v0 = vpop.eup %4283  ;;  %v2266_v35 = vmul.f32 1.442695, %v2253_v43 }
 0xc53   :  { %3990 = vmatmul.msk.f32.gmra.mxu2 %vm6830_vm11, %v4284_v0  ;;  %v2693_v49 = vsel %vm6832_vm2, %v4284_v0, 0.0  ;;  %vm6845_vm11 = vmmov %vm6818_vm0 }
 0xc54   :  { %4285 = vpow2.f32 %v2266_v35  ;;  %vm6847_vm2 = vmmov %vm6818_vm0 }
 0xc57   :  { %v2239_v2 = vpop.xlane.xlu0 %2238 }
 0xc58   :  { %v2254_v61 = vsub.f32 %v5835_v9, %v2239_v2 }
 0xc5a   :  { %v5915_v44 = vpop.eup %4285 }
 0xc5b   :  { %v2288_v25 = vsel %vm6831_vm5, %v5915_v44, 0.0  ;;  %vm6846_vm5 = vmmov %vm6818_vm0 }
 0xc5c   :  { %2289 = vadd.xlane.f32.xlu2 %v2288_v25  ;;  %v2824_v25 = vld [vmem:[%s6551_s1 + $0x110] sm:$0xff] }
 0xc5d   :  { %2868 = vmatpush.msra.mxu1 %v2824_v25 }
 0xc5f   :  { %v2242_v22 = vpop.xlane.xlu0 %2241 }
 0xc64   :  { %2694 = vadd.xlane.f32.xlu2 %v2693_v49 }
 0xc66   :  { %v2230_v50 = vpop.xlane.xlu2 %2229 }
 0xc67   :  { %v2251_v3 = vsub.f32 %v5847_v6, %v2230_v50  ;;  %v2245_v27 = vpop.xlane.xlu0 %2244 }
 0xc68   :  { %v2256_v39 = vsub.f32 %v5851_v63, %v2245_v27 }
 0xc69   :  { %v2262_v56 = vmul.f32 1.442695, %v2251_v3 }
 0xc6a   :  { %v2272_v24 = vmul.f32 1.442695, %v2256_v39 }
 0xc6b   :  { %4287 = vpow2.f32 %v2262_v56 }
 0xc6c   :  { %4289 = vpow2.f32 %v2272_v24 }
 0xc6e   :  { %v2644_v54 = vpop.xlane.xlu2 %2643 }
 0xc6f   :  { %v2659_v40 = vsub.f32 %v5859_v29, %v2644_v54  ;;  %v2268_v29 = vmul.f32 1.442695, %v2254_v61  ;;  %v2653_v12 = vpop.xlane.xlu0 %2652 }
 0xc70   :  { %v2662_v21 = vsub.f32 %v5863_v11, %v2653_v12 }
 0xc71   :  { %v4288_v59 = vpop.eup %4287  ;;  %v2673_v62 = vmul.f32 1.442695, %v2659_v40 }
 0xc72   :  { %v5924_v53 = vpop.eup %4289  ;;  %v2233_v14 = vpop.xlane.xlu1 %2232  ;;  %3952 = vmatmul.msk.f32.gmra.mxu1 %vm6833_vm14, %v4288_v59  ;;  %v2282_v6 = vsel %vm6818_vm0, %v4288_v59, 0.0  ;;  %v2679_v43 = vmul.f32 1.442695, %v2662_v21  ;;  %vm6848_vm14 = vmmov %vm6818_vm0 }
 0xc73   :  { %4291 = vpow2.f32 %v2673_v62  ;;  %v2252_v63 = vsub.f32 %v5869_v31, %v2233_v14  ;;  %2283 = vadd.xlane.f32.xlu1 %v2282_v6  ;;  %v2297_v10 = vsel %vm6834_vm4, %v5924_v53, 0.0  ;;  %vm6849_vm4 = vmmov %vm6818_vm0 }
 0xc74   :  { %2298 = vadd.xlane.f32.xlu2 %v2297_v10 }
 0xc75   :  { %v2264_v60 = vmul.f32 1.442695, %v2252_v63 }
 0xc76   :  { %v2647_v52 = vpop.xlane.xlu2 %2646 }
 0xc77   :  { %4293 = vpow2.f32 %v2264_v60  ;;  %v2660_v9 = vsub.f32 %v5877_v15, %v2647_v52  ;;  %v2255_v15 = vsub.f32 %v5841_v37, %v2242_v22  ;;  %v2419_v22 = vld [vmem:[%s6551_s1 + $0x100] sm:$0xff] }
 0xc78   :  { %4295 = vpow2.f32 %v2268_v29  ;;  %2463 = vmatpush.msrb.mxu3 %v2419_v22 }
 0xc79   :  { %v4292_v8 = vpop.eup %4291  ;;  %v2675_v34 = vmul.f32 1.442695, %v2660_v9  ;;  %v2270_v7 = vmul.f32 1.442695, %v2255_v15 }
 0xc7a   :  { %3991 = vmatmul.msk.f32.gmra.mxu2 %vm6835_vm8, %v4292_v8  ;;  %v2650_v31 = vpop.xlane.xlu1 %2649  ;;  %v2696_v11 = vsel %vm6845_vm11, %v4292_v8, 0.0  ;;  %vm6850_vm8 = vmmov %vm6818_vm0 }
 0xc7b   :  { %4297 = vpow2.f32 %v2675_v34  ;;  %v2661_v19 = vsub.f32 %v5883_v18, %v2650_v31  ;;  %2688 = vadd.xlane.f32.xlu1 %v2687_v41 }
 0xc7d   :  { %v4294_v47 = vpop.eup %4293  ;;  %v2677_v5 = vmul.f32 1.442695, %v2661_v19 }
 0xc7e   :  { %v2248_v17 = vpop.xlane.xlu2 %2247  ;;  %3953 = vmatmul.msk.f32.gmra.mxu1 %vm6837_vm13, %v4294_v47  ;;  %v2285_v36 = vsel %vm6838_vm6, %v4294_v47, 0.0  ;;  %v4296_v51 = vpop.eup %4295  ;;  %vm6852_vm13 = vmmov %vm6818_vm0 }
 0xc7f   :  { %4299 = vpow2.f32 %v2677_v5  ;;  %2286 = vadd.xlane.f32.xlu0 %v2285_v36  ;;  %v2257_v20 = vsub.f32 %v5889_v23, %v2248_v17  ;;  %v2291_v37 = vsel %vm6840_vm7, %v4296_v51, 0.0  ;;  %vm6853_vm6 = vmmov %vm6818_vm0 }
 0xc80   :  { %4301 = vpow2.f32 %v2270_v7 }
 0xc81   :  { %v4298_v18 = vpop.eup %4297  ;;  %v2274_v28 = vmul.f32 1.442695, %v2257_v20 }
 0xc82   :  { %3992 = vmatmul.msk.f32.gmra.mxu2 %vm6839_vm10, %v4298_v18  ;;  %vm6854_vm10 = vcmask 130048  }
 0xc83   :  { %2292 = vadd.xlane.f32.xlu1 %v2291_v37  ;;  %4303 = vpow2.f32 %v2274_v28  ;;  %vm6855_vm7 = vmmov %vm6854_vm10 }
 0xc84   :  { %4305 = vpow2.f32 %v2679_v43 }
 0xc85   :  { %v4300_v46 = vpop.eup %4299 }
 0xc86   :  { %3954 = vmatmul.msk.f32.gmra.mxu1 %vm6841_vm1, %v5915_v44  ;;  %v2702_v4 = vsel %vm6843_vm12, %v4300_v46, 0.0  ;;  %v4302_v23 = vpop.eup %4301  ;;  %v2699_v44 = vsel %vm6850_vm8, %v4298_v18, 0.0  ;;  %vm6856_vm1 = vmmov %vm6855_vm7 }
 0xc87   :  { %2691 = vadd.xlane.f32.xlu0 %v2690_v32  ;;  %2703 = vadd.xlane.f32.xlu2 %v2702_v4  ;;  %v2294_v0 = vsel %vm6847_vm2, %v4302_v23, 0.0  ;;  %vm6857_vm9 = vmmov %vm6856_vm1 }
 0xc88   :  { %vm6858_vm12 = vmmov %vm6856_vm1 }
 0xc89   :  { %v4304_v35 = vpop.eup %4303  ;;  %vm6860_vm11 = vmmov %vm6856_vm1 }
 0xc8a   :  { %3993 = vmatmul.msk.f32.gmra.mxu2 %vm6844_vm3, %v4300_v46  ;;  %v4306_v45 = vpop.eup %4305  ;;  %v2300_v2 = vsel %vm6818_vm0, %v4304_v35, 0.0  ;;  %vm6859_vm3 = vmmov %vm6856_vm1 }
 0xc8b   :  { %2697 = vadd.xlane.f32.xlu1 %v2696_v11  ;;  %v2705_v49 = vsel %vm6852_vm13, %v4306_v45, 0.0  ;;  %vm6862_vm2 = vmmov %vm6856_vm1 }
 0xc8c   :  { %vm6864_vm0 = vmmov %vm6856_vm1 }
 0xc8d   :  { %vm6866_vm8 = vmmov %vm6864_vm0 }
 0xc8e   :  { %3955 = vmatmul.msk.f32.gmra.mxu1 %vm6846_vm5, %v4296_v51  ;;  %vm6861_vm5 = vmmov %vm6856_vm1 }
 0xc8f   :  { %2295 = vadd.xlane.f32.xlu0 %v2294_v0  ;;  %vm6868_vm13 = vmmov %vm6864_vm0 }
 0xc92   :  { %3994 = vmatmul.msk.f32.gmra.mxu2 %vm6848_vm14, %v4306_v45  ;;  %vm6863_vm14 = vmmov %vm6856_vm1 }
 0xc93   :  { %2301 = vadd.xlane.f32.xlu1 %v2300_v2 }
 0xc96   :  { %3956 = vmatmul.msk.f32.gmra.mxu1 %vm6849_vm4, %v4302_v23  ;;  %vm6865_vm4 = vmmov %vm6864_vm0 }
 0xc97   :  { %2700 = vadd.xlane.f32.xlu0 %v2699_v44 }
 0xc9e   :  { %3957 = vmatmul.msk.f32.gmra.mxu1 %vm6851_vm15, %v5924_v53  ;;  %vm6867_vm15 = vmmov %vm6864_vm0 }
 0xc9f   :  { %2706 = vadd.xlane.f32.xlu0 %v2705_v49 }
 0xca5   :  { %v2278_v54 = vpop.xlane.xlu1 %2277 }
 0xca6   :  { %3958 = vmatmul.msk.f32.gmra.mxu1 %vm6853_vm6, %v4304_v35  ;;  %vm6869_vm6 = vmmov %vm6864_vm0 }
 0xca7   :  { %v2683_v50 = vpop.xlane.xlu0 %2682 }
 0xca8   :  { %4307 = vrcp.f32 %v2683_v50 }
 0xcad   :  { %v2281_v3 = vpop.xlane.xlu2 %2280 }
 0xcae   :  { %v4308_v39 = vpop.eup %4307 }
 0xcb5   :  { %v2686_v27 = vpop.xlane.xlu2 %2685 }
 0xcb6   :  { %v2788_v56 = vpop.f32.mrf.mxu2  ;;  %4309 = vrcp.f32 %v2686_v27 }
 0xcb7   :  { %v2815_v24 = vmul.f32 %v4308_v39, %v2788_v56  ;;  %4311 = vrcp.f32 %v2278_v54 }
 0xcb8   :  { %4313 = vrcp.f32 %v2281_v3 }
 0xcb9   :  { %3995 = vmatmul.msk.f32.vlgmr.msra.gmra.mxu1 %vm6854_vm10, %v2815_v24  ;;  %vm6870_vm10 = vmmov %vm6864_vm0 }
 0xcbc   :  { %v4310_v40 = vpop.eup %4309 }
 0xcbd   :  { %v4312_v62 = vpop.eup %4311 }
 0xcbe   :  { %v2791_v59 = vpop.f32.mrf.mxu2  ;;  %v4314_v6 = vpop.eup %4313 }
 0xcbf   :  { %v2816_v61 = vmul.f32 %v4310_v40, %v2791_v59 }
 0xcc1   :  { %3996 = vmatmul.msk.f32.gmra.mxu1 %vm6855_vm7, %v2816_v61  ;;  %vm6871_vm7 = vmmov %vm6864_vm0 }
 0xcc6   :  { %v2383_v53 = vpop.f32.mrf.mxu1  ;;  %v2794_v9 = vpop.f32.mrf.mxu2 }
 0xcc7   :  { %v2410_v14 = vmul.f32 %v4312_v62, %v2383_v53 }
 0xcc9   :  { %3959 = vmatmul.msk.f32.vlgmr.msrb.gmra.mxu3 %vm6856_vm1, %v2410_v14  ;;  %vm6872_vm1 = vcmask 261120  }
 0xcce   :  { %v2386_v63 = vpop.f32.mrf.mxu1  ;;  %v2797_v47 = vpop.f32.mrf.mxu2 }
 0xccf   :  { %v2411_v10 = vmul.f32 %v4314_v6, %v2386_v63  ;;  %v2290_v31 = vpop.xlane.xlu2 %2289 }
 0xcd1   :  { %3960 = vmatmul.msk.f32.gmra.mxu3 %vm6857_vm9, %v2411_v10  ;;  %vm6873_vm9 = vmmov %vm6872_vm1 }
 0xcd6   :  { %v2800_v20 = vpop.f32.mrf.mxu2 }
 0xcd7   :  { %v2695_v1 = vpop.xlane.xlu2 %2694 }
 0xce6   :  { %v2284_v29 = vpop.xlane.xlu1 %2283 }
 0xce7   :  { %4315 = vrcp.f32 %v2284_v29  ;;  %v2299_v2 = vpop.xlane.xlu2 %2298 }
 0xced   :  { %v4316_v52 = vpop.eup %4315 }
 0xcee   :  { %v2689_v60 = vpop.xlane.xlu1 %2688 }
 0xcef   :  { %4317 = vrcp.f32 %v2689_v60  ;;  %v2389_v16 = vpop.f32.mrf.mxu1 }
 0xcf0   :  { %v2412_v8 = vmul.f32 %v4316_v52, %v2389_v16  ;;  %v5992_v52 = vld [vmem:[%s6553_s2 + $0xc] ss:$0 sm:$0xff] }
 0xcf2   :  { %v2287_v34 = vpop.xlane.xlu0 %2286  ;;  %3961 = vmatmul.msk.f32.gmra.mxu3 %vm6858_vm12, %v2412_v8  ;;  %vm6874_vm12 = vmmov %vm6872_vm1 }
 0xcf3   :  { %4319 = vrcp.f32 %v2287_v34 }
 0xcf5   :  { %v4318_v41 = vpop.eup %4317 }
 0xcf6   :  { %v2817_v19 = vmul.f32 %v4318_v41, %v2794_v9  ;;  %v2293_v36 = vpop.xlane.xlu1 %2292 }
 0xcf8   :  { %3997 = vmatmul.msk.f32.gmra.mxu1 %vm6859_vm3, %v2817_v19  ;;  %vm6875_vm3 = vmmov %vm6872_vm1 }
 0xcf9   :  { %v4320_v5 = vpop.eup %4319 }
 0xcfa   :  { %v2692_v15 = vpop.xlane.xlu0 %2691  ;;  %v2704_v27 = vpop.xlane.xlu2 %2703 }
 0xcfb   :  { %4321 = vrcp.f32 %v2692_v15  ;;  %v2392_v17 = vpop.f32.mrf.mxu1 }
 0xcfc   :  { %v2413_v51 = vmul.f32 %v4320_v5, %v2392_v17  ;;  %4323 = vrcp.f32 %v2290_v31 }
 0xcfd   :  { %4325 = vrcp.f32 %v2695_v1  ;;  %v2803_v11 = vpop.f32.mrf.mxu2 }
 0xcfe   :  { %3962 = vmatmul.msk.f32.gmra.mxu3 %vm6860_vm11, %v2413_v51  ;;  %4327 = vrcp.f32 %v2293_v36  ;;  %v2698_v28 = vpop.xlane.xlu1 %2697  ;;  %vm6876_vm11 = vmmov %vm6872_vm1 }
 0xcff   :  { %4329 = vrcp.f32 %v2698_v28 }
 0xd01   :  { %v4322_v12 = vpop.eup %4321 }
 0xd02   :  { %v2818_v18 = vmul.f32 %v4322_v12, %v2797_v47  ;;  %v4324_v7 = vpop.eup %4323  ;;  %v2296_v21 = vpop.xlane.xlu0 %2295 }
 0xd03   :  { %v2395_v37 = vpop.f32.mrf.mxu1  ;;  %v4326_v32 = vpop.eup %4325  ;;  %4331 = vrcp.f32 %v2296_v21 }
 0xd04   :  { %v2414_v46 = vmul.f32 %v4324_v7, %v2395_v37  ;;  %3998 = vmatmul.msk.f32.gmra.mxu1 %vm6861_vm5, %v2818_v18  ;;  %v2819_v4 = vmul.f32 %v4326_v32, %v2800_v20  ;;  %v4328_v43 = vpop.eup %4327  ;;  %vm6877_vm5 = vmmov %vm6872_vm1 }
 0xd05   :  { %v4330_v45 = vpop.eup %4329  ;;  %v2806_v50 = vpop.f32.mrf.mxu2 }
 0xd06   :  { %3963 = vmatmul.msk.f32.gmra.mxu3 %vm6862_vm2, %v2414_v46  ;;  %v2820_v44 = vmul.f32 %v4330_v45, %v2803_v11  ;;  %v2302_v39 = vpop.xlane.xlu1 %2301  ;;  %vm6878_vm2 = vmmov %vm6872_vm1 }
 0xd09   :  { %v4332_v25 = vpop.eup %4331 }
 0xd0a   :  { %v2701_v35 = vpop.xlane.xlu0 %2700 }
 0xd0b   :  { %v2398_v23 = vpop.f32.mrf.mxu1  ;;  %4333 = vrcp.f32 %v2701_v35 }
 0xd0c   :  { %v2415_v0 = vmul.f32 %v4328_v43, %v2398_v23  ;;  %3999 = vmatmul.msk.f32.gmra.mxu1 %vm6863_vm14, %v2819_v4  ;;  %4335 = vrcp.f32 %v2299_v2  ;;  %vm6879_vm14 = vmmov %vm6872_vm1 }
 0xd0d   :  { %4337 = vrcp.f32 %v2704_v27  ;;  %v2809_v61 = vpop.f32.mrf.mxu2 }
 0xd0e   :  { %3964 = vmatmul.msk.f32.gmra.mxu3 %vm6864_vm0, %v2415_v0  ;;  %4339 = vrcp.f32 %v2302_v39  ;;  %vm6880_vm0 = vmmov %vm6872_vm1 }
 0xd11   :  { %v4334_v3 = vpop.eup %4333 }
 0xd12   :  { %v2821_v56 = vmul.f32 %v4334_v3, %v2806_v50  ;;  %v4336_v24 = vpop.eup %4335  ;;  %v2707_v59 = vpop.xlane.xlu0 %2706 }
 0xd13   :  { %v2401_v22 = vpop.f32.mrf.mxu1  ;;  %v4338_v62 = vpop.eup %4337  ;;  %4341 = vrcp.f32 %v2707_v59 }
 0xd14   :  { %v2416_v49 = vmul.f32 %v4332_v25, %v2401_v22  ;;  %4000 = vmatmul.msk.f32.gmra.mxu1 %vm6865_vm4, %v2820_v44  ;;  %v2822_v53 = vmul.f32 %v4338_v62, %v2809_v61  ;;  %v4340_v14 = vpop.eup %4339  ;;  %vm6881_vm4 = vmmov %vm6880_vm0 }
 0xd15   :  { %v2812_v29 = vpop.f32.mrf.mxu2 }
 0xd16   :  { %3965 = vmatmul.msk.f32.gmra.mxu3 %vm6866_vm8, %v2416_v49  ;;  %vm6882_vm8 = vmmov %vm6880_vm0 }
 0xd19   :  { %v4342_v10 = vpop.eup %4341 }
 0xd1a   :  { %v2823_v60 = vmul.f32 %v4342_v10, %v2812_v29 }
 0xd1b   :  { %v2404_v54 = vpop.f32.mrf.mxu1 }
 0xd1c   :  { %v2417_v40 = vmul.f32 %v4336_v24, %v2404_v54  ;;  %4001 = vmatmul.msk.f32.gmra.mxu1 %vm6867_vm15, %v2821_v56  ;;  %vm6883_vm15 = vmmov %vm6880_vm0 }
 0xd1e   :  { %3966 = vmatmul.msk.f32.gmra.mxu3 %vm6868_vm13, %v2417_v40  ;;  %vm6884_vm13 = vmmov %vm6880_vm0 }
 0xd23   :  { %v2407_v6 = vpop.f32.mrf.mxu1 }
 0xd24   :  { %v2418_v63 = vmul.f32 %v4340_v14, %v2407_v6  ;;  %4002 = vmatmul.msk.f32.gmra.mxu1 %vm6869_vm6, %v2822_v53  ;;  %vm6885_vm6 = vmmov %vm6880_vm0 }
 0xd26   :  { %3967 = vmatmul.msk.f32.gmra.mxu3 %vm6870_vm10, %v2418_v63  ;;  %vm6886_vm10 = vmmov %vm6880_vm0 }
 0xd2c   :  { %4003 = vmatmul.msk.f32.gmra.mxu1 %vm6871_vm7, %v2823_v60  ;;  %vm6887_vm7 = vmmov %vm6880_vm0 }
 0xd36   :  { %v2870_v9 = vpop.f32.mrf.mxu1 }
 0xd3e   :  { %v2873_v15 = vpop.f32.mrf.mxu1 }
 0xd4c   :  { %v2465_v16 = vpop.f32.mrf.mxu3 }
 0xd4d   :  { %v2493_v8 = vadd.f32 %v5992_v52, %v2465_v16 }
 0xd4f   :  { %v2897_v34 = vadd.f32 %v2870_v9, %v2493_v8 }
 0xd51   :  { %v2906_v31 = vadd.f32 %v2897_v34, %v5578_v13 }
 0xd53   :  { %v2917_v41 = vsel %vm6872_vm1, %v2906_v31, 0.0  ;;  %vm6888_vm1 = vmmov %vm6880_vm0 }
 0xd54   :  { %v2468_v19 = vpop.f32.mrf.mxu3  ;;  %2918 = vadd.xlane.f32.xlu1 %v2917_v41 }
 0xd55   :  { %v2494_v47 = vadd.f32 %v5992_v52, %v2468_v19 }
 0xd57   :  { %v2898_v5 = vadd.f32 %v2873_v15, %v2494_v47 }
 0xd59   :  { %v2907_v17 = vadd.f32 %v2898_v5, %v5585_v38 }
 0xd5b   :  { %v2920_v36 = vsel %vm6873_vm9, %v2907_v17, 0.0 }
 0xd5c   :  { %2921 = vadd.xlane.f32.xlu2 %v2920_v36 }
 0xd75   :  { %v2471_v51 = vpop.f32.mrf.mxu3  ;;  %v2876_v12 = vpop.f32.mrf.mxu1 }
 0xd76   :  { %v2495_v1 = vadd.f32 %v5992_v52, %v2471_v51 }
 0xd78   :  { %v2899_v18 = vadd.f32 %v2876_v12, %v2495_v1 }
 0xd7a   :  { %v2908_v13 = vadd.f32 %v2899_v18, %v5593_v26 }
 0xd7c   :  { %v2923_v7 = vsel %vm6874_vm12, %v2908_v13, 0.0 }
 0xd7d   :  { %2924 = vadd.xlane.f32.xlu0 %v2923_v7 }
 0xd81   :  { %v2474_v20 = vpop.f32.mrf.mxu3  ;;  %v2879_v37 = vpop.f32.mrf.mxu1 }
 0xd82   :  { %v2496_v21 = vadd.f32 %v5992_v52, %v2474_v20 }
 0xd84   :  { %v2900_v46 = vadd.f32 %v2879_v37, %v2496_v21 }
 0xd86   :  { %v2909_v38 = vadd.f32 %v2900_v46, %v5601_v57 }
 0xd88   :  { %v2926_v28 = vsel %vm6875_vm3, %v2909_v38, 0.0 }
 0xd89   :  { %v2477_v32 = vpop.f32.mrf.mxu3  ;;  %2927 = vadd.xlane.f32.xlu1 %v2926_v28  ;;  %v2882_v4 = vpop.f32.mrf.mxu1 }
 0xd8a   :  { %v2497_v43 = vadd.f32 %v5992_v52, %v2477_v32 }
 0xd8c   :  { %v2901_v11 = vadd.f32 %v2882_v4, %v2497_v43 }
 0xd8e   :  { %v2910_v26 = vadd.f32 %v2901_v11, %v5609_v58 }
 0xd90   :  { %v2929_v23 = vsel %vm6876_vm11, %v2910_v26, 0.0  ;;  %vm6889_vm11 = vmmov %vm6880_vm0 }
 0xd91   :  { %v2480_v0 = vpop.f32.mrf.mxu3  ;;  %2930 = vadd.xlane.f32.xlu2 %v2929_v23  ;;  %v2885_v35 = vpop.f32.mrf.mxu1 }
 0xd92   :  { %v2498_v45 = vadd.f32 %v5992_v52, %v2480_v0 }
 0xd94   :  { %v2902_v2 = vadd.f32 %v2885_v35, %v2498_v45 }
 0xd96   :  { %v2911_v57 = vadd.f32 %v2902_v2, %v5616_v30 }
 0xd98   :  { %v2932_v44 = vsel %vm6877_vm5, %v2911_v57, 0.0 }
 0xd99   :  { %v2483_v25 = vpop.f32.mrf.mxu3  ;;  %2933 = vadd.xlane.f32.xlu0 %v2932_v44  ;;  %v2888_v49 = vpop.f32.mrf.mxu1 }
 0xd9a   :  { %v2499_v22 = vadd.f32 %v5992_v52, %v2483_v25 }
 0xd9c   :  { %v2903_v50 = vadd.f32 %v2888_v49, %v2499_v22 }
 0xd9e   :  { %v2912_v58 = vadd.f32 %v2903_v50, %v5623_v48 }
 0xda0   :  { %v2935_v3 = vsel %vm6878_vm2, %v2912_v58, 0.0 }
 0xda1   :  { %2936 = vadd.xlane.f32.xlu2 %v2935_v3  ;;  %v2486_v27 = vpop.f32.mrf.mxu3  ;;  %v2891_v54 = vpop.f32.mrf.mxu1 }
 0xda2   :  { %v2500_v24 = vadd.f32 %v5992_v52, %v2486_v27 }
 0xda4   :  { %v2904_v59 = vadd.f32 %v2891_v54, %v2500_v24 }
 0xda6   :  { %v2913_v14 = vadd.f32 %v2904_v59, %v5632_v42 }
 0xda8   :  { %v2938_v16 = vsel %vm6881_vm4, %v2913_v14, 0.0  ;;  %vm6890_vm4 = vmmov %vm6880_vm0 }
 0xda9   :  { %v2489_v62 = vpop.f32.mrf.mxu3  ;;  %v2894_v29 = vpop.f32.mrf.mxu1 }
 0xdaa   :  { %v2501_v6 = vadd.f32 %v5992_v52, %v2489_v62 }
 0xdac   :  { %v2905_v60 = vadd.f32 %v2894_v29, %v2501_v6  ;;  %v6086_v6 = vld [vmem:[%s6553_s2 + $0xf] ss:$0 sm:$0xff] }
 0xdae   :  { %v2914_v8 = vadd.f32 %v2905_v60, %v5639_v55  ;;  %v6092_v60 = vld [vmem:[%s6553_s2 + $0xd] ss:$0 sm:$0xff] }
 0xdb0   :  { %v2941_v34 = vsel %vm6882_vm8, %v2914_v8, 0.0 }
 0xdc7   :  { %v2919_v39 = vpop.xlane.xlu1 %2918 }
 0xdc8   :  { %v2944_v56 = vmul.f32 %v2919_v39, %v5086_v33 }
 0xdca   :  { %v6017_v30 = vsub.f32 %v2906_v31, %v2944_v56 }
 0xdcc   :  { %v2962_v40 = vmul.f32 %v6017_v30, %v6017_v30 }
 0xdce   :  { %v2971_v61 = vsel %vm6879_vm14, %v2962_v40, 0.0 }
 0xdcf   :  { %v2922_v48 = vpop.xlane.xlu2 %2921  ;;  %2972 = vadd.xlane.f32.xlu1 %v2971_v61  ;;  %v6079_v61 = vld [vmem:[%s6553_s2 + $0xe] ss:$0 sm:$0xff] }
 0xdd0   :  { %v2945_v53 = vmul.f32 %v2922_v48, %v5086_v33 }
 0xdd2   :  { %v6025_v63 = vsub.f32 %v2907_v17, %v2945_v53 }
 0xdd4   :  { %v2963_v10 = vmul.f32 %v6025_v63, %v6025_v63 }
 0xdd6   :  { %v2974_v9 = vsel %vm6880_vm0, %v2963_v10, 0.0 }
 0xdd7   :  { %2975 = vadd.xlane.f32.xlu0 %v2974_v9  ;;  %2939 = vadd.xlane.f32.xlu1 %v2938_v16 }
 0xddf   :  { %2942 = vadd.xlane.f32.xlu0 %v2941_v34 }
 0xdf0   :  { %v2925_v42 = vpop.xlane.xlu0 %2924 }
 0xdf1   :  { %v2946_v52 = vmul.f32 %v2925_v42, %v5086_v33 }
 0xdf3   :  { %v6034_v31 = vsub.f32 %v2908_v13, %v2946_v52 }
 0xdf5   :  { %v2964_v41 = vmul.f32 %v6034_v31, %v6034_v31 }
 0xdf7   :  { %v2977_v19 = vsel %vm6883_vm15, %v2964_v41, 0.0 }
 0xdf8   :  { %2978 = vadd.xlane.f32.xlu2 %v2977_v19 }
 0xdfc   :  { %v2928_v47 = vpop.xlane.xlu1 %2927 }
 0xdfd   :  { %v2947_v15 = vmul.f32 %v2928_v47, %v5086_v33 }
 0xdff   :  { %v6040_v5 = vsub.f32 %v2909_v38, %v2947_v15 }
 0xe01   :  { %v2965_v55 = vmul.f32 %v6040_v5, %v6040_v5 }
 0xe03   :  { %v2980_v17 = vsel %vm6884_vm13, %v2965_v55, 0.0 }
 0xe04   :  { %v2931_v36 = vpop.xlane.xlu2 %2930  ;;  %2981 = vadd.xlane.f32.xlu1 %v2980_v17 }
 0xe05   :  { %v2948_v51 = vmul.f32 %v2931_v36, %v5086_v33 }
 0xe07   :  { %v6046_v1 = vsub.f32 %v2910_v26, %v2948_v51 }
 0xe09   :  { %v2966_v12 = vmul.f32 %v6046_v1, %v6046_v1 }
 0xe0b   :  { %v2983_v18 = vsel %vm6885_vm6, %v2966_v12, 0.0 }
 0xe0c   :  { %v2934_v13 = vpop.xlane.xlu0 %2933  ;;  %2984 = vadd.xlane.f32.xlu2 %v2983_v18 }
 0xe0d   :  { %v2949_v7 = vmul.f32 %v2934_v13, %v5086_v33 }
 0xe0f   :  { %v6052_v20 = vsub.f32 %v2911_v57, %v2949_v7 }
 0xe11   :  { %v2967_v37 = vmul.f32 %v6052_v20, %v6052_v20 }
 0xe13   :  { %v2986_v21 = vsel %vm6886_vm10, %v2967_v37, 0.0  ;;  %vm6891_vm10 = vmmov %vm6880_vm0 }
 0xe14   :  { %v2937_v46 = vpop.xlane.xlu2 %2936  ;;  %2987 = vadd.xlane.f32.xlu0 %v2986_v21 }
 0xe15   :  { %v2950_v38 = vmul.f32 %v2937_v46, %v5086_v33 }
 0xe17   :  { %v6058_v28 = vsub.f32 %v2912_v58, %v2950_v38 }
 0xe19   :  { %v2968_v32 = vmul.f32 %v6058_v28, %v6058_v28 }
 0xe1b   :  { %v2989_v4 = vsel %vm6887_vm7, %v2968_v32, 0.0 }
 0xe1c   :  { %2990 = vadd.xlane.f32.xlu1 %v2989_v4 }
 0xe42   :  { %v2973_v43 = vpop.xlane.xlu1 %2972 }
 0xe43   :  { %v2998_v11 = vmul.f32 %v2973_v43, %v5086_v33 }
 0xe45   :  { %v3007_v26 = vadd.f32 1e-05, %v2998_v11 }
 0xe47   :  { %4343 = vrsqrt.f32 %v3007_v26  ;;  %vm3022_vm12 = vweird.f32 %v3007_v26 }
 0xe4a   :  { %v2976_v23 = vpop.xlane.xlu0 %2975  ;;  %v2940_v0 = vpop.xlane.xlu1 %2939 }
 0xe4b   :  { %v2999_v35 = vmul.f32 %v2976_v23, %v5086_v33  ;;  %v2951_v45 = vmul.f32 %v2940_v0, %v5086_v33 }
 0xe4d   :  { %v4344_v2 = vpop.eup %4343  ;;  %v3008_v57 = vadd.f32 1e-05, %v2999_v35  ;;  %v6066_v44 = vsub.f32 %v2913_v14, %v2951_v45 }
 0xe4e   :  { %v3017_v25 = vmul.f32 %v4344_v2, %v3007_v26  ;;  %vm3023_vm9 = vweird.f32 %v4344_v2 }
 0xe4f   :  { %4345 = vrsqrt.f32 %v3008_v57  ;;  %v2969_v22 = vmul.f32 %v6066_v44, %v6066_v44  ;;  %vm3024_vm3 = vmor %vm3022_vm12, %vm3023_vm9  ;;  %vm3032_vm2 = vweird.f32 %v3008_v57 }
 0xe50   :  { %v3018_v49 = vmul.f32 %v4344_v2, %v3017_v25 }
 0xe51   :  { %v2992_v50 = vsel %vm6888_vm1, %v2969_v22, 0.0 }
 0xe52   :  { %v3019_v58 = vmul.f32 0.5, %v3018_v49  ;;  %2993 = vadd.xlane.f32.xlu2 %v2992_v50  ;;  %v2943_v3 = vpop.xlane.xlu0 %2942 }
 0xe53   :  { %v2952_v27 = vmul.f32 %v2943_v3, %v5086_v33 }
 0xe54   :  { %v3020_v39 = vsub.f32 1.5, %v3019_v58 }
 0xe55   :  { %v4346_v56 = vpop.eup %4345  ;;  %v6072_v24 = vsub.f32 %v2914_v8, %v2952_v27 }
 0xe56   :  { %v3021_v54 = vmul.f32 %v4344_v2, %v3020_v39  ;;  %v3027_v40 = vmul.f32 %v4346_v56, %v3008_v57  ;;  %vm3033_vm5 = vweird.f32 %v4346_v56 }
 0xe57   :  { %v2970_v59 = vmul.f32 %v6072_v24, %v6072_v24  ;;  %vm3034_vm14 = vmor %vm3032_vm2, %vm3033_vm5 }
 0xe58   :  { %v3025_v62 = vsel %vm3024_vm3, %v4344_v2, %v3021_v54  ;;  %v3028_v48 = vmul.f32 %v4346_v56, %v3027_v40 }
 0xe59   :  { %v2995_v53 = vsel %vm6889_vm11, %v2970_v59, 0.0  ;;  %v3106_v14 = vmul.f32 %v3025_v62, %v6017_v30  ;;  %vm6892_vm11 = vmmov %vm6880_vm0 }
 0xe5a   :  { %v3029_v10 = vmul.f32 0.5, %v3028_v48  ;;  %2996 = vadd.xlane.f32.xlu0 %v2995_v53 }
 0xe5b   :  { %v3116_v29 = vmul.f32 %v6079_v61, %v3106_v14 }
 0xe5c   :  { %v3030_v9 = vsub.f32 1.5, %v3029_v10 }
 0xe5d   :  { %v3126_v16 = vadd.f32 %v6086_v6, %v3116_v29 }
 0xe5e   :  { %v3031_v8 = vmul.f32 %v4346_v56, %v3030_v9 }
 0xe5f   :  { %v6096_v30 = vadd.f32 %v6092_v60, %v3126_v16 }
 0xe60   :  { %v3035_v34 = vsel %vm3034_vm14, %v4346_v56, %v3031_v8 }
 0xe61   :  { %v3148_v42 = vsel %vm6880_vm0, %v6096_v30, 0.0  ;;  %v3107_v52 = vmul.f32 %v3035_v34, %v6025_v63 }
 0xe62   :  { %3149 = vadd.xlane.f32.xlu1 %v3148_v42 }
 0xe63   :  { %v3117_v41 = vmul.f32 %v6079_v61, %v3107_v52 }
 0xe65   :  { %v3127_v19 = vadd.f32 %v6086_v6, %v3117_v41 }
 0xe67   :  { %v6104_v47 = vadd.f32 %v6092_v60, %v3127_v19 }
 0xe69   :  { %v3151_v15 = vsel %vm6890_vm4, %v6104_v47, 0.0 }
 0xe6a   :  { %3152 = vadd.xlane.f32.xlu2 %v3151_v15 }
 0xe6b   :  { %v2979_v55 = vpop.xlane.xlu2 %2978 }
 0xe6c   :  { %v3000_v17 = vmul.f32 %v2979_v55, %v5086_v33 }
 0xe6e   :  { %v3009_v36 = vadd.f32 1e-05, %v3000_v17 }
 0xe70   :  { %4347 = vrsqrt.f32 %v3009_v36  ;;  %vm3042_vm15 = vweird.f32 %v3009_v36 }
 0xe76   :  { %v4348_v51 = vpop.eup %4347 }
 0xe77   :  { %v3037_v12 = vmul.f32 %v4348_v51, %v3009_v36  ;;  %v2982_v63 = vpop.xlane.xlu1 %2981  ;;  %vm3043_vm8 = vweird.f32 %v4348_v51 }
 0xe78   :  { %v3001_v18 = vmul.f32 %v2982_v63, %v5086_v33  ;;  %vm3044_vm13 = vmor %vm3042_vm15, %vm3043_vm8 }
 0xe79   :  { %v3038_v13 = vmul.f32 %v4348_v51, %v3037_v12 }
 0xe7a   :  { %v3010_v7 = vadd.f32 1e-05, %v3001_v18 }
 0xe7b   :  { %v3039_v37 = vmul.f32 0.5, %v3038_v13 }
 0xe7c   :  { %4349 = vrsqrt.f32 %v3010_v7  ;;  %vm3052_vm7 = vweird.f32 %v3010_v7 }
 0xe7d   :  { %v3040_v21 = vsub.f32 1.5, %v3039_v37 }
 0xe7f   :  { %v3041_v46 = vmul.f32 %v4348_v51, %v3040_v21  ;;  %v2985_v38 = vpop.xlane.xlu2 %2984 }
 0xe80   :  { %v3002_v32 = vmul.f32 %v2985_v38, %v5086_v33 }
 0xe81   :  { %v3045_v4 = vsel %vm3044_vm13, %v4348_v51, %v3041_v46  ;;  %vm6893_vm13 = vmmov %vm6880_vm0 }
 0xe82   :  { %v4350_v43 = vpop.eup %4349  ;;  %v3011_v11 = vadd.f32 1e-05, %v3002_v32  ;;  %v3108_v26 = vmul.f32 %v3045_v4, %v6034_v31 }
 0xe83   :  { %v3047_v23 = vmul.f32 %v4350_v43, %v3010_v7  ;;  %vm3053_vm6 = vweird.f32 %v4350_v43 }
 0xe84   :  { %4351 = vrsqrt.f32 %v3011_v11  ;;  %v3118_v0 = vmul.f32 %v6079_v61, %v3108_v26  ;;  %vm3054_vm1 = vmor %vm3052_vm7, %vm3053_vm6  ;;  %vm3062_vm12 = vweird.f32 %v3011_v11 }
 0xe85   :  { %v3048_v35 = vmul.f32 %v4350_v43, %v3047_v23  ;;  %vm6894_vm6 = vmmov %vm6880_vm0 }
 0xe86   :  { %v3128_v45 = vadd.f32 %v6086_v6, %v3118_v0 }
 0xe87   :  { %v3049_v2 = vmul.f32 0.5, %v3048_v35  ;;  %v2988_v57 = vpop.xlane.xlu0 %2987 }
 0xe88   :  { %v3003_v25 = vmul.f32 %v2988_v57, %v5086_v33  ;;  %v6116_v22 = vadd.f32 %v6092_v60, %v3128_v45 }
 0xe89   :  { %v3050_v49 = vsub.f32 1.5, %v3049_v2 }
 0xe8a   :  { %v4352_v50 = vpop.eup %4351  ;;  %v3012_v58 = vadd.f32 1e-05, %v3003_v25  ;;  %v3154_v31 = vsel %vm6891_vm10, %v6116_v22, 0.0 }
 0xe8b   :  { %v3051_v3 = vmul.f32 %v4350_v43, %v3050_v49  ;;  %v3057_v27 = vmul.f32 %v4352_v50, %v3011_v11  ;;  %3155 = vadd.xlane.f32.xlu0 %v3154_v31  ;;  %vm3063_vm9 = vweird.f32 %v4352_v50 }
 0xe8c   :  { %4353 = vrsqrt.f32 %v3012_v58  ;;  %vm3064_vm3 = vmor %vm3062_vm12, %vm3063_vm9  ;;  %vm3072_vm2 = vweird.f32 %v3012_v58 }
 0xe8d   :  { %v3055_v39 = vsel %vm3054_vm1, %v4350_v43, %v3051_v3  ;;  %v3058_v56 = vmul.f32 %v4352_v50, %v3057_v27  ;;  %vm6895_vm9 = vmmov %vm6880_vm0 }
 0xe8e   :  { %v3109_v54 = vmul.f32 %v3055_v39, %v6040_v5 }
 0xe8f   :  { %v3059_v40 = vmul.f32 0.5, %v3058_v56  ;;  %v2991_v59 = vpop.xlane.xlu1 %2990 }
 0xe90   :  { %v3004_v62 = vmul.f32 %v2991_v59, %v5086_v33  ;;  %v3119_v48 = vmul.f32 %v6079_v61, %v3109_v54 }
 0xe91   :  { %v3060_v53 = vsub.f32 1.5, %v3059_v40 }
 0xe92   :  { %v4354_v14 = vpop.eup %4353  ;;  %v3013_v10 = vadd.f32 1e-05, %v3004_v62  ;;  %v3129_v29 = vadd.f32 %v6086_v6, %v3119_v48 }
 0xe93   :  { %v3061_v9 = vmul.f32 %v4352_v50, %v3060_v53  ;;  %v3067_v16 = vmul.f32 %v4354_v14, %v3012_v58  ;;  %vm3073_vm5 = vweird.f32 %v4354_v14 }
 0xe94   :  { %4355 = vrsqrt.f32 %v3013_v10  ;;  %v6125_v8 = vadd.f32 %v6092_v60, %v3129_v29  ;;  %vm3074_vm14 = vmor %vm3072_vm2, %vm3073_vm5  ;;  %vm3082_vm8 = vweird.f32 %v3013_v10 }
 0xe95   :  { %v3065_v5 = vsel %vm3064_vm3, %v4352_v50, %v3061_v9  ;;  %v3068_v34 = vmul.f32 %v4354_v14, %v3067_v16  ;;  %vm6896_vm5 = vmmov %vm6880_vm0 }
 0xe96   :  { %v3157_v42 = vsel %vm6892_vm11, %v6125_v8, 0.0  ;;  %v3110_v52 = vmul.f32 %v3065_v5, %v6046_v1  ;;  %vm6897_vm2 = vmmov %vm6880_vm0 }
 0xe97   :  { %v3069_v41 = vmul.f32 0.5, %v3068_v34  ;;  %3158 = vadd.xlane.f32.xlu1 %v3157_v42 }
 0xe98   :  { %v3120_v19 = vmul.f32 %v6079_v61, %v3110_v52 }
 0xe99   :  { %v3070_v15 = vsub.f32 1.5, %v3069_v41 }
 0xe9a   :  { %v4356_v55 = vpop.eup %4355  ;;  %v3130_v17 = vadd.f32 %v6086_v6, %v3120_v19 }
 0xe9b   :  { %v3071_v36 = vmul.f32 %v4354_v14, %v3070_v15  ;;  %v3077_v51 = vmul.f32 %v4356_v55, %v3013_v10  ;;  %vm3083_vm4 = vweird.f32 %v4356_v55 }
 0xe9c   :  { %v6133_v12 = vadd.f32 %v6092_v60, %v3130_v17  ;;  %vm3084_vm15 = vmor %vm3082_vm8, %vm3083_vm4 }
 0xe9d   :  { %v3075_v63 = vsel %vm3074_vm14, %v4354_v14, %v3071_v36  ;;  %v3078_v18 = vmul.f32 %v4356_v55, %v3077_v51  ;;  %vm6898_vm14 = vmmov %vm6880_vm0 }
 0xe9e   :  { %v3160_v1 = vsel %vm6880_vm0, %v6133_v12, 0.0  ;;  %v3111_v13 = vmul.f32 %v3075_v63, %v6052_v20  ;;  %vm6899_vm4 = vmmov %vm6880_vm0 }
 0xe9f   :  { %v3079_v7 = vmul.f32 0.5, %v3078_v18  ;;  %3161 = vadd.xlane.f32.xlu2 %v3160_v1  ;;  %vm6900_vm8 = vmmov %vm6880_vm0 }
 0xea0   :  { %v3121_v37 = vmul.f32 %v6079_v61, %v3111_v13 }
 0xea1   :  { %v3080_v21 = vsub.f32 1.5, %v3079_v7  ;;  %v3368_v7 = vld [vmem:[%s6551_s1 + $0x130] sm:$0xff] }
 0xea2   :  { %v3131_v46 = vadd.f32 %v6086_v6, %v3121_v37 }
 0xea3   :  { %v3081_v38 = vmul.f32 %v4356_v55, %v3080_v21 }
 0xea4   :  { %v6141_v32 = vadd.f32 %v6092_v60, %v3131_v46 }
 0xea5   :  { %v3085_v4 = vsel %vm3084_vm15, %v4356_v55, %v3081_v38  ;;  %vm6901_vm15 = vmmov %vm6880_vm0 }
 0xea6   :  { %v3163_v43 = vsel %vm6893_vm13, %v6141_v32, 0.0  ;;  %v3112_v20 = vmul.f32 %v3085_v4, %v6058_v28  ;;  %vm6902_vm13 = vmmov %vm6880_vm0 }
 0xea7   :  { %3164 = vadd.xlane.f32.xlu0 %v3163_v43 }
 0xea8   :  { %v3122_v11 = vmul.f32 %v6079_v61, %v3112_v20 }
 0xeaa   :  { %v3132_v26 = vadd.f32 %v6086_v6, %v3122_v11 }
 0xeac   :  { %v6149_v23 = vadd.f32 %v6092_v60, %v3132_v26 }
 0xeae   :  { %v3166_v0 = vsel %vm6894_vm6, %v6149_v23, 0.0  ;;  %vm6903_vm6 = vmmov %vm6880_vm0 }
 0xeaf   :  { %3167 = vadd.xlane.f32.xlu2 %v3166_v0 }
 0xec5   :  { %v2994_v35 = vpop.xlane.xlu2 %2993 }
 0xec6   :  { %v3005_v45 = vmul.f32 %v2994_v35, %v5086_v33 }
 0xec8   :  { %v3014_v2 = vadd.f32 1e-05, %v3005_v45 }
 0xeca   :  { %4357 = vrsqrt.f32 %v3014_v2  ;;  %vm3092_vm7 = vweird.f32 %v3014_v2 }
 0xecd   :  { %v2997_v57 = vpop.xlane.xlu0 %2996 }
 0xece   :  { %v3006_v28 = vmul.f32 %v2997_v57, %v5086_v33 }
 0xed0   :  { %v4358_v25 = vpop.eup %4357  ;;  %v3015_v49 = vadd.f32 1e-05, %v3006_v28 }
 0xed1   :  { %v3087_v50 = vmul.f32 %v4358_v25, %v3014_v2  ;;  %vm3093_vm10 = vweird.f32 %v4358_v25 }
 0xed2   :  { %4359 = vrsqrt.f32 %v3015_v49  ;;  %vm3094_vm1 = vmor %vm3092_vm7, %vm3093_vm10  ;;  %vm3102_vm3 = vweird.f32 %v3015_v49 }
 0xed3   :  { %v3088_v58 = vmul.f32 %v4358_v25, %v3087_v50 }
 0xed5   :  { %v3089_v31 = vmul.f32 0.5, %v3088_v58  ;;  %v3150_v3 = vpop.xlane.xlu1 %3149 }
 0xed6   :  { %v3175_v27 = vmul.f32 %v3150_v3, %v5086_v33 }
 0xed7   :  { %v3090_v39 = vsub.f32 1.5, %v3089_v31 }
 0xed8   :  { %v4360_v56 = vpop.eup %4359  ;;  %v6157_v54 = vsub.f32 %v6096_v30, %v3175_v27 }
 0xed9   :  { %v3091_v40 = vmul.f32 %v4358_v25, %v3090_v39  ;;  %v3097_v59 = vmul.f32 %v4360_v56, %v3015_v49  ;;  %vm3103_vm12 = vweird.f32 %v4360_v56  ;;  %v3366_v49 = vld [vmem:[%s6551_s1 + $0x120] sm:$0xff] }
 0xeda   :  { %v3193_v62 = vmul.f32 %v6157_v54, %v6157_v54  ;;  %vm3104_vm11 = vmor %vm3102_vm3, %vm3103_vm12 }
 0xedb   :  { %v3095_v48 = vsel %vm3094_vm1, %v4358_v25, %v3091_v40  ;;  %v3098_v53 = vmul.f32 %v4360_v56, %v3097_v59 }
 0xedc   :  { %v3202_v14 = vsel %vm6895_vm9, %v3193_v62, 0.0  ;;  %v3113_v10 = vmul.f32 %v3095_v48, %v6066_v44  ;;  %vm6904_vm9 = vmmov %vm6880_vm0 }
 0xedd   :  { %v3099_v29 = vmul.f32 0.5, %v3098_v53  ;;  %v3153_v9 = vpop.xlane.xlu2 %3152  ;;  %3203 = vadd.xlane.f32.xlu1 %v3202_v14 }
 0xede   :  { %v3176_v16 = vmul.f32 %v3153_v9, %v5086_v33  ;;  %v3123_v30 = vmul.f32 %v6079_v61, %v3113_v10 }
 0xedf   :  { %v3100_v5 = vsub.f32 1.5, %v3099_v29 }
 0xee0   :  { %v6166_v34 = vsub.f32 %v6104_v47, %v3176_v16  ;;  %v3133_v42 = vadd.f32 %v6086_v6, %v3123_v30 }
 0xee1   :  { %v3101_v52 = vmul.f32 %v4360_v56, %v3100_v5 }
 0xee2   :  { %v3144_v41 = vadd.f32 %v6092_v60, %v3133_v42  ;;  %v3194_v44 = vmul.f32 %v6166_v34, %v6166_v34 }
 0xee3   :  { %v3105_v19 = vsel %vm3104_vm11, %v4360_v56, %v3101_v52 }
 0xee4   :  { %v3169_v15 = vsel %vm6896_vm5, %v3144_v41, 0.0  ;;  %v3205_v55 = vsel %vm6897_vm2, %v3194_v44, 0.0  ;;  %v3114_v17 = vmul.f32 %v3105_v19, %v6072_v24  ;;  %vm6905_vm5 = vmmov %vm6880_vm0 }
 0xee5   :  { %3170 = vadd.xlane.f32.xlu1 %v3169_v15  ;;  %3206 = vadd.xlane.f32.xlu0 %v3205_v55  ;;  %v6251_v55 = vld [vmem:[%s6553_s2 + $0x11] ss:$0 sm:$0xff]  ;;  %vm6906_vm2 = vmmov %vm6880_vm0 }
 0xee6   :  { %v3124_v47 = vmul.f32 %v6079_v61, %v3114_v17 }
 0xee8   :  { %v3134_v36 = vadd.f32 %v6086_v6, %v3124_v47 }
 0xeea   :  { %v6178_v51 = vadd.f32 %v6092_v60, %v3134_v36  ;;  %v3369_v60 = vld [vmem:[%s6551_s1 + $0x138] sm:$0xff] }
 0xeeb   :  { %3411 = vmatpush.msra.mxu3 %v3369_v60 }
 0xeec   :  { %v3172_v63 = vsel %vm6898_vm14, %v6178_v51, 0.0 }
 0xeed   :  { %3173 = vadd.xlane.f32.xlu0 %v3172_v63  ;;  %3412 = vmatpush.msra.mxu3 %v3368_v7 }
 0xefe   :  { %v3156_v18 = vpop.xlane.xlu0 %3155 }
 0xeff   :  { %v3177_v1 = vmul.f32 %v3156_v18, %v5086_v33 }
 0xf01   :  { %v6184_v13 = vsub.f32 %v6116_v22, %v3177_v1 }
 0xf03   :  { %v3195_v24 = vmul.f32 %v6184_v13, %v6184_v13 }
 0xf05   :  { %v3208_v61 = vsel %vm6880_vm0, %v3195_v24, 0.0 }
 0xf06   :  { %3209 = vadd.xlane.f32.xlu2 %v3208_v61 }
 0xf0a   :  { %v3159_v6 = vpop.xlane.xlu1 %3158 }
 0xf0b   :  { %v3178_v37 = vmul.f32 %v3159_v6, %v5086_v33 }
 0xf0d   :  { %v6197_v22 = vsub.f32 %v6125_v8, %v3178_v37 }
 0xf0f   :  { %v3196_v21 = vmul.f32 %v6197_v22, %v6197_v22 }
 0xf11   :  { %v3211_v46 = vsel %vm6899_vm4, %v3196_v21, 0.0 }
 0xf12   :  { %v3162_v38 = vpop.xlane.xlu2 %3161  ;;  %3212 = vadd.xlane.f32.xlu1 %v3211_v46 }
 0xf13   :  { %v3179_v4 = vmul.f32 %v3162_v38, %v5086_v33 }
 0xf15   :  { %v6204_v43 = vsub.f32 %v6133_v12, %v3179_v4 }
 0xf17   :  { %v3197_v20 = vmul.f32 %v6204_v43, %v6204_v43 }
 0xf19   :  { %v3214_v11 = vsel %vm6900_vm8, %v3197_v20, 0.0  ;;  %vm6907_vm8 = vmmov %vm6906_vm2 }
 0xf1a   :  { %3215 = vadd.xlane.f32.xlu2 %v3214_v11  ;;  %v3165_v8 = vpop.xlane.xlu0 %3164 }
 0xf1b   :  { %v3180_v26 = vmul.f32 %v3165_v8, %v5086_v33 }
 0xf1d   :  { %v6211_v0 = vsub.f32 %v6141_v32, %v3180_v26  ;;  %v3367_v32 = vld [vmem:[%s6551_s1 + $0x128] sm:$0xff] }
 0xf1e   :  { %3413 = vmatpush.msra.mxu3 %v3367_v32 }
 0xf1f   :  { %v3198_v35 = vmul.f32 %v6211_v0, %v6211_v0 }
 0xf20   :  { %3414 = vmatpush.msra.mxu3 %v3366_v49 }
 0xf21   :  { %v3217_v45 = vsel %vm6901_vm15, %v3198_v35, 0.0 }
 0xf22   :  { %v3168_v2 = vpop.xlane.xlu2 %3167  ;;  %3218 = vadd.xlane.f32.xlu0 %v3217_v45 }
 0xf23   :  { %v3181_v12 = vmul.f32 %v3168_v2, %v5086_v33 }
 0xf25   :  { %v6218_v57 = vsub.f32 %v6149_v23, %v3181_v12 }
 0xf27   :  { %v3199_v28 = vmul.f32 %v6218_v57, %v6218_v57 }
 0xf29   :  { %v3220_v25 = vsel %vm6902_vm13, %v3199_v28, 0.0 }
 0xf2a   :  { %3221 = vadd.xlane.f32.xlu1 %v3220_v25 }
 0xf50   :  { %v3204_v50 = vpop.xlane.xlu1 %3203 }
 0xf51   :  { %v3229_v23 = vmul.f32 %v3204_v50, %v5086_v33 }
 0xf53   :  { %v3238_v58 = vadd.f32 1e-05, %v3229_v23 }
 0xf55   :  { %4361 = vrsqrt.f32 %v3238_v58  ;;  %vm3253_vm7 = vweird.f32 %v3238_v58 }
 0xf58   :  { %v3171_v31 = vpop.xlane.xlu1 %3170  ;;  %v3207_v3 = vpop.xlane.xlu0 %3206 }
 0xf59   :  { %v3182_v27 = vmul.f32 %v3171_v31, %v5086_v33  ;;  %v3230_v39 = vmul.f32 %v3207_v3, %v5086_v33 }
 0xf5b   :  { %v4362_v56 = vpop.eup %4361  ;;  %v6232_v40 = vsub.f32 %v3144_v41, %v3182_v27  ;;  %v3239_v59 = vadd.f32 1e-05, %v3230_v39  ;;  %v6244_v41 = vld [vmem:[%s6553_s2 + $0x10] ss:$0 sm:$0xff] }
 0xf5c   :  { %v3248_v62 = vmul.f32 %v4362_v56, %v3238_v58  ;;  %vm3254_vm10 = vweird.f32 %v4362_v56 }
 0xf5d   :  { %4363 = vrsqrt.f32 %v3239_v59  ;;  %v3200_v48 = vmul.f32 %v6232_v40, %v6232_v40  ;;  %vm3255_vm1 = vmor %vm3253_vm7, %vm3254_vm10  ;;  %vm3263_vm3 = vweird.f32 %v3239_v59 }
 0xf5e   :  { %v3249_v53 = vmul.f32 %v4362_v56, %v3248_v62  ;;  %v3467_v62 = vld [vmem:[%s6551_s1 + $0x1b8] sm:$0xff] }
 0xf5f   :  { %v3223_v14 = vsel %vm6903_vm6, %v3200_v48, 0.0  ;;  %v3466_v48 = vld [vmem:[%s6551_s1 + $0x1b0] sm:$0xff]  ;;  %3470 = vmatpush.msra.mxu0 %v3467_v62 }
 0xf60   :  { %v3250_v10 = vmul.f32 0.5, %v3249_v53  ;;  %3224 = vadd.xlane.f32.xlu2 %v3223_v14  ;;  %v3174_v29 = vpop.xlane.xlu0 %3173 }
 0xf61   :  { %v3183_v9 = vmul.f32 %v3174_v29, %v5086_v33  ;;  %v3465_v29 = vld [vmem:[%s6551_s1 + $0x1a8] sm:$0xff]  ;;  %3471 = vmatpush.msra.mxu0 %v3466_v48 }
 0xf62   :  { %v3251_v16 = vsub.f32 1.5, %v3250_v10 }
 0xf63   :  { %v4364_v30 = vpop.eup %4363  ;;  %v6239_v5 = vsub.f32 %v6178_v51, %v3183_v9  ;;  %3472 = vmatpush.msra.mxu0 %v3465_v29 }
 0xf64   :  { %v3252_v42 = vmul.f32 %v4362_v56, %v3251_v16  ;;  %v3258_v52 = vmul.f32 %v4364_v30, %v3239_v59  ;;  %vm3264_vm12 = vweird.f32 %v4364_v30 }
 0xf65   :  { %v3201_v44 = vmul.f32 %v6239_v5, %v6239_v5  ;;  %vm3265_vm11 = vmor %vm3263_vm3, %vm3264_vm12 }
 0xf66   :  { %v3256_v19 = vsel %vm3255_vm1, %v4362_v56, %v3252_v42  ;;  %v3259_v15 = vmul.f32 %v4364_v30, %v3258_v52 }
 0xf67   :  { %v3337_v17 = vmul.f32 %v3256_v19, %v6157_v54  ;;  %v3226_v47 = vsel %vm6904_vm9, %v3201_v44, 0.0  ;;  %vm6908_vm9 = vmmov %vm6906_vm2 }
 0xf68   :  { %v3260_v36 = vmul.f32 0.5, %v3259_v15  ;;  %3227 = vadd.xlane.f32.xlu0 %v3226_v47 }
 0xf69   :  { %v3347_v51 = vmul.f32 %v6244_v41, %v3337_v17 }
 0xf6a   :  { %v3261_v63 = vsub.f32 1.5, %v3260_v36 }
 0xf6b   :  { %v6257_v18 = vadd.f32 %v6251_v55, %v3347_v51 }
 0xf6c   :  { %v3262_v1 = vmul.f32 %v4364_v30, %v3261_v63 }
 0xf6d   :  { %4004 = vmatmul.msk.f32.vlgmr.msra.gmra.mxu3 %vm6905_vm5, %v6257_v18  ;;  %vm6909_vm5 = vmmov %vm6906_vm2 }
 0xf6e   :  { %v3266_v24 = vsel %vm3265_vm11, %v4364_v30, %v3262_v1 }
 0xf6f   :  { %v3338_v54 = vmul.f32 %v3266_v24, %v6166_v34 }
 0xf71   :  { %v3348_v61 = vmul.f32 %v6244_v41, %v3338_v54 }
 0xf73   :  { %v6264_v6 = vadd.f32 %v6251_v55, %v3348_v61 }
 0xf75   :  { %4005 = vmatmul.msk.f32.gmra.mxu3 %vm6906_vm2, %v6264_v6 }
 0xf79   :  { %v3210_v60 = vpop.xlane.xlu2 %3209 }
 0xf7a   :  { %v3231_v7 = vmul.f32 %v3210_v60, %v5086_v33 }
 0xf7c   :  { %v3240_v37 = vadd.f32 1e-05, %v3231_v7 }
 0xf7e   :  { %4365 = vrsqrt.f32 %v3240_v37  ;;  %vm3273_vm0 = vweird.f32 %v3240_v37 }
 0xf84   :  { %v4366_v21 = vpop.eup %4365 }
 0xf85   :  { %v3268_v46 = vmul.f32 %v4366_v21, %v3240_v37  ;;  %v3213_v38 = vpop.xlane.xlu1 %3212  ;;  %vm3274_vm14 = vweird.f32 %v4366_v21 }
 0xf86   :  { %v3232_v4 = vmul.f32 %v3213_v38, %v5086_v33  ;;  %vm3275_vm4 = vmor %vm3273_vm0, %vm3274_vm14 }
 0xf87   :  { %v3269_v20 = vmul.f32 %v4366_v21, %v3268_v46 }
 0xf88   :  { %v3241_v34 = vadd.f32 1e-05, %v3232_v4 }
 0xf89   :  { %v3270_v11 = vmul.f32 0.5, %v3269_v20 }
 0xf8a   :  { %4367 = vrsqrt.f32 %v3241_v34  ;;  %vm3283_vm13 = vweird.f32 %v3241_v34 }
 0xf8b   :  { %v3271_v8 = vsub.f32 1.5, %v3270_v11 }
 0xf8d   :  { %v3272_v26 = vmul.f32 %v4366_v21, %v3271_v8  ;;  %v3216_v35 = vpop.xlane.xlu2 %3215 }
 0xf8e   :  { %v3233_v45 = vmul.f32 %v3216_v35, %v5086_v33  ;;  %v3464_v35 = vld [vmem:[%s6551_s1 + $0x1a0] sm:$0xff] }
 0xf8f   :  { %v3276_v2 = vsel %vm3275_vm4, %v4366_v21, %v3272_v26  ;;  %vm6910_vm4 = vmmov %vm6909_vm5  ;;  %3473 = vmatpush.msra.mxu0 %v3464_v35 }
 0xf90   :  { %v4368_v12 = vpop.eup %4367  ;;  %v3339_v28 = vmul.f32 %v3276_v2, %v6184_v13  ;;  %v3242_v25 = vadd.f32 1e-05, %v3233_v45  ;;  %v3463_v45 = vld [vmem:[%s6551_s1 + $0x198] sm:$0xff]  ;;  %v3461_v2 = vld [vmem:[%s6551_s1 + $0x188] sm:$0xff] }
 0xf91   :  { %v3278_v32 = vmul.f32 %v4368_v12, %v3241_v34  ;;  %vm3284_vm15 = vweird.f32 %v4368_v12  ;;  %3474 = vmatpush.msra.mxu0 %v3463_v45 }
 0xf92   :  { %4369 = vrsqrt.f32 %v3242_v25  ;;  %v3349_v49 = vmul.f32 %v6244_v41, %v3339_v28  ;;  %vm3285_vm6 = vmor %vm3283_vm13, %vm3284_vm15  ;;  %vm3293_vm7 = vweird.f32 %v3242_v25  ;;  %v3459_v28 = vld [vmem:[%s6551_s1 + $0x178] sm:$0xff] }
 0xf93   :  { %v3279_v50 = vmul.f32 %v4368_v12, %v3278_v32  ;;  %v3457_v32 = vld [vmem:[%s6551_s1 + $0x168] sm:$0xff] }
 0xf94   :  { %v6274_v23 = vadd.f32 %v6251_v55, %v3349_v49  ;;  %v3456_v49 = vld [vmem:[%s6551_s1 + $0x160] sm:$0xff] }
 0xf95   :  { %v3280_v58 = vmul.f32 0.5, %v3279_v50  ;;  %v3219_v31 = vpop.xlane.xlu0 %3218  ;;  %v3455_v50 = vld [vmem:[%s6551_s1 + $0x158] sm:$0xff] }
 0xf96   :  { %v3234_v3 = vmul.f32 %v3219_v31, %v5086_v33  ;;  %4006 = vmatmul.msk.f32.gmra.mxu3 %vm6907_vm8, %v6274_v23  ;;  %vm6911_vm8 = vmmov %vm6910_vm4  ;;  %v3453_v31 = vld [vmem:[%s6551_s1 + $0x148] sm:$0xff] }
 0xf97   :  { %v3281_v27 = vsub.f32 1.5, %v3280_v58  ;;  %v3454_v58 = vld [vmem:[%s6551_s1 + $0x150] sm:$0xff] }
 0xf98   :  { %v4370_v39 = vpop.eup %4369  ;;  %v3243_v13 = vadd.f32 1e-05, %v3234_v3 }
 0xf99   :  { %v3282_v56 = vmul.f32 %v4368_v12, %v3281_v27  ;;  %v3288_v59 = vmul.f32 %v4370_v39, %v3242_v25  ;;  %vm3294_vm10 = vweird.f32 %v4370_v39  ;;  %v3458_v25 = vld [vmem:[%s6551_s1 + $0x170] sm:$0xff]  ;;  %v3452_v27 = vld [vmem:[%s6551_s1 + $0x140] sm:$0xff] }
 0xf9a   :  { %4371 = vrsqrt.f32 %v3243_v13  ;;  %vm3295_vm1 = vmor %vm3293_vm7, %vm3294_vm10  ;;  %vm3303_vm3 = vweird.f32 %v3243_v13 }
 0xf9b   :  { %v3286_v53 = vsel %vm3285_vm6, %v4368_v12, %v3282_v56  ;;  %v3289_v14 = vmul.f32 %v4370_v39, %v3288_v59  ;;  %v3460_v12 = vld [vmem:[%s6551_s1 + $0x180] sm:$0xff] }
 0xf9c   :  { %v3340_v10 = vmul.f32 %v3286_v53, %v6197_v22 }
 0xf9d   :  { %v3290_v9 = vmul.f32 0.5, %v3289_v14  ;;  %v3222_v16 = vpop.xlane.xlu1 %3221 }
 0xf9e   :  { %v3235_v30 = vmul.f32 %v3222_v16, %v5086_v33  ;;  %v3350_v42 = vmul.f32 %v6244_v41, %v3340_v10 }
 0xf9f   :  { %v3291_v52 = vsub.f32 1.5, %v3290_v9 }
 0xfa0   :  { %v4372_v44 = vpop.eup %4371  ;;  %v3244_v19 = vadd.f32 1e-05, %v3235_v30  ;;  %v6292_v15 = vadd.f32 %v6251_v55, %v3350_v42 }
 0xfa1   :  { %v3292_v22 = vmul.f32 %v4370_v39, %v3291_v52  ;;  %v3298_v17 = vmul.f32 %v4372_v44, %v3243_v13  ;;  %vm3304_vm12 = vweird.f32 %v4372_v44 }
 0xfa2   :  { %4373 = vrsqrt.f32 %v3244_v19  ;;  %4007 = vmatmul.msk.f32.gmra.mxu3 %vm6908_vm9, %v6292_v15  ;;  %vm3305_vm11 = vmor %vm3303_vm3, %vm3304_vm12  ;;  %vm3313_vm14 = vweird.f32 %v3244_v19 }
 0xfa3   :  { %v3296_v47 = vsel %vm3295_vm1, %v4370_v39, %v3292_v22  ;;  %v3299_v36 = vmul.f32 %v4372_v44, %v3298_v17  ;;  %vm6912_vm9 = vmmov %vm6910_vm4 }
 0xfa4   :  { %v3341_v51 = vmul.f32 %v3296_v47, %v6204_v43  ;;  %v4138_v47 = vld [vmem:[%s6553_s2 + $0x12] ss:$0 sm:$0xff]  ;;  %vm6913_vm12 = vmmov %vm6910_vm4 }
 0xfa5   :  { %v3300_v63 = vmul.f32 0.5, %v3299_v36  ;;  %vm6914_vm3 = vmmov %vm6910_vm4 }
 0xfa6   :  { %v3351_v1 = vmul.f32 %v6244_v41, %v3341_v51 }
 0xfa7   :  { %v3301_v24 = vsub.f32 1.5, %v3300_v63 }
 0xfa8   :  { %v4374_v54 = vpop.eup %4373  ;;  %v6299_v61 = vadd.f32 %v6251_v55, %v3351_v1 }
 0xfa9   :  { %v3302_v60 = vmul.f32 %v4372_v44, %v3301_v24  ;;  %v3308_v7 = vmul.f32 %v4374_v54, %v3244_v19  ;;  %vm3314_vm2 = vweird.f32 %v4374_v54 }
 0xfaa   :  { %4008 = vmatmul.msk.f32.gmra.mxu3 %vm6909_vm5, %v6299_v61  ;;  %vm3315_vm0 = vmor %vm3313_vm14, %vm3314_vm2 }
 0xfab   :  { %v3306_v37 = vsel %vm3305_vm11, %v4372_v44, %v3302_v60  ;;  %v3309_v21 = vmul.f32 %v4374_v54, %v3308_v7  ;;  %vm6915_vm11 = vmmov %vm6914_vm3 }
 0xfac   :  { %v3342_v43 = vmul.f32 %v3306_v37, %v6211_v0  ;;  %vm6916_vm5 = vmmov %vm6914_vm3 }
 0xfad   :  { %v3310_v46 = vmul.f32 0.5, %v3309_v21  ;;  %vm6917_vm2 = vmmov %vm6914_vm3 }
 0xfae   :  { %v3352_v38 = vmul.f32 %v6244_v41, %v3342_v43  ;;  %vm6918_vm14 = vmmov %vm6917_vm2 }
 0xfaf   :  { %v3311_v4 = vsub.f32 1.5, %v3310_v46 }
 0xfb0   :  { %v6306_v20 = vadd.f32 %v6251_v55, %v3352_v38 }
 0xfb1   :  { %v3312_v34 = vmul.f32 %v4374_v54, %v3311_v4 }
 0xfb2   :  { %4009 = vmatmul.msk.f32.gmra.mxu3 %vm6910_vm4, %v6306_v20 }
 0xfb3   :  { %v3316_v11 = vsel %vm3315_vm0, %v4374_v54, %v3312_v34  ;;  %vm6919_vm0 = vmmov %vm6917_vm2 }
 0xfb4   :  { %v3343_v8 = vmul.f32 %v3316_v11, %v6218_v57  ;;  %v3462_v57 = vld [vmem:[%s6551_s1 + $0x190] sm:$0xff]  ;;  %vm6920_vm4 = vmmov %vm6919_vm0 }
 0xfb5   :  { %3475 = vmatpush.msra.mxu0 %v3462_v57 }
 0xfb6   :  { %v3353_v26 = vmul.f32 %v6244_v41, %v3343_v8 }
 0xfb7   :  { %3476 = vmatpush.msra.mxu0 %v3461_v2 }
 0xfb8   :  { %v6313_v0 = vadd.f32 %v6251_v55, %v3353_v26 }
 0xfb9   :  { %3477 = vmatpush.msra.mxu0 %v3460_v12 }
 0xfba   :  { %4010 = vmatmul.msk.f32.gmra.mxu3 %vm6911_vm8, %v6313_v0  ;;  %vm6921_vm8 = vmmov %vm6919_vm0 }
 0xfbb   :  { %3478 = vmatpush.msra.mxu0 %v3459_v28  ;;  %v4139_v28 = vld [vmem:[%s6553_s2 + $0x13] ss:$0 sm:$0xff] }
 0xfbd   :  { %3479 = vmatpush.msra.mxu0 %v3458_v25 }
 0xfbf   :  { %3480 = vmatpush.msra.mxu0 %v3457_v32 }
 0xfc1   :  { %3481 = vmatpush.msra.mxu0 %v3456_v49 }
 0xfc3   :  { %3482 = vmatpush.msra.mxu0 %v3455_v50 }
 0xfc5   :  { %3483 = vmatpush.msra.mxu0 %v3454_v58 }
 0xfc7   :  { %3484 = vmatpush.msra.mxu0 %v3453_v31 }
 0xfc9   :  { %3485 = vmatpush.msra.mxu0 %v3452_v27 }
 0xfd3   :  { %v3225_v3 = vpop.xlane.xlu2 %3224 }
 0xfd4   :  { %v3236_v39 = vmul.f32 %v3225_v3, %v5086_v33 }
 0xfd6   :  { %v3245_v13 = vadd.f32 1e-05, %v3236_v39 }
 0xfd8   :  { %4375 = vrsqrt.f32 %v3245_v13  ;;  %vm3323_vm13 = vweird.f32 %v3245_v13 }
 0xfdb   :  { %v3228_v56 = vpop.xlane.xlu0 %3227 }
 0xfdc   :  { %v3237_v59 = vmul.f32 %v3228_v56, %v5086_v33 }
 0xfde   :  { %v4376_v62 = vpop.eup %4375  ;;  %v3246_v48 = vadd.f32 1e-05, %v3237_v59 }
 0xfdf   :  { %v3318_v53 = vmul.f32 %v4376_v62, %v3245_v13  ;;  %vm3324_vm15 = vweird.f32 %v4376_v62 }
 0xfe0   :  { %4377 = vrsqrt.f32 %v3246_v48  ;;  %vm3325_vm6 = vmor %vm3323_vm13, %vm3324_vm15  ;;  %vm3333_vm7 = vweird.f32 %v3246_v48 }
 0xfe1   :  { %v3319_v14 = vmul.f32 %v4376_v62, %v3318_v53  ;;  %vm6922_vm15 = vmmov %vm6919_vm0 }
 0xfe2   :  { %vm6923_vm13 = vmmov %vm6919_vm0 }
 0xfe3   :  { %v3320_v10 = vmul.f32 0.5, %v3319_v14 }
 0xfe5   :  { %v3321_v29 = vsub.f32 1.5, %v3320_v10 }
 0xfe6   :  { %v4378_v9 = vpop.eup %4377 }
 0xfe7   :  { %v3322_v16 = vmul.f32 %v4376_v62, %v3321_v29  ;;  %v3328_v30 = vmul.f32 %v4378_v9, %v3246_v48  ;;  %vm3334_vm10 = vweird.f32 %v4378_v9 }
 0xfe8   :  { %vm3335_vm1 = vmor %vm3333_vm7, %vm3334_vm10 }
 0xfe9   :  { %v3326_v42 = vsel %vm3325_vm6, %v4376_v62, %v3322_v16  ;;  %v3329_v52 = vmul.f32 %v4378_v9, %v3328_v30  ;;  %vm6924_vm6 = vmmov %vm6919_vm0 }
 0xfea   :  { %v3344_v44 = vmul.f32 %v3326_v42, %v6232_v40  ;;  %vm6925_vm10 = vmmov %vm6919_vm0 }
 0xfeb   :  { %v3330_v19 = vmul.f32 0.5, %v3329_v52  ;;  %vm6926_vm7 = vmmov %vm6919_vm0 }
 0xfec   :  { %v3354_v22 = vmul.f32 %v6244_v41, %v3344_v44 }
 0xfed   :  { %v3331_v17 = vsub.f32 1.5, %v3330_v19 }
 0xfee   :  { %v6364_v36 = vadd.f32 %v6251_v55, %v3354_v22 }
 0xfef   :  { %v3332_v51 = vmul.f32 %v4378_v9, %v3331_v17 }
 0xff0   :  { %v3416_v63 = vpop.f32.mrf.mxu3  ;;  %4011 = vmatmul.msk.f32.gmra.mxu3 %vm6912_vm9, %v6364_v36  ;;  %vm6928_vm9 = vmmov %vm6919_vm0 }
 0xff1   :  { %v3336_v40 = vsel %vm3335_vm1, %v4378_v9, %v3332_v51  ;;  %v3417_v1 = vadd.f32 %v4138_v47, %v3416_v63  ;;  %vm6927_vm1 = vmmov %vm6919_vm0 }
 0xff2   :  { %v3345_v24 = vmul.f32 %v3336_v40, %v6239_v5 }
 0xff3   :  { %v3443_v54 = vmax.f32 %v3417_v1, 0.0 }
 0xff4   :  { %v3355_v60 = vmul.f32 %v6244_v41, %v3345_v24 }
 0xff5   :  { %3486 = vmatmul.f32.vlgmr.msra.gmra.mxu0 %v3443_v54 }
 0xff6   :  { %v6371_v7 = vadd.f32 %v6251_v55, %v3355_v60 }
 0xff8   :  { %v3419_v37 = vpop.f32.mrf.mxu3  ;;  %4012 = vmatmul.msk.f32.gmra.mxu3 %vm6913_vm12, %v6371_v7  ;;  %vm6929_vm12 = vmmov %vm6919_vm0 }
 0xff9   :  { %v3420_v21 = vadd.f32 %v4138_v47, %v3419_v37 }
 0xffb   :  { %v3444_v43 = vmax.f32 %v3420_v21, 0.0 }
 0xffd   :  { %3489 = vmatmul.f32.gmra.mxu0 %v3444_v43 }
0x1019   :  { %v3422_v46 = vpop.f32.mrf.mxu3 }
0x101a   :  { %v3423_v38 = vadd.f32 %v4138_v47, %v3422_v46 }
0x101c   :  { %v3445_v4 = vmax.f32 %v3423_v38, 0.0 }
0x101e   :  { %3492 = vmatmul.f32.gmra.mxu0 %v3445_v4 }
0x1025   :  { %v3425_v34 = vpop.f32.mrf.mxu3 }
0x1026   :  { %v3426_v5 = vadd.f32 %v4138_v47, %v3425_v34 }
0x1028   :  { %v3446_v11 = vmax.f32 %v3426_v5, 0.0 }
0x102a   :  { %3495 = vmatmul.f32.gmra.mxu0 %v3446_v11 }
0x102d   :  { %v3428_v41 = vpop.f32.mrf.mxu3 }
0x102e   :  { %v3429_v8 = vadd.f32 %v4138_v47, %v3428_v41 }
0x1030   :  { %v3447_v26 = vmax.f32 %v3429_v8, 0.0 }
0x1032   :  { %3498 = vmatmul.f32.gmra.mxu0 %v3447_v26 }
0x1035   :  { %v3431_v55 = vpop.f32.mrf.mxu3 }
0x1036   :  { %v3432_v35 = vadd.f32 %v4138_v47, %v3431_v55 }
0x1038   :  { %v3448_v45 = vmax.f32 %v3432_v35, 0.0 }
0x103a   :  { %3501 = vmatmul.f32.gmra.mxu0 %v3448_v45 }
0x103d   :  { %v3434_v57 = vpop.f32.mrf.mxu3 }
0x103e   :  { %v3435_v2 = vadd.f32 %v4138_v47, %v3434_v57 }
0x1040   :  { %v3449_v12 = vmax.f32 %v3435_v2, 0.0 }
0x1042   :  { %3504 = vmatmul.f32.gmra.mxu0 %v3449_v12 }
0x1072   :  { %v3487_v25 = vpop.f32.mrf.mxu0 }
0x1073   :  { %v3488_v32 = vadd.f32 %v4139_v28, %v3487_v25  ;;  %v3437_v49 = vpop.f32.mrf.mxu3 }
0x1074   :  { %v3438_v50 = vadd.f32 %v4138_v47, %v3437_v49 }
0x1075   :  { %v3514_v58 = vadd.f32 %v3488_v32, %v6257_v18 }
0x1076   :  { %v3450_v31 = vmax.f32 %v3438_v50, 0.0 }
0x1077   :  { %v3525_v3 = vsel %vm6914_vm3, %v3514_v58, 0.0  ;;  %vm6930_vm3 = vmmov %vm6919_vm0 }
0x1078   :  { %3526 = vadd.xlane.f32.xlu1 %v3525_v3  ;;  %3507 = vmatmul.f32.gmra.mxu0 %v3450_v31 }
0x107a   :  { %v3490_v27 = vpop.f32.mrf.mxu0 }
0x107b   :  { %v3491_v39 = vadd.f32 %v4139_v28, %v3490_v27  ;;  %v3440_v13 = vpop.f32.mrf.mxu3 }
0x107c   :  { %v3441_v56 = vadd.f32 %v4138_v47, %v3440_v13 }
0x107d   :  { %v3515_v59 = vadd.f32 %v3491_v39, %v6264_v6 }
0x107e   :  { %v3451_v62 = vmax.f32 %v3441_v56, 0.0 }
0x107f   :  { %v3528_v48 = vsel %vm6915_vm11, %v3515_v59, 0.0 }
0x1080   :  { %3529 = vadd.xlane.f32.xlu2 %v3528_v48  ;;  %3510 = vmatmul.f32.gmra.mxu0 %v3451_v62 }
0x109b   :  { %v3493_v53 = vpop.f32.mrf.mxu0 }
0x109c   :  { %v3494_v14 = vadd.f32 %v4139_v28, %v3493_v53  ;;  %v3746_v53 = vld [vmem:[%s6551_s1 + $0x1d8] sm:$0xff] }
0x109d   :  { %3788 = vmatpush.msrb.mxu2 %v3746_v53 }
0x109e   :  { %v3516_v18 = vadd.f32 %v3494_v14, %v6274_v23  ;;  %v3745_v14 = vld [vmem:[%s6551_s1 + $0x1d0] sm:$0xff] }
0x109f   :  { %3789 = vmatpush.msrb.mxu2 %v3745_v14 }
0x10a0   :  { %v3531_v10 = vsel %vm6916_vm5, %v3516_v18, 0.0 }
0x10a1   :  { %3532 = vadd.xlane.f32.xlu0 %v3531_v10  ;;  %v3743_v10 = vld [vmem:[%s6551_s1 + $0x1c0] sm:$0xff] }
0x10a7   :  { %v3496_v29 = vpop.f32.mrf.mxu0 }
0x10a8   :  { %v3497_v9 = vadd.f32 %v4139_v28, %v3496_v29 }
0x10aa   :  { %v3517_v16 = vadd.f32 %v3497_v9, %v6292_v15 }
0x10ac   :  { %v3534_v30 = vsel %vm6917_vm2, %v3517_v16, 0.0 }
0x10ad   :  { %3535 = vadd.xlane.f32.xlu1 %v3534_v30 }
0x10af   :  { %v3499_v6 = vpop.f32.mrf.mxu0 }
0x10b0   :  { %v3500_v42 = vadd.f32 %v4139_v28, %v3499_v6 }
0x10b2   :  { %v3518_v52 = vadd.f32 %v3500_v42, %v6299_v61 }
0x10b4   :  { %v3537_v44 = vsel %vm6918_vm14, %v3518_v52, 0.0  ;;  %vm6931_vm14 = vmmov %vm6919_vm0 }
0x10b5   :  { %3538 = vadd.xlane.f32.xlu2 %v3537_v44 }
0x10b7   :  { %v3502_v19 = vpop.f32.mrf.mxu0 }
0x10b8   :  { %v3503_v22 = vadd.f32 %v4139_v28, %v3502_v19 }
0x10ba   :  { %v3519_v23 = vadd.f32 %v3503_v22, %v6306_v20 }
0x10bc   :  { %v3540_v17 = vsel %vm6919_vm0, %v3519_v23, 0.0 }
0x10bd   :  { %3541 = vadd.xlane.f32.xlu0 %v3540_v17 }
0x10bf   :  { %v3505_v47 = vpop.f32.mrf.mxu0 }
0x10c0   :  { %v3506_v51 = vadd.f32 %v4139_v28, %v3505_v47 }
0x10c2   :  { %v3520_v15 = vadd.f32 %v3506_v51, %v6313_v0 }
0x10c4   :  { %v3543_v63 = vsel %vm6920_vm4, %v3520_v15, 0.0 }
0x10c5   :  { %3544 = vadd.xlane.f32.xlu2 %v3543_v63 }
0x10eb   :  { %v3527_v40 = vpop.xlane.xlu1 %3526 }
0x10ec   :  { %v3552_v61 = vmul.f32 %v3527_v40, %v5086_v33 }
0x10ee   :  { %v6393_v1 = vsub.f32 %v3514_v58, %v3552_v61 }
0x10f0   :  { %v3570_v24 = vmul.f32 %v6393_v1, %v6393_v1 }
0x10f2   :  { %v3579_v20 = vsel %vm6921_vm8, %v3570_v24, 0.0 }
0x10f3   :  { %3580 = vadd.xlane.f32.xlu1 %v3579_v20  ;;  %v3530_v54 = vpop.xlane.xlu2 %3529 }
0x10f4   :  { %v3553_v60 = vmul.f32 %v3530_v54, %v5086_v33 }
0x10f5   :  { %v3508_v37 = vpop.f32.mrf.mxu0 }
0x10f6   :  { %v6399_v21 = vsub.f32 %v3515_v59, %v3553_v60  ;;  %v3509_v0 = vadd.f32 %v4139_v28, %v3508_v37  ;;  %v6468_v37 = vld [vmem:[%s6553_s2 + $0x14] ss:$0 sm:$0xff] }
0x10f8   :  { %v3521_v43 = vadd.f32 %v3509_v0, %v6364_v36  ;;  %v3571_v46 = vmul.f32 %v6399_v21, %v6399_v21 }
0x10fa   :  { %v3546_v38 = vsel %vm6922_vm15, %v3521_v43, 0.0  ;;  %v3582_v4 = vsel %vm6923_vm13, %v3571_v46, 0.0  ;;  %vm6932_vm15 = vmmov %vm6927_vm1 }
0x10fb   :  { %3547 = vadd.xlane.f32.xlu1 %v3546_v38  ;;  %3583 = vadd.xlane.f32.xlu0 %v3582_v4  ;;  %v6475_v38 = vld [vmem:[%s6553_s2 + $0x15] ss:$0 sm:$0xff]  ;;  %vm6933_vm13 = vmmov %vm6927_vm1 }
0x10fd   :  { %v3511_v34 = vpop.f32.mrf.mxu0 }
0x10fe   :  { %v3512_v5 = vadd.f32 %v4139_v28, %v3511_v34 }
0x1100   :  { %v6407_v11 = vadd.f32 %v3512_v5, %v6371_v7 }
0x1102   :  { %v3549_v41 = vsel %vm6924_vm6, %v6407_v11, 0.0 }
0x1103   :  { %3550 = vadd.xlane.f32.xlu0 %v3549_v41 }
0x1114   :  { %v3533_v8 = vpop.xlane.xlu0 %3532 }
0x1115   :  { %v3554_v36 = vmul.f32 %v3533_v8, %v5086_v33 }
0x1117   :  { %v6412_v26 = vsub.f32 %v3516_v18, %v3554_v36  ;;  %v3744_v18 = vld [vmem:[%s6551_s1 + $0x1c8] sm:$0xff] }
0x1118   :  { %3790 = vmatpush.msrb.mxu2 %v3744_v18 }
0x1119   :  { %v3572_v55 = vmul.f32 %v6412_v26, %v6412_v26 }
0x111a   :  { %3791 = vmatpush.msrb.mxu2 %v3743_v10 }
0x111b   :  { %v3585_v35 = vsel %vm6925_vm10, %v3572_v55, 0.0 }
0x111c   :  { %3586 = vadd.xlane.f32.xlu2 %v3585_v35 }
0x1120   :  { %v3536_v45 = vpop.xlane.xlu1 %3535 }
0x1121   :  { %v3555_v57 = vmul.f32 %v3536_v45, %v5086_v33 }
0x1123   :  { %v6418_v7 = vsub.f32 %v3517_v16, %v3555_v57 }
0x1125   :  { %v3573_v2 = vmul.f32 %v6418_v7, %v6418_v7 }
0x1127   :  { %v3588_v12 = vsel %vm6926_vm7, %v3573_v2, 0.0 }
0x1128   :  { %v3539_v28 = vpop.xlane.xlu2 %3538  ;;  %3589 = vadd.xlane.f32.xlu1 %v3588_v12 }
0x1129   :  { %v3556_v25 = vmul.f32 %v3539_v28, %v5086_v33 }
0x112b   :  { %v6424_v32 = vsub.f32 %v3518_v52, %v3556_v25 }
0x112d   :  { %v3574_v49 = vmul.f32 %v6424_v32, %v6424_v32 }
0x112f   :  { %v3591_v50 = vsel %vm6927_vm1, %v3574_v49, 0.0 }
0x1130   :  { %3592 = vadd.xlane.f32.xlu2 %v3591_v50  ;;  %v3542_v58 = vpop.xlane.xlu0 %3541 }
0x1131   :  { %v3557_v31 = vmul.f32 %v3542_v58, %v5086_v33 }
0x1133   :  { %v6430_v3 = vsub.f32 %v3519_v23, %v3557_v31 }
0x1135   :  { %v3575_v27 = vmul.f32 %v6430_v3, %v6430_v3 }
0x1137   :  { %v3594_v39 = vsel %vm6928_vm9, %v3575_v27, 0.0 }
0x1138   :  { %v3545_v13 = vpop.xlane.xlu2 %3544  ;;  %3595 = vadd.xlane.f32.xlu0 %v3594_v39 }
0x1139   :  { %v3558_v56 = vmul.f32 %v3545_v13, %v5086_v33 }
0x113b   :  { %v6436_v59 = vsub.f32 %v3520_v15, %v3558_v56 }
0x113d   :  { %v3576_v62 = vmul.f32 %v6436_v59, %v6436_v59 }
0x113f   :  { %v3597_v48 = vsel %vm6929_vm12, %v3576_v62, 0.0 }
0x1140   :  { %3598 = vadd.xlane.f32.xlu1 %v3597_v48 }
0x1166   :  { %v3581_v29 = vpop.xlane.xlu1 %3580 }
0x1167   :  { %v3606_v9 = vmul.f32 %v3581_v29, %v5086_v33 }
0x1169   :  { %v3615_v16 = vadd.f32 1e-05, %v3606_v9 }
0x116b   :  { %4379 = vrsqrt.f32 %v3615_v16  ;;  %vm3630_vm5 = vweird.f32 %v3615_v16 }
0x116e   :  { %v3548_v30 = vpop.xlane.xlu1 %3547  ;;  %v3584_v6 = vpop.xlane.xlu0 %3583 }
0x116f   :  { %v3559_v42 = vmul.f32 %v3548_v30, %v5086_v33  ;;  %v3607_v52 = vmul.f32 %v3584_v6, %v5086_v33 }
0x1171   :  { %v4380_v44 = vpop.eup %4379  ;;  %v6456_v19 = vsub.f32 %v3521_v43, %v3559_v42  ;;  %v3616_v22 = vadd.f32 1e-05, %v3607_v52 }
0x1172   :  { %v3625_v23 = vmul.f32 %v4380_v44, %v3615_v16  ;;  %vm3631_vm11 = vweird.f32 %v4380_v44 }
0x1173   :  { %4381 = vrsqrt.f32 %v3616_v22  ;;  %v3577_v17 = vmul.f32 %v6456_v19, %v6456_v19  ;;  %vm3632_vm2 = vmor %vm3630_vm5, %vm3631_vm11  ;;  %vm3640_vm4 = vweird.f32 %v3616_v22 }
0x1174   :  { %v3626_v47 = vmul.f32 %v4380_v44, %v3625_v23 }
0x1175   :  { %v3600_v51 = vsel %vm6930_vm3, %v3577_v17, 0.0 }
0x1176   :  { %v3627_v15 = vmul.f32 0.5, %v3626_v47  ;;  %3601 = vadd.xlane.f32.xlu2 %v3600_v51  ;;  %v3551_v63 = vpop.xlane.xlu0 %3550 }
0x1177   :  { %v3560_v40 = vmul.f32 %v3551_v63, %v5086_v33 }
0x1178   :  { %v3628_v61 = vsub.f32 1.5, %v3627_v15 }
0x1179   :  { %v4382_v24 = vpop.eup %4381  ;;  %v6463_v20 = vsub.f32 %v6407_v11, %v3560_v40 }
0x117a   :  { %v3629_v54 = vmul.f32 %v4380_v44, %v3628_v61  ;;  %v3635_v60 = vmul.f32 %v4382_v24, %v3616_v22  ;;  %vm3641_vm0 = vweird.f32 %v4382_v24 }
0x117b   :  { %v3578_v0 = vmul.f32 %v6463_v20, %v6463_v20  ;;  %vm3642_vm8 = vmor %vm3640_vm4, %vm3641_vm0 }
0x117c   :  { %v3633_v43 = vsel %vm3632_vm2, %v4380_v44, %v3629_v54  ;;  %v3636_v46 = vmul.f32 %v4382_v24, %v3635_v60 }
0x117d   :  { %v3714_v4 = vmul.f32 %v3633_v43, %v6393_v1  ;;  %v3603_v34 = vsel %vm6931_vm14, %v3578_v0, 0.0  ;;  %vm6934_vm14 = vmmov %vm6927_vm1 }
0x117e   :  { %v3637_v5 = vmul.f32 0.5, %v3636_v46  ;;  %3604 = vadd.xlane.f32.xlu0 %v3603_v34 }
0x117f   :  { %v3724_v11 = vmul.f32 %v6468_v37, %v3714_v4 }
0x1180   :  { %v3638_v41 = vsub.f32 1.5, %v3637_v5 }
0x1181   :  { %v3734_v8 = vadd.f32 %v6475_v38, %v3724_v11 }
0x1182   :  { %v3639_v36 = vmul.f32 %v4382_v24, %v3638_v41 }
0x1183   :  { %4013 = vmatmul.msk.f32.vlgmr.msrb.gmra.mxu2 %vm6932_vm15, %v3734_v8  ;;  %vm6935_vm15 = vmmov %vm6927_vm1 }
0x1184   :  { %v3643_v55 = vsel %vm3642_vm8, %v4382_v24, %v3639_v36 }
0x1185   :  { %v3715_v35 = vmul.f32 %v3643_v55, %v6399_v21 }
0x1187   :  { %v3725_v1 = vmul.f32 %v6468_v37, %v3715_v35 }
0x1189   :  { %v3735_v45 = vadd.f32 %v6475_v38, %v3725_v1 }
0x118b   :  { %4014 = vmatmul.msk.f32.gmra.mxu2 %vm6933_vm13, %v3735_v45 }
0x118f   :  { %v3587_v57 = vpop.xlane.xlu2 %3586 }
0x1190   :  { %v3608_v2 = vmul.f32 %v3587_v57, %v5086_v33 }
0x1192   :  { %v3617_v12 = vadd.f32 1e-05, %v3608_v2 }
0x1194   :  { %4383 = vrsqrt.f32 %v3617_v12  ;;  %vm3650_vm10 = vweird.f32 %v3617_v12 }
0x119a   :  { %v4384_v28 = vpop.eup %4383 }
0x119b   :  { %v3645_v25 = vmul.f32 %v4384_v28, %v3617_v12  ;;  %v3590_v49 = vpop.xlane.xlu1 %3589  ;;  %vm3651_vm6 = vweird.f32 %v4384_v28 }
0x119c   :  { %v3609_v50 = vmul.f32 %v3590_v49, %v5086_v33  ;;  %vm3652_vm7 = vmor %vm3650_vm10, %vm3651_vm6 }
0x119d   :  { %v3646_v58 = vmul.f32 %v4384_v28, %v3645_v25 }
0x119e   :  { %v3618_v31 = vadd.f32 1e-05, %v3609_v50 }
0x119f   :  { %v3647_v27 = vmul.f32 0.5, %v3646_v58 }
0x11a0   :  { %4385 = vrsqrt.f32 %v3618_v31  ;;  %vm3660_vm12 = vweird.f32 %v3618_v31 }
0x11a1   :  { %v3648_v21 = vsub.f32 1.5, %v3647_v27 }
0x11a3   :  { %v3649_v39 = vmul.f32 %v4384_v28, %v3648_v21  ;;  %v3593_v13 = vpop.xlane.xlu2 %3592 }
0x11a4   :  { %v3610_v56 = vmul.f32 %v3593_v13, %v5086_v33 }
0x11a5   :  { %v3653_v62 = vsel %vm3652_vm7, %v4384_v28, %v3649_v39  ;;  %vm6936_vm7 = vmmov %vm6927_vm1 }
0x11a6   :  { %v4386_v48 = vpop.eup %4385  ;;  %v3716_v53 = vmul.f32 %v3653_v62, %v6412_v26  ;;  %v3619_v14 = vadd.f32 1e-05, %v3610_v56 }
0x11a7   :  { %v3655_v18 = vmul.f32 %v4386_v48, %v3618_v31  ;;  %vm3661_vm9 = vweird.f32 %v4386_v48 }
0x11a8   :  { %4387 = vrsqrt.f32 %v3619_v14  ;;  %v3726_v10 = vmul.f32 %v6468_v37, %v3716_v53  ;;  %vm3662_vm3 = vmor %vm3660_vm12, %vm3661_vm9  ;;  %vm3670_vm5 = vweird.f32 %v3619_v14 }
0x11a9   :  { %v3656_v29 = vmul.f32 %v4386_v48, %v3655_v18 }
0x11aa   :  { %v3736_v9 = vadd.f32 %v6475_v38, %v3726_v10 }
0x11ab   :  { %v3657_v16 = vmul.f32 0.5, %v3656_v29  ;;  %v3596_v30 = vpop.xlane.xlu0 %3595 }
0x11ac   :  { %v3611_v6 = vmul.f32 %v3596_v30, %v5086_v33  ;;  %4015 = vmatmul.msk.f32.gmra.mxu2 %vm6927_vm1, %v3736_v9 }
0x11ad   :  { %v3658_v42 = vsub.f32 1.5, %v3657_v16 }
0x11ae   :  { %v4388_v52 = vpop.eup %4387  ;;  %v3620_v44 = vadd.f32 1e-05, %v3611_v6 }
0x11af   :  { %v3659_v22 = vmul.f32 %v4386_v48, %v3658_v42  ;;  %v3665_v26 = vmul.f32 %v4388_v52, %v3619_v14  ;;  %vm3671_vm11 = vweird.f32 %v4388_v52  ;;  %v4142_v42 = vld [vmem:[%s6553_s2 + $0x16] ss:$0 sm:$0xff] }
0x11b0   :  { %4389 = vrsqrt.f32 %v3620_v44  ;;  %vm3672_vm2 = vmor %vm3670_vm5, %vm3671_vm11  ;;  %vm3680_vm4 = vweird.f32 %v3620_v44 }
0x11b1   :  { %v3663_v23 = vsel %vm3662_vm3, %v4386_v48, %v3659_v22  ;;  %v3666_v17 = vmul.f32 %v4388_v52, %v3665_v26 }
0x11b2   :  { %v3717_v47 = vmul.f32 %v3663_v23, %v6418_v7 }
0x11b3   :  { %v3667_v51 = vmul.f32 0.5, %v3666_v17  ;;  %v3599_v15 = vpop.xlane.xlu1 %3598 }
0x11b4   :  { %v3612_v63 = vmul.f32 %v3599_v15, %v5086_v33  ;;  %v3727_v40 = vmul.f32 %v6468_v37, %v3717_v47 }
0x11b5   :  { %v3668_v61 = vsub.f32 1.5, %v3667_v51 }
0x11b6   :  { %v4390_v24 = vpop.eup %4389  ;;  %v3621_v54 = vadd.f32 1e-05, %v3612_v63  ;;  %v3737_v60 = vadd.f32 %v6475_v38, %v3727_v40 }
0x11b7   :  { %v3669_v0 = vmul.f32 %v4388_v52, %v3668_v61  ;;  %v3675_v43 = vmul.f32 %v4390_v24, %v3620_v44  ;;  %vm3681_vm0 = vweird.f32 %v4390_v24 }
0x11b8   :  { %4391 = vrsqrt.f32 %v3621_v54  ;;  %4016 = vmatmul.msk.f32.gmra.mxu2 %vm6934_vm14, %v3737_v60  ;;  %vm3682_vm8 = vmor %vm3680_vm4, %vm3681_vm0  ;;  %vm3690_vm6 = vweird.f32 %v3621_v54 }
0x11b9   :  { %v3673_v7 = vsel %vm3672_vm2, %v4388_v52, %v3669_v0  ;;  %v3676_v46 = vmul.f32 %v4390_v24, %v3675_v43  ;;  %vm6937_vm14 = vmmov %vm6927_vm1 }
0x11ba   :  { %v3718_v4 = vmul.f32 %v3673_v7, %v6424_v32  ;;  %vm6938_vm0 = vmmov %vm6927_vm1 }
0x11bb   :  { %v3677_v34 = vmul.f32 0.5, %v3676_v46 }
0x11bc   :  { %v3728_v5 = vmul.f32 %v6468_v37, %v3718_v4 }
0x11bd   :  { %v3678_v11 = vsub.f32 1.5, %v3677_v34 }
0x11be   :  { %v4392_v41 = vpop.eup %4391  ;;  %v3738_v8 = vadd.f32 %v6475_v38, %v3728_v5 }
0x11bf   :  { %v3679_v36 = vmul.f32 %v4390_v24, %v3678_v11  ;;  %v3685_v55 = vmul.f32 %v4392_v41, %v3621_v54  ;;  %vm3691_vm13 = vweird.f32 %v4392_v41 }
0x11c0   :  { %4017 = vmatmul.msk.f32.gmra.mxu2 %vm6935_vm15, %v3738_v8  ;;  %vm3692_vm10 = vmor %vm3690_vm6, %vm3691_vm13 }
0x11c1   :  { %v3683_v35 = vsel %vm3682_vm8, %v4390_v24, %v3679_v36  ;;  %v3686_v1 = vmul.f32 %v4392_v41, %v3685_v55 }
0x11c2   :  { %v3719_v45 = vmul.f32 %v3683_v35, %v6430_v3 }
0x11c3   :  { %v3687_v57 = vmul.f32 0.5, %v3686_v1 }
0x11c4   :  { %v3729_v32 = vmul.f32 %v6468_v37, %v3719_v45 }
0x11c5   :  { %v3688_v2 = vsub.f32 1.5, %v3687_v57 }
0x11c6   :  { %v3739_v12 = vadd.f32 %v6475_v38, %v3729_v32 }
0x11c7   :  { %v3689_v28 = vmul.f32 %v4392_v41, %v3688_v2 }
0x11c8   :  { %4018 = vmatmul.msk.f32.gmra.mxu2 %vm6936_vm7, %v3739_v12 }
0x11c9   :  { %v3693_v25 = vsel %vm3692_vm10, %v4392_v41, %v3689_v28 }
0x11ca   :  { %v3720_v49 = vmul.f32 %v3693_v25, %v6436_v59 }
0x11cc   :  { %v3730_v50 = vmul.f32 %v6468_v37, %v3720_v49 }
0x11ce   :  { %v3740_v58 = vadd.f32 %v6475_v38, %v3730_v50 }
0x11d0   :  { %4019 = vmatmul.msk.f32.gmra.mxu2 %vm6927_vm1, %v3740_v58 }
0x11e9   :  { %v3602_v3 = vpop.xlane.xlu2 %3601 }
0x11ea   :  { %v3613_v31 = vmul.f32 %v3602_v3, %v5086_v33 }
0x11ec   :  { %v3622_v27 = vadd.f32 1e-05, %v3613_v31 }
0x11ee   :  { %4393 = vrsqrt.f32 %v3622_v27  ;;  %vm3700_vm12 = vweird.f32 %v3622_v27 }
0x11f1   :  { %v3605_v21 = vpop.xlane.xlu0 %3604 }
0x11f2   :  { %v3614_v39 = vmul.f32 %v3605_v21, %v5086_v33 }
0x11f4   :  { %v4394_v13 = vpop.eup %4393  ;;  %v3623_v56 = vadd.f32 1e-05, %v3614_v39 }
0x11f5   :  { %v3695_v62 = vmul.f32 %v4394_v13, %v3622_v27  ;;  %vm3701_vm9 = vweird.f32 %v4394_v13 }
0x11f6   :  { %4395 = vrsqrt.f32 %v3623_v56  ;;  %vm3702_vm3 = vmor %vm3700_vm12, %vm3701_vm9  ;;  %vm3710_vm5 = vweird.f32 %v3623_v56 }
0x11f7   :  { %v3696_v48 = vmul.f32 %v4394_v13, %v3695_v62 }
0x11f9   :  { %v3697_v59 = vmul.f32 0.5, %v3696_v48 }
0x11fb   :  { %v3698_v53 = vsub.f32 1.5, %v3697_v59 }
0x11fc   :  { %v4396_v14 = vpop.eup %4395 }
0x11fd   :  { %v3699_v18 = vmul.f32 %v4394_v13, %v3698_v53  ;;  %v3705_v10 = vmul.f32 %v4396_v14, %v3623_v56  ;;  %vm3711_vm11 = vweird.f32 %v4396_v14 }
0x11fe   :  { %vm3712_vm2 = vmor %vm3710_vm5, %vm3711_vm11 }
0x11ff   :  { %v3703_v29 = vsel %vm3702_vm3, %v4394_v13, %v3699_v18  ;;  %v3706_v9 = vmul.f32 %v4396_v14, %v3705_v10 }
0x1200   :  { %v3721_v16 = vmul.f32 %v3703_v29, %v6456_v19 }
0x1201   :  { %v3707_v30 = vmul.f32 0.5, %v3706_v9 }
0x1202   :  { %v3731_v33 = vmul.f32 %v6468_v37, %v3721_v16 }
0x1203   :  { %v3708_v6 = vsub.f32 1.5, %v3707_v30 }
0x1204   :  { %v3741_v52 = vadd.f32 %v6475_v38, %v3731_v33 }
0x1205   :  { %v3709_v44 = vmul.f32 %v4396_v14, %v3708_v6 }
0x1206   :  { %v3793_v22 = vpop.f32.mrf.mxu2  ;;  %4020 = vmatmul.msk.f32.gmra.mxu2 %vm6937_vm14, %v3741_v52 }
0x1207   :  { %v3713_v26 = vsel %vm3712_vm2, %v4396_v14, %v3709_v44  ;;  %v3794_v23 = vadd.f32 %v4142_v42, %v3793_v22 }
0x1208   :  { %v3722_v19 = vmul.f32 %v3713_v26, %v6463_v20 }
0x1209   :  { %3820 = vst [vmem:[%s6554_s3] sm:$0xff] %v3794_v23 }
0x120a   :  { %v3732_v17 = vmul.f32 %v6468_v37, %v3722_v19 }
0x120c   :  { %v3742_v47 = vadd.f32 %v6475_v38, %v3732_v17 }
0x120e   :  { %v3796_v51 = vpop.f32.mrf.mxu2  ;;  %4021 = vmatmul.msk.f32.gmra.mxu2 %vm6938_vm0, %v3742_v47 }
0x120f   :  { %v3797_v15 = vadd.f32 %v4142_v42, %v3796_v51 }
0x1211   :  { %3821 = vst [vmem:[%s6554_s3 + $0x8] sm:$0xff] %v3797_v15 }
0x122f   :  { %v3799_v63 = vpop.f32.mrf.mxu2 }
0x1230   :  { %v3800_v40 = vadd.f32 %v4142_v42, %v3799_v63 }
0x1232   :  { %3822 = vst [vmem:[%s6554_s3 + $0x10] sm:$0xff] %v3800_v40 }
0x123b   :  { %v3802_v20 = vpop.f32.mrf.mxu2 }
0x123c   :  { %v3803_v61 = vadd.f32 %v4142_v42, %v3802_v20 }
0x123e   :  { %3823 = vst [vmem:[%s6554_s3 + $0x18] sm:$0xff] %v3803_v61 }
0x1243   :  { %v3805_v37 = vpop.f32.mrf.mxu2 }
0x1244   :  { %v3806_v38 = vadd.f32 %v4142_v42, %v3805_v37 }
0x1246   :  { %3824 = vst [vmem:[%s6554_s3 + $0x20] sm:$0xff] %v3806_v38 }
0x124b   :  { %v3808_v24 = vpop.f32.mrf.mxu2 }
0x124c   :  { %v3809_v54 = vadd.f32 %v4142_v42, %v3808_v24 }
0x124e   :  { %3825 = vst [vmem:[%s6554_s3 + $0x28] sm:$0xff] %v3809_v54 }
0x1253   :  { %v3811_v60 = vpop.f32.mrf.mxu2 }
0x1254   :  { %v3812_v0 = vadd.f32 %v4142_v42, %v3811_v60 }
0x1256   :  { %3826 = vst [vmem:[%s6554_s3 + $0x30] sm:$0xff] %v3812_v0 }
0x1289   :  { %v3814_v43 = vpop.f32.mrf.mxu2 }
0x128a   :  { %v3815_v7 = vadd.f32 %v4142_v42, %v3814_v43 }
0x128c   :  { %3827 = vst [vmem:[%s6554_s3 + $0x38] sm:$0xff] %v3815_v7 }
0x1291   :  { %v3817_v46 = vpop.f32.mrf.mxu2 }
0x1292   :  { %v3818_v4 = vadd.f32 %v4142_v42, %v3817_v46 }
0x1294   :  { %3828 = vst [vmem:[%s6554_s3 + $0x40] sm:$0xff] %v3818_v4 }

</bundles_post_ra>
